<compile_context>
chip_gen: v6e
topology: v6e:2x2x1
jax: 0.10.0
libtpu: 0.0.40
codegen_flags: <defaults>
</compile_context>

<pallas_src>
import jax
import jax.numpy as jnp
from jax.experimental import pallas as pl
from jax.experimental.pallas import tpu as pltpu

NEG_SLOPE = 0.01  # nn.LeakyReLU() default negative_slope


def _taps(xp, H, W):
    """xp: (H+2, W+2, C) padded tile -> (H*W, 9*C) im2col, (ky, kx, c) order."""
    cols = [xp[dy:dy + H, dx:dx + W, :].reshape(H * W, -1)
            for dy in range(3) for dx in range(3)]
    return jnp.concatenate(cols, axis=-1)


def _reflect_pad1(y, H, W):
    """In-kernel ReflectionPad2d(1) on (H, W, C) -> (H+2, W+2, C)."""
    y = jnp.concatenate([y[1:2], y, y[H - 2:H - 1]], axis=0)          # pad H
    y = jnp.concatenate([y[:, 1:2], y, y[:, W - 2:W - 1]], axis=1)    # pad W
    return y


def local_net_fused(xp, w1, b1, w2, b2, H, W):
    """xp: (N, H+2, W+2, Cin) reflect-padded input.
    w1: (9*Cin, Cmid), b1: (1, Cmid), w2: (9*Cmid, Cout), b2: (1, Cout).
    Returns (N, H*W, Cout)."""
    N, HP, WP, Cin = xp.shape
    Cmid = w1.shape[-1]
    Cout = w2.shape[-1]
    HW = H * W

    def kernel(xp_ref, w1_ref, b1_ref, w2_ref, b2_ref, o_ref):
        # ---- layer 1: conv3x3 (reflect-padded input) + LeakyReLU ----
        x = xp_ref[0]                                            # (H+2, W+2, Cin)
        t1 = _taps(x, H, W)                                      # (HW, 9*Cin)
        a1 = jnp.dot(t1, w1_ref[...], preferred_element_type=jnp.float32)
        a1 = a1 + b1_ref[...]                                    # (1, Cmid) broadcast
        a1 = jnp.where(a1 >= 0, a1, NEG_SLOPE * a1)              # LeakyReLU
        y1 = a1.reshape(H, W, Cmid)

        # ---- layer 2: in-kernel reflect pad + conv3x3 + LeakyReLU ----
        y1p = _reflect_pad1(y1, H, W)                            # (H+2, W+2, Cmid)
        t2 = _taps(y1p, H, W)                                    # (HW, 9*Cmid)
        a2 = jnp.dot(t2, w2_ref[...], preferred_element_type=jnp.float32)
        a2 = a2 + b2_ref[...]
        a2 = jnp.where(a2 >= 0, a2, NEG_SLOPE * a2)
        o_ref[0] = a2.astype(o_ref.dtype)

    return pl.pallas_call(
        kernel,
        out_shape=jax.ShapeDtypeStruct((N, HW, Cout), xp.dtype),
        grid_spec=pltpu.PrefetchScalarGridSpec(
            num_scalar_prefetch=0,
            grid=(N,),
            in_specs=[
                pl.BlockSpec((1, HP, WP, Cin), lambda n: (n, 0, 0, 0)),
                pl.BlockSpec((9 * Cin, Cmid), lambda n: (0, 0)),
                pl.BlockSpec((1, Cmid), lambda n: (0, 0)),
                pl.BlockSpec((9 * Cmid, Cout), lambda n: (0, 0)),
                pl.BlockSpec((1, Cout), lambda n: (0, 0)),
            ],
            out_specs=pl.BlockSpec((1, HW, Cout), lambda n: (n, 0, 0)),
        ),
        compiler_params=pltpu.CompilerParams(
            dimension_semantics=("parallel",),
            vmem_limit_bytes=64 * 1024 * 1024,
        ),
    )(xp, w1, b1, w2, b2)


def init_localnet_params(key, in_channels=16, out_channels=64, dtype=jnp.float32):
    """Deterministic synthetic parameters (PyTorch-style uniform fan-in init).

    Weights are stored as (3, 3, Cin, Cout); real PyTorch (Cout, Cin, 3, 3)
    weights would need w.transpose(2, 3, 1, 0) before use.
    """
    k1, k2, k3, k4 = jax.random.split(key, 4)

    def conv_init(kw, kb, cin, cout):
        bound = 1.0 / (cin * 9) ** 0.5
        w = jax.random.uniform(kw, (3, 3, cin, cout), dtype, -bound, bound)
        b = jax.random.uniform(kb, (cout,), dtype, -bound, bound)
        return w, b

    w1, b1 = conv_init(k1, k2, in_channels, out_channels)
    w2, b2 = conv_init(k3, k4, out_channels, out_channels)
    return {"w1": w1, "b1": b1, "w2": w2, "b2": b2}


def local_net(params, x_nchw):
    """Forward pass of LocalNet. x_nchw: (N, Cin, H, W) -> (N, Cout, H, W)."""
    # TODO(synk): at production sizes keep the model NHWC end-to-end and drop
    # these two HBM-bound layout transposes; kept here to match the NCHW spec.
    x = jnp.transpose(x_nchw, (0, 2, 3, 1))                      # NCHW -> NHWC
    N, H, W, Cin = x.shape
    Cmid = params["w1"].shape[-1]
    Cout = params["w2"].shape[-1]

    # Reflection pad once in the wrapper (small copy); everything else in-kernel.
    xp = jnp.pad(x, ((0, 0), (1, 1), (1, 1), (0, 0)), mode="reflect")
    w1 = params["w1"].reshape(9 * Cin, Cmid)
    b1 = params["b1"].reshape(1, Cmid)
    w2 = params["w2"].reshape(9 * Cmid, Cout)
    b2 = params["b2"].reshape(1, Cout)

    out = local_net_fused(xp, w1, b1, w2, b2, H, W)              # (N, HW, Cout)
    out = out.reshape(N, H, W, Cout)
    return jnp.transpose(out, (0, 3, 1, 2))                      # NHWC -> NCHW


if __name__ == "__main__":
    key = jax.random.PRNGKey(0)
    k_x, k_p = jax.random.split(key)

    N, CIN, COUT, H, W = 2, 16, 64, 16, 16
    x = jax.random.normal(k_x, (N, CIN, H, W), jnp.float32)
    params = init_localnet_params(k_p, in_channels=CIN, out_channels=COUT)

    fwd = jax.jit(local_net)
    y = fwd(params, x)
    jax.block_until_ready(y)
    assert y.shape == (N, COUT, H, W), y.shape
    assert bool(jnp.all(jnp.isfinite(y)))
    print("KERNEL_OK")
</pallas_src>

<mosaic_0001>
module attributes {stable_mosaic.version = 11 : i64} {
  func.func @kernel(%arg0: i32, %arg1: memref<1x18x18x16xf32, #tpu.memory_space<vmem>>, %arg2: memref<144x64xf32, #tpu.memory_space<vmem>>, %arg3: memref<1x64xf32, #tpu.memory_space<vmem>>, %arg4: memref<576x64xf32, #tpu.memory_space<vmem>>, %arg5: memref<1x64xf32, #tpu.memory_space<vmem>>, %arg6: memref<1x256x64xf32, #tpu.memory_space<vmem>>) attributes {dimension_semantics = [#tpu.dimension_semantics<parallel>], iteration_bounds = array<i64: 2>, scalar_prefetch = 0 : i64, scratch_operands = 0 : i64, tpu.core_type = #tpu.core_type<tc>, window_params = [{transform_indices = @transform_0, window_bounds = array<i64: 1, 18, 18, 16>}, {pipeline_mode = #tpu.pipeline_mode<synchronous>, transform_indices = @transform_1, window_bounds = array<i64: 144, 64>}, {pipeline_mode = #tpu.pipeline_mode<synchronous>, transform_indices = @transform_2, window_bounds = array<i64: 1, 64>}, {pipeline_mode = #tpu.pipeline_mode<synchronous>, transform_indices = @transform_3, window_bounds = array<i64: 576, 64>}, {pipeline_mode = #tpu.pipeline_mode<synchronous>, transform_indices = @transform_4, window_bounds = array<i64: 1, 64>}, {transform_indices = @transform_5, window_bounds = array<i64: 1, 256, 64>}]} {
    %c0 = arith.constant 0 : index
    %c0_0 = arith.constant 0 : index
    %c0_1 = arith.constant 0 : index
    %c0_2 = arith.constant 0 : index
    %0 = vector.load %arg1[%c0, %c0_0, %c0_1, %c0_2] : memref<1x18x18x16xf32, #tpu.memory_space<vmem>>, vector<1x18x18x16xf32>
    %1 = vector.shape_cast %0 : vector<1x18x18x16xf32> to vector<18x18x16xf32>
    %2 = vector.extract_strided_slice %1 {offsets = [0, 0, 0], sizes = [16, 16, 16], strides = [1, 1, 1]} : vector<18x18x16xf32> to vector<16x16x16xf32>
    %3 = vector.shape_cast %2 : vector<16x16x16xf32> to vector<256x16xf32>
    %4 = vector.extract_strided_slice %1 {offsets = [0, 1, 0], sizes = [16, 16, 16], strides = [1, 1, 1]} : vector<18x18x16xf32> to vector<16x16x16xf32>
    %5 = vector.shape_cast %4 : vector<16x16x16xf32> to vector<256x16xf32>
    %6 = vector.extract_strided_slice %1 {offsets = [0, 2, 0], sizes = [16, 16, 16], strides = [1, 1, 1]} : vector<18x18x16xf32> to vector<16x16x16xf32>
    %7 = vector.shape_cast %6 : vector<16x16x16xf32> to vector<256x16xf32>
    %8 = vector.extract_strided_slice %1 {offsets = [1, 0, 0], sizes = [16, 16, 16], strides = [1, 1, 1]} : vector<18x18x16xf32> to vector<16x16x16xf32>
    %9 = vector.shape_cast %8 : vector<16x16x16xf32> to vector<256x16xf32>
    %10 = vector.extract_strided_slice %1 {offsets = [1, 1, 0], sizes = [16, 16, 16], strides = [1, 1, 1]} : vector<18x18x16xf32> to vector<16x16x16xf32>
    %11 = vector.shape_cast %10 : vector<16x16x16xf32> to vector<256x16xf32>
    %12 = vector.extract_strided_slice %1 {offsets = [1, 2, 0], sizes = [16, 16, 16], strides = [1, 1, 1]} : vector<18x18x16xf32> to vector<16x16x16xf32>
    %13 = vector.shape_cast %12 : vector<16x16x16xf32> to vector<256x16xf32>
    %14 = vector.extract_strided_slice %1 {offsets = [2, 0, 0], sizes = [16, 16, 16], strides = [1, 1, 1]} : vector<18x18x16xf32> to vector<16x16x16xf32>
    %15 = vector.shape_cast %14 : vector<16x16x16xf32> to vector<256x16xf32>
    %16 = vector.extract_strided_slice %1 {offsets = [2, 1, 0], sizes = [16, 16, 16], strides = [1, 1, 1]} : vector<18x18x16xf32> to vector<16x16x16xf32>
    %17 = vector.shape_cast %16 : vector<16x16x16xf32> to vector<256x16xf32>
    %18 = vector.extract_strided_slice %1 {offsets = [2, 2, 0], sizes = [16, 16, 16], strides = [1, 1, 1]} : vector<18x18x16xf32> to vector<16x16x16xf32>
    %19 = vector.shape_cast %18 : vector<16x16x16xf32> to vector<256x16xf32>
    %20 = tpu.concatenate %3, %5, %7, %9, %11, %13, %15, %17, %19 in 1 : vector<256x16xf32>, vector<256x16xf32>, vector<256x16xf32>, vector<256x16xf32>, vector<256x16xf32>, vector<256x16xf32>, vector<256x16xf32>, vector<256x16xf32>, vector<256x16xf32> -> vector<256x144xf32>
    %c0_3 = arith.constant 0 : index
    %c0_4 = arith.constant 0 : index
    %21 = vector.load %arg2[%c0_3, %c0_4] : memref<144x64xf32, #tpu.memory_space<vmem>>, vector<144x64xf32>
    %cst = arith.constant dense<0.000000e+00> : vector<256x64xf32>
    %22 = tpu.matmul %20, %21, %cst {dimension_numbers = #tpu.dot_dimension_numbers<[1], [0], [0], [1], [0, 0, 1, 1], [], []>} : vector<256x144xf32>, vector<144x64xf32>, vector<256x64xf32> -> vector<256x64xf32>
    %c0_5 = arith.constant 0 : index
    %c0_6 = arith.constant 0 : index
    %23 = vector.load %arg3[%c0_5, %c0_6] : memref<1x64xf32, #tpu.memory_space<vmem>>, vector<1x64xf32>
    %24 = vector.broadcast %23 : vector<1x64xf32> to vector<256x64xf32>
    %25 = arith.addf %22, %24 : vector<256x64xf32>
    %cst_7 = arith.constant 0.000000e+00 : f32
    %26 = vector.broadcast %cst_7 : f32 to vector<256x64xf32>
    %27 = arith.cmpf oge, %25, %26 : vector<256x64xf32>
    %cst_8 = arith.constant 0.00999999977 : f32
    %28 = vector.broadcast %cst_8 : f32 to vector<256x64xf32>
    %29 = arith.mulf %28, %25 : vector<256x64xf32>
    %30 = arith.select %27, %25, %29 : vector<256x64xi1>, vector<256x64xf32>
    %31 = vector.shape_cast %30 : vector<256x64xf32> to vector<16x16x64xf32>
    %32 = vector.extract_strided_slice %31 {offsets = [1, 0, 0], sizes = [1, 16, 64], strides = [1, 1, 1]} : vector<16x16x64xf32> to vector<1x16x64xf32>
    %33 = vector.extract_strided_slice %31 {offsets = [14, 0, 0], sizes = [1, 16, 64], strides = [1, 1, 1]} : vector<16x16x64xf32> to vector<1x16x64xf32>
    %34 = tpu.concatenate %32, %31, %33 in 0 : vector<1x16x64xf32>, vector<16x16x64xf32>, vector<1x16x64xf32> -> vector<18x16x64xf32>
    %35 = vector.extract_strided_slice %34 {offsets = [0, 1, 0], sizes = [18, 1, 64], strides = [1, 1, 1]} : vector<18x16x64xf32> to vector<18x1x64xf32>
    %36 = vector.extract_strided_slice %34 {offsets = [0, 14, 0], sizes = [18, 1, 64], strides = [1, 1, 1]} : vector<18x16x64xf32> to vector<18x1x64xf32>
    %37 = tpu.concatenate %35, %34, %36 in 1 : vector<18x1x64xf32>, vector<18x16x64xf32>, vector<18x1x64xf32> -> vector<18x18x64xf32>
    %38 = vector.extract_strided_slice %37 {offsets = [0, 0, 0], sizes = [16, 16, 64], strides = [1, 1, 1]} : vector<18x18x64xf32> to vector<16x16x64xf32>
    %39 = vector.shape_cast %38 : vector<16x16x64xf32> to vector<256x64xf32>
    %40 = vector.extract_strided_slice %37 {offsets = [0, 1, 0], sizes = [16, 16, 64], strides = [1, 1, 1]} : vector<18x18x64xf32> to vector<16x16x64xf32>
    %41 = vector.shape_cast %40 : vector<16x16x64xf32> to vector<256x64xf32>
    %42 = vector.extract_strided_slice %37 {offsets = [0, 2, 0], sizes = [16, 16, 64], strides = [1, 1, 1]} : vector<18x18x64xf32> to vector<16x16x64xf32>
    %43 = vector.shape_cast %42 : vector<16x16x64xf32> to vector<256x64xf32>
    %44 = vector.extract_strided_slice %37 {offsets = [1, 0, 0], sizes = [16, 16, 64], strides = [1, 1, 1]} : vector<18x18x64xf32> to vector<16x16x64xf32>
    %45 = vector.shape_cast %44 : vector<16x16x64xf32> to vector<256x64xf32>
    %46 = vector.extract_strided_slice %37 {offsets = [1, 1, 0], sizes = [16, 16, 64], strides = [1, 1, 1]} : vector<18x18x64xf32> to vector<16x16x64xf32>
    %47 = vector.shape_cast %46 : vector<16x16x64xf32> to vector<256x64xf32>
    %48 = vector.extract_strided_slice %37 {offsets = [1, 2, 0], sizes = [16, 16, 64], strides = [1, 1, 1]} : vector<18x18x64xf32> to vector<16x16x64xf32>
    %49 = vector.shape_cast %48 : vector<16x16x64xf32> to vector<256x64xf32>
    %50 = vector.extract_strided_slice %37 {offsets = [2, 0, 0], sizes = [16, 16, 64], strides = [1, 1, 1]} : vector<18x18x64xf32> to vector<16x16x64xf32>
    %51 = vector.shape_cast %50 : vector<16x16x64xf32> to vector<256x64xf32>
    %52 = vector.extract_strided_slice %37 {offsets = [2, 1, 0], sizes = [16, 16, 64], strides = [1, 1, 1]} : vector<18x18x64xf32> to vector<16x16x64xf32>
    %53 = vector.shape_cast %52 : vector<16x16x64xf32> to vector<256x64xf32>
    %54 = vector.extract_strided_slice %37 {offsets = [2, 2, 0], sizes = [16, 16, 64], strides = [1, 1, 1]} : vector<18x18x64xf32> to vector<16x16x64xf32>
    %55 = vector.shape_cast %54 : vector<16x16x64xf32> to vector<256x64xf32>
    %56 = tpu.concatenate %39, %41, %43, %45, %47, %49, %51, %53, %55 in 1 : vector<256x64xf32>, vector<256x64xf32>, vector<256x64xf32>, vector<256x64xf32>, vector<256x64xf32>, vector<256x64xf32>, vector<256x64xf32>, vector<256x64xf32>, vector<256x64xf32> -> vector<256x576xf32>
    %c0_9 = arith.constant 0 : index
    %c0_10 = arith.constant 0 : index
    %57 = vector.load %arg4[%c0_9, %c0_10] : memref<576x64xf32, #tpu.memory_space<vmem>>, vector<576x64xf32>
    %cst_11 = arith.constant dense<0.000000e+00> : vector<256x64xf32>
    %58 = tpu.matmul %56, %57, %cst_11 {dimension_numbers = #tpu.dot_dimension_numbers<[1], [0], [0], [1], [0, 0, 1, 1], [], []>} : vector<256x576xf32>, vector<576x64xf32>, vector<256x64xf32> -> vector<256x64xf32>
    %c0_12 = arith.constant 0 : index
    %c0_13 = arith.constant 0 : index
    %59 = vector.load %arg5[%c0_12, %c0_13] : memref<1x64xf32, #tpu.memory_space<vmem>>, vector<1x64xf32>
    %60 = vector.broadcast %59 : vector<1x64xf32> to vector<256x64xf32>
    %61 = arith.addf %58, %60 : vector<256x64xf32>
    %cst_14 = arith.constant 0.000000e+00 : f32
    %62 = vector.broadcast %cst_14 : f32 to vector<256x64xf32>
    %63 = arith.cmpf oge, %61, %62 : vector<256x64xf32>
    %cst_15 = arith.constant 0.00999999977 : f32
    %64 = vector.broadcast %cst_15 : f32 to vector<256x64xf32>
    %65 = arith.mulf %64, %61 : vector<256x64xf32>
    %66 = arith.select %63, %61, %65 : vector<256x64xi1>, vector<256x64xf32>
    %c0_16 = arith.constant 0 : index
    %c0_17 = arith.constant 0 : index
    %c0_18 = arith.constant 0 : index
    %67 = vector.load %arg6[%c0_16, %c0_17, %c0_18] : memref<1x256x64xf32, #tpu.memory_space<vmem>>, vector<1x256x64xf32>
    %68 = vector.shape_cast %67 : vector<1x256x64xf32> to vector<256x64xf32>
    %69 = vector.shape_cast %66 : vector<256x64xf32> to vector<1x256x64xf32>
    tpu.vector_store %arg6[%c0_16, %c0_17, %c0_18], %69 {strides = array<i32>} : memref<1x256x64xf32, #tpu.memory_space<vmem>>, vector<1x256x64xf32>,
    return
  }
  func.func @transform_0(%arg0: i32) -> (i32, i32, i32, i32) {
    %c0_i32 = arith.constant 0 : i32
    %c0_i32_0 = arith.constant 0 : i32
    %c0_i32_1 = arith.constant 0 : i32
    %c0_i32_2 = arith.constant 0 : i32
    return %arg0, %c0_i32, %c0_i32_0, %c0_i32_1 : i32, i32, i32, i32
  }
  func.func @transform_1(%arg0: i32) -> (i32, i32) {
    %c0_i32 = arith.constant 0 : i32
    %c0_i32_0 = arith.constant 0 : i32
    %c0_i32_1 = arith.constant 0 : i32
    return %c0_i32, %c0_i32_0 : i32, i32
  }
  func.func @transform_2(%arg0: i32) -> (i32, i32) {
    %c0_i32 = arith.constant 0 : i32
    %c0_i32_0 = arith.constant 0 : i32
    %c0_i32_1 = arith.constant 0 : i32
    return %c0_i32, %c0_i32_0 : i32, i32
  }
  func.func @transform_3(%arg0: i32) -> (i32, i32) {
    %c0_i32 = arith.constant 0 : i32
    %c0_i32_0 = arith.constant 0 : i32
    %c0_i32_1 = arith.constant 0 : i32
    return %c0_i32, %c0_i32_0 : i32, i32
  }
  func.func @transform_4(%arg0: i32) -> (i32, i32) {
    %c0_i32 = arith.constant 0 : i32
    %c0_i32_0 = arith.constant 0 : i32
    %c0_i32_1 = arith.constant 0 : i32
    return %c0_i32, %c0_i32_0 : i32, i32
  }
  func.func @transform_5(%arg0: i32) -> (i32, i32, i32) {
    %c0_i32 = arith.constant 0 : i32
    %c0_i32_0 = arith.constant 0 : i32
    %c0_i32_1 = arith.constant 0 : i32
    return %arg0, %c0_i32, %c0_i32_0 : i32, i32, i32
  }
}

</mosaic_0001>

<bundles_post_ra>
// kernel: local_net.1
= control target key start
LH: loop header
LB: loop body
LE: loop exit
PB: predicated region body
PF: predicated region fallthrough
CT: control target
= control target key end

     0   :  { %10 = vsyncpa [#allocation3], 0  ;;  %s7578_s0 = inlined_call_operand.vmem [shape: f32[2,18,18,16], index: 0, kind: input, shape index: {}]   ;;  %s7579_s1 = inlined_call_operand.vmem [shape: f32[144,64], index: 1, kind: input, shape index: {}]   ;;  %s7580_s2 = inlined_call_operand.vmem [shape: f32[1,64], index: 2, kind: input, shape index: {}]   ;;  %s7581_s3 = inlined_call_operand.vmem [shape: f32[576,64], index: 3, kind: input, shape index: {}]   ;;  %s7582_s4 = inlined_call_operand.vmem [shape: f32[1,64], index: 4, kind: input, shape index: {}]   ;;  %s7583_s5 = inlined_call_operand.hbm [shape: f32[2,256,64], index: 5, kind: output, shape index: {}]  }
   0x1   :  { %12 = vsyncpa [#allocation3 + $0x1], 0  ;;  %s4872_s18 = smov 0   ;;  %s4874_s19 = smov 0  }
   0x2   :  { %s4876_s20 = smov 0   ;;  %s4878_s21 = smov 0  }
   0x3 LB: > { %s4893_s22 = sadd.s32 4294967295, %s4829_s21   ;;  %s3707_s23 = sadd.s32 4294967294, %s4829_s21   ;;  %s4829_s21 = sphi %s4878_s21, %s7759_s21   ;;  %s4825_s20 = sphi %s4876_s20, %s7758_s20   ;;  %s4821_s19 = sphi %s4874_s19, %s7757_s19   ;;  %s4817_s18 = sphi %s4872_s18, %s7756_s18  }
   0x4   : > { %s4897_s24 = sadd.s32 1, %s4829_s21   ;;  %s135_s25 = sadd.s32 1, %s4825_s20 }
   0x5   : > { %s132_s26 = ssub.s32 %s4829_s21, %s4897_s24  ;;  %p145_p0 = scmp.ne.s32.totalorder %s4825_s20, %s4821_s19 }
   0x6   : > { %p133_p1 = scmp.eq.s32.totalorder %s132_s26, 0  ;;  %p146_p2 = scmp.eq.s32.totalorder %s4893_s22, 1 }
   0x7   : > { %p151_p3 = scmp.ne.s32.totalorder %s4821_s19, %s4817_s18  ;;  %p152_p4 = scmp.eq.s32.totalorder %s3707_s23, 1 }
   0x8   : > { %s4908_s27 = scalar_select %p133_p1, %s4825_s20, %s135_s25  }
   0x9   : > { %p4910_p5 = por %p146_p2, %p145_p0  ;;  %p4914_p6 = por %p152_p4, %p151_p3 }
   0xa   : > { %p3710_p7 = scmp.ge.s32.totalorder %s4829_s21, 1  ;;  %p190_p8 = scmp.lt.s32.totalorder %s4829_s21, 3 }
   0xc   : > { %p191_p9 = pnand %p3710_p7, %p190_p8 }
   0xe   : > { %194 = sbr.rel (%p191_p9) target bundleno = 997 (0x3e5), region = 40 }
  0x13   : > { %p218_p10 = scmp.lt.s32.totalorder %s4893_s22, 1  ;;  %v1431_v0 = vld [vmem:[%s7579_s1 + $0x78] sm:$0xff]  ;;  %v7600_v1 = vmov 0.0   ;;  %v1430_v2 = vld [vmem:[%s7579_s1 + $0x70] sm:$0xff]  ;;  %v1429_v3 = vld [vmem:[%s7579_s1 + $0x68] sm:$0xff]  ;;  %vm325_vm0 = vcmask 1046528  }
  0x14   : > { %1505 = vmatprep.subr.mxu0 %v7600_v1  ;;  %2828 = vmatprep.subr.mxu1 %v7600_v1  ;;  %v1428_v4 = vld [vmem:[%s7579_s1 + $0x60] sm:$0xff]  ;;  %v1427_v5 = vld [vmem:[%s7579_s1 + $0x58] sm:$0xff]  ;;  %vm406_vm1 = vcmask 1045504   ;;  %v1426_v20 = vld [vmem:[%s7579_s1 + $0x50] sm:$0xff]  ;;  %s4832_s6 = smov 48   ;;  %s4834_s10 = smov 96  }
  0x15   : > { %s219_s9 = scalar_select %p218_p10, %s4893_s22, 1  ;;  %1506 = vmatpush1.msra.mxu0 %v1431_v0  ;;  %v1425_v34 = vld [vmem:[%s7579_s1 + $0x48] sm:$0xff]  ;;  %v1424_v41 = vld [vmem:[%s7579_s1 + $0x40] sm:$0xff]  ;;  %v1423_v48 = vld [vmem:[%s7579_s1 + $0x38] sm:$0xff]  ;;  %vm1185_vm2 = vcmask 130048   ;;  %vm1218_vm3 = vcmask 261120  }
  0x16   : > { %1507 = vmatprep.subr.mxu0 %v7600_v1  ;;  %s4835_s15 = smov 32   ;;  %s4836_s16 = smov 64   ;;  %v1422_v53 = vld [vmem:[%s7579_s1 + $0x30] sm:$0xff]  ;;  %v1421_v59 = vld [vmem:[%s7579_s1 + $0x28] sm:$0xff]  ;;  %v1420_v0 = vld [vmem:[%s7579_s1 + $0x20] sm:$0xff]  ;;  %vm1251_vm4 = vcmask 392192  }
  0x17   : > { %s3953_s12 = smul.u32 432, %s219_s9  ;;  %1508 = vmatpush1.msra.mxu0 %v1430_v2  ;;  %s4833_s9 = smov 16   ;;  %vm1284_vm5 = vcmask 523264   ;;  %vm1317_vm6 = vcmask 654336   ;;  %vm1350_vm7 = vcmask 785408   ;;  %vm1383_vm8 = vcmask 916480  }
  0x18   : > { %1509 = vmatprep.subr.mxu0 %v7600_v1  ;;  %s4837_s26 = smov 80   ;;  %vm1890_vm13 = vcmask 1040384   ;;  %s4839_s13 = smov [#allocation2]  }
  0x19   : > { %s4941_s17 = scalar_lea.vmem %s7578_s0, %s3953_s12  ;;  %1510 = vmatpush1.msra.mxu0 %v1429_v3  ;;  %s4838_s12 = smov 112  }
  0x1a   : > { %v4947_v6 = vld [vmem:[%s4941_s17 + $0x18] sm:$0xff]  ;;  %v4950_v7 = vld [vmem:[%s4941_s17 + $0x20] sm:$0xff]  ;;  %1511 = vmatprep.subr.mxu0 %v7600_v1  ;;  %v4959_v10 = vld [vmem:[%s4941_s17 + $0x8] sm:$0xff]  ;;  %s4773_s14 = sshll.u32 %s4839_s13, 4  ;;  %s4774_s14 = int_to_ptr.vmem [resolvable:$false] %s4773_s14 }
  0x1b   : > { %v4953_v8 = vld [vmem:[%s4941_s17] sm:$0xff]  ;;  %v4003_v9 = vpack.i.bf16 %v4950_v7, %v4947_v6  ;;  %v225_v11 = vld [vmem:[%s4941_s17 + $0x10] sm:$0x3]  ;;  %1512 = vmatpush1.msra.mxu0 %v1428_v4  ;;  %v327_v15 = vrot.slane %v4959_v10, 1  ;;  %v4969_v18 = vld [vmem:[%s4941_s17 + $0x38] sm:$0xff]  ;;  %v408_v19 = vrot.slane %v4959_v10, 2 }
  0x1c   : > { %v326_v12 = vrot.slane %v4953_v8, 1  ;;  %v4964_v13 = vld [vmem:[%s4941_s17 + $0x30] sm:$0xff]  ;;  %v407_v14 = vrot.slane %v4953_v8, 2  ;;  %v329_v16 = vrot.slane %v225_v11, 1  ;;  %v410_v17 = vrot.slane %v225_v11, 2  ;;  %1513 = vmatprep.subr.mxu0 %v7600_v1  ;;  %v5024_v55 = vld [vmem:[%s4941_s17 + $0x48] sm:$0xff] }
  0x1d   : > { %4004 = vrot.lane.b32.xlu1 %v4003_v9, %s4832_s6  ;;  %v4979_v21 = vpack.i.bf16 %v4969_v18, %v4964_v13  ;;  %v228_v22 = vld [vmem:[%s4941_s17 + $0x28] sm:$0x3]  ;;  %v331_v23 = vrot.slane %v4947_v6, 1  ;;  %v332_v24 = vrot.slane %v4950_v7, 1  ;;  %v412_v25 = vrot.slane %v4947_v6, 2  ;;  %1514 = vmatpush1.msra.mxu0 %v1427_v5  ;;  %v5027_v56 = vld [vmem:[%s4941_s17 + $0x50] sm:$0xff] }
  0x1e   : > { %v328_v26 = vsel %vm325_vm0, %v326_v12, %v327_v15  ;;  %v330_v27 = vsel %vm325_vm0, %v327_v15, %v329_v16  ;;  %v409_v28 = vsel %vm406_vm1, %v407_v14, %v408_v19  ;;  %v411_v29 = vsel %vm406_vm1, %v408_v19, %v410_v17  ;;  %1515 = vmatprep.subr.mxu0 %v7600_v1  ;;  %v231_v33 = vld [vmem:[%s4941_s17 + $0x40] sm:$0x3]  ;;  %v5030_v57 = vld [vmem:[%s4941_s17 + $0x58] sm:$0x3]  ;;  %v1418_v11 = vld [vmem:[%s7579_s1 + $0x10] sm:$0xff]  ;;  %s4775_s23 = scalar_lea.vmem %s4774_s14, 8192 }
  0x1f   : > { %v4013_v30 = vpack.i.bf16 %v330_v27, %v328_v26  ;;  %v333_v31 = vsel %vm325_vm0, %v331_v23, %v332_v24  ;;  %v334_v32 = vrot.slane %v228_v22, 1  ;;  %1516 = vmatpush1.msra.mxu0 %v1426_v20  ;;  %v413_v35 = vrot.slane %v4950_v7, 2  ;;  %v1419_v5 = vld [vmem:[%s7579_s1 + $0x18] sm:$0xff]  ;;  %v1417_v12 = vld [vmem:[%s7579_s1 + $0x8] sm:$0xff]  ;;  %v1416_v15 = vld [vmem:[%s7579_s1] sm:$0xff] }
  0x20   : > { %v415_v36 = vrot.slane %v228_v22, 2  ;;  %1517 = vmatprep.subr.mxu0 %v7600_v1  ;;  %v4018_v37 = vpack.i.bf16 %v411_v29, %v409_v28  ;;  %v336_v39 = vrot.slane %v4964_v13, 1  ;;  %v337_v40 = vrot.slane %v4969_v18, 1  ;;  %v1433_v16 = vld [vmem:[%s7579_s1 + $0x88] sm:$0xff]  ;;  %v237_v23 = vld [vmem:[%s4941_s17 + $0x70] sm:$0x3] }
  0x21   : > { %4014 = vrot.lane.b32.xlu0 %v4013_v30, %s4833_s9  ;;  %4009 = vrot.lane.b32.xlu1 %v4979_v21, %s4834_s10  ;;  %v335_v38 = vsel %vm325_vm0, %v332_v24, %v334_v32  ;;  %v414_v43 = vsel %vm406_vm1, %v412_v25, %v413_v35  ;;  %v339_v45 = vrot.slane %v231_v33, 1  ;;  %v417_v46 = vrot.slane %v4964_v13, 2  ;;  %v5090_v22 = vld [vmem:[%s4941_s17 + $0x68] sm:$0xff]  ;;  %v1432_v24 = vld [vmem:[%s7579_s1 + $0x80] sm:$0xff] }
  0x22   : > { %v4023_v42 = vpack.i.bf16 %v335_v38, %v333_v31  ;;  %v416_v44 = vsel %vm406_vm1, %v413_v35, %v415_v36  ;;  %1518 = vmatpush1.msra.mxu0 %v1425_v34  ;;  %v418_v47 = vrot.slane %v4969_v18, 2  ;;  %v338_v50 = vsel %vm325_vm0, %v336_v39, %v337_v40  ;;  %v5123_v38 = vld [vmem:[%s4941_s17 + $0x80] sm:$0xff]  ;;  %v240_v39 = vld [vmem:[%s4941_s17 + $0x88] sm:$0x3] }
  0x23   : > { %1519 = vmatprep.subr.mxu0 %v7600_v1  ;;  %v4028_v49 = vpack.i.bf16 %v416_v44, %v414_v43  ;;  %v340_v51 = vsel %vm325_vm0, %v337_v40, %v339_v45  ;;  %v420_v52 = vrot.slane %v231_v33, 2  ;;  %v341_v61 = vrot.slane %v5024_v55, 1 }
  0x24   : > { %1520 = vmatpush1.msra.mxu0 %v1424_v41  ;;  %v419_v54 = vsel %vm406_vm1, %v417_v46, %v418_v47  ;;  %v4033_v58 = vpack.i.bf16 %v340_v51, %v338_v50  ;;  %v342_v62 = vrot.slane %v5027_v56, 1  ;;  %v344_v63 = vrot.slane %v5030_v57, 1 }
  0x25   : > { %4019 = vrot.lane.b32.xlu0 %v4018_v37, %s4835_s15  ;;  %4024 = vrot.lane.b32.xlu1 %v4023_v42, %s4836_s16  ;;  %v5040_v60 = vsel %vm406_vm1, %v418_v47, %v420_v52  ;;  %v4063_v14 = vpack.i.bf16 %v5027_v56, %v5024_v55  ;;  %v422_v17 = vrot.slane %v5024_v55, 2  ;;  %v423_v19 = vrot.slane %v5027_v56, 2  ;;  %v5120_v37 = vld [vmem:[%s4941_s17 + $0x78] sm:$0xff] }
  0x26   : > { %1521 = vmatprep.subr.mxu0 %v7600_v1  ;;  %3714 = vmatprep.mubr.msk.f32.mxu0 %vm1185_vm2, %v419_v54  ;;  %v4058_v2 = vpack.i.bf16 %v5040_v60, %v419_v54  ;;  %v343_v3 = vsel %vm325_vm0, %v341_v61, %v342_v62  ;;  %v345_v4 = vsel %vm325_vm0, %v342_v62, %v344_v63  ;;  %v425_v20 = vrot.slane %v5030_v57, 2  ;;  %v241_v54 = vld [vmem:[%s4941_s17 + $0x90] sm:$0xff]  ;;  %v242_v57 = vld [vmem:[%s4941_s17 + $0x98] sm:$0xff] }
  0x27   : > { %1522 = vmatpush1.msra.mxu0 %v1423_v48  ;;  %v4068_v9 = vpack.i.bf16 %v345_v4, %v343_v3  ;;  %v5103_v27 = vsel %vm406_vm1, %v422_v17, %v423_v19  ;;  %v347_v29 = vrot.slane %v5090_v22, 1  ;;  %v349_v30 = vrot.slane %v237_v23, 1 }
  0x28   : > { %1523 = vmatprep.subr.mxu0 %v7600_v1  ;;  %v5106_v28 = vsel %vm406_vm1, %v423_v19, %v425_v20  ;;  %v428_v33 = vrot.slane %v5090_v22, 2  ;;  %v430_v36 = vrot.slane %v237_v23, 2  ;;  %v351_v43 = vrot.slane %v5120_v37, 1 }
  0x29   : > { %4029 = vrot.lane.b32.xlu0 %v4028_v49, %s4837_s26  ;;  %4039 = vrot.lane.b32.xlu1 %v4023_v42, %s4833_s9  ;;  %v4093_v31 = vpack.i.bf16 %v5106_v28, %v5103_v27  ;;  %v350_v35 = vsel %vm325_vm0, %v347_v29, %v349_v30  ;;  %v352_v44 = vrot.slane %v5123_v38, 1  ;;  %v354_v45 = vrot.slane %v240_v39, 1 }
  0x2a   : > { %1524 = vmatpush1.msra.mxu0 %v1422_v53  ;;  %v5132_v42 = vsel %vm406_vm1, %v428_v33, %v430_v36  ;;  %v4133_v50 = vpack.i.bf16 %v5123_v38, %v5120_v37  ;;  %v432_v51 = vrot.slane %v5120_v37, 2  ;;  %v433_v52 = vrot.slane %v5123_v38, 2  ;;  %v247_v36 = vld [vmem:[%s4941_s17 + $0xc0] sm:$0xff] }
  0x2b   : > { %1525 = vmatprep.subr.mxu0 %v7600_v1  ;;  %v353_v47 = vsel %vm325_vm0, %v351_v43, %v352_v44  ;;  %v355_v48 = vsel %vm325_vm0, %v352_v44, %v354_v45  ;;  %v435_v53 = vrot.slane %v240_v39, 2  ;;  %v4168_v61 = vpack.i.bf16 %v242_v57, %v241_v54  ;;  %v248_v39 = vld [vmem:[%s4941_s17 + $0xc8] sm:$0xff] }
  0x2c   : > { %1526 = vmatpush1.msra.mxu0 %v1421_v59  ;;  %v5158_v59 = vsel %vm406_vm1, %v432_v51, %v433_v52  ;;  %v356_v63 = vrot.slane %v241_v54, 1  ;;  %v437_v4 = vrot.slane %v241_v54, 2  ;;  %v4238_v43 = vpack.i.bf16 %v248_v39, %v247_v36 }
  0x2d   : > { %4034 = vrot.lane.b32.xlu0 %v4033_v58, %s4838_s12  ;;  %4049 = vrot.lane.b32.xlu1 %v4979_v21, %s4832_s6  ;;  %v5087_v21 = vld [vmem:[%s4941_s17 + $0x60] sm:$0xff]  ;;  %v5161_v62 = vsel %vm406_vm1, %v433_v52, %v435_v53  ;;  %v366_v44 = vrot.slane %v247_v36, 1  ;;  %v448_v51 = vrot.slane %v248_v39, 2 }
  0x2e   : > { %1527 = vmatprep.subr.mxu0 %v7600_v1  ;;  %v4098_v25 = vpack.i.bf16 %v5090_v22, %v5087_v21  ;;  %v346_v26 = vrot.slane %v5087_v21, 1  ;;  %v427_v32 = vrot.slane %v5087_v21, 2  ;;  %v4163_v3 = vpack.i.bf16 %v5161_v62, %v5158_v59 }
  0x2f   : > { %1528 = vmatpush1.msra.mxu0 %v1420_v0  ;;  %v357_v0 = vrot.slane %v242_v57, 1 }
  0x30   : > { %1529 = vmatprep.subr.mxu0 %v7600_v1  ;;  %v348_v34 = vsel %vm325_vm0, %v346_v26, %v347_v29  ;;  %v5129_v41 = vsel %vm406_vm1, %v427_v32, %v428_v33 }
  0x31   : > { %4044 = vrot.lane.b32.xlu0 %v4028_v49, %s4835_s15  ;;  %4059 = vrot.lane.b32.xlu1 %v4058_v2, %s4837_s26  ;;  %v4103_v40 = vpack.i.bf16 %v350_v35, %v348_v34  ;;  %v4128_v46 = vpack.i.bf16 %v5132_v42, %v5129_v41  ;;  %v4138_v49 = vpack.i.bf16 %v355_v48, %v353_v47  ;;  %v367_v47 = vrot.slane %v248_v39, 1 }
  0x32   : > { %1530 = vmatpush1.msra.mxu0 %v1419_v5  ;;  %v358_v5 = vsel %vm325_vm0, %v356_v63, %v357_v0 }
  0x33   : > { %1531 = vmatprep.subr.mxu0 %v7600_v1  ;;  %v368_v52 = vsel %vm325_vm0, %v366_v44, %v367_v47 }
  0x34   : > { %1532 = vmatpush1.msra.mxu0 %v1418_v11  ;;  %v438_v11 = vrot.slane %v242_v57, 2  ;;  %v250_v57 = vld [vmem:[%s4941_s17 + $0xd8] sm:$0xff] }
  0x35   : > { %4054 = vrot.lane.b32.xlu0 %v4033_v58, %s4836_s16  ;;  %4069 = vrot.lane.b32.xlu1 %v4068_v9, %s4838_s12 }
  0x36   : > { %1533 = vmatprep.subr.mxu0 %v7600_v1  ;;  %v5175_v20 = vsel %vm406_vm1, %v437_v4, %v438_v11 }
  0x37   : > { %1534 = vmatpush1.msra.mxu0 %v1417_v12 }
  0x38   : > { %1535 = vmatprep.subr.mxu0 %v7600_v1 }
  0x39   : > { %4064 = vrot.lane.b32.xlu0 %v4063_v14, %s4834_s10  ;;  %4079 = vrot.lane.b32.xlu1 %v4058_v2, %s4835_s15 }
  0x3a   : > { %1536 = vmatpush1.msra.mxu0 %v1416_v15  ;;  %v245_v15 = vld [vmem:[%s4941_s17 + $0xb0] sm:$0xff] }
  0x3b   : > { %1565 = vmatprep.subr.mxu0 %v7600_v1  ;;  %v443_v34 = vrot.slane %v245_v15, 2 }
  0x3c   : > { %1566 = vmatpush2.msra.mxu0 %v1433_v16  ;;  %v246_v16 = vld [vmem:[%s4941_s17 + $0xb8] sm:$0x3] }
  0x3d   : > { %4074 = vrot.lane.b32.xlu0 %v4033_v58, %s4833_s9  ;;  %4089 = vrot.lane.b32.xlu1 %v4068_v9, %s4836_s16  ;;  %v243_v58 = vld [vmem:[%s4941_s17 + $0xa0] sm:$0x3]  ;;  %v445_v35 = vrot.slane %v246_v16, 2 }
  0x3e   : > { %1567 = vmatprep.subr.mxu0 %v7600_v1  ;;  %v359_v2 = vrot.slane %v243_v58, 1  ;;  %v440_v12 = vrot.slane %v243_v58, 2  ;;  %v251_v58 = vld [vmem:[%s4941_s17 + $0xe0] sm:$0xff] }
  0x3f   : > { %1568 = vmatpush2.msra.mxu0 %v1432_v24  ;;  %v362_v24 = vrot.slane %v245_v15, 1  ;;  %v372_v4 = vrot.slane %v251_v58, 1 }
  0x40   : > { %3053 = vmatprep.subr.mxu0 %v7600_v1  ;;  %v5178_v23 = vsel %vm406_vm1, %v438_v11, %v440_v12 }
  0x41   : > { %4084 = vrot.lane.b32.xlu0 %v4063_v14, %s4832_s6  ;;  %4099 = vrot.lane.b32.xlu1 %v4098_v25, %s4834_s10  ;;  %v244_v14 = vld [vmem:[%s4941_s17 + $0xa8] sm:$0xff]  ;;  %v4198_v26 = vpack.i.bf16 %v5178_v23, %v5175_v20 }
  0x42   : > { %v361_v19 = vrot.slane %v244_v14, 1  ;;  %v4203_v32 = vpack.i.bf16 %v245_v15, %v244_v14  ;;  %v442_v33 = vrot.slane %v244_v14, 2  ;;  %v4273_v15 = vpack.i.bf16 %v251_v58, %v250_v57 }
  0x44   : > { %v363_v29 = vsel %vm325_vm0, %v361_v19, %v362_v24  ;;  %v5198_v45 = vsel %vm406_vm1, %v442_v33, %v443_v34  ;;  %v453_v19 = vrot.slane %v251_v58, 2 }
  0x45   : > { %4094 = vrot.lane.b32.xlu0 %v4093_v31, %s4837_s26  ;;  %4109 = vrot.lane.b32.xlu1 %v4068_v9, %s4833_s9  ;;  %v360_v9 = vsel %vm325_vm0, %v357_v0, %v359_v2 }
  0x46   : > { %v4173_v17 = vpack.i.bf16 %v360_v9, %v358_v5 }
  0x49   : > { %4104 = vrot.lane.b32.xlu0 %v4103_v40, %s4838_s12  ;;  %4119 = vrot.lane.b32.xlu1 %v4098_v25, %s4832_s6  ;;  %v364_v25 = vrot.slane %v246_v16, 1  ;;  %v253_v16 = vld [vmem:[%s4941_s17 + $0xf0] sm:$0xff] }
  0x4b   : > { %v365_v30 = vsel %vm325_vm0, %v362_v24, %v364_v25  ;;  %v254_v25 = vld [vmem:[%s4941_s17 + $0xf8] sm:$0xff] }
  0x4d   : > { %4114 = vrot.lane.b32.xlu0 %v4093_v31, %s4835_s15  ;;  %4129 = vrot.lane.b32.xlu1 %v4128_v46, %s4837_s26  ;;  %v4208_v31 = vpack.i.bf16 %v365_v30, %v363_v29  ;;  %v376_v30 = vrot.slane %v253_v16, 1 }
  0x51   : > { %4124 = vrot.lane.b32.xlu0 %v4103_v40, %s4836_s16  ;;  %4139 = vrot.lane.b32.xlu1 %v4138_v49, %s4838_s12 }
  0x55   : > { %4134 = vrot.lane.b32.xlu0 %v4133_v50, %s4834_s10  ;;  %4149 = vrot.lane.b32.xlu1 %v4128_v46, %s4835_s15  ;;  %v5201_v46 = vsel %vm406_vm1, %v443_v34, %v445_v35  ;;  %v4308_v35 = vpack.i.bf16 %v254_v25, %v253_v16 }
  0x59   : > { %4144 = vrot.lane.b32.xlu0 %v4103_v40, %s4833_s9  ;;  %4159 = vrot.lane.b32.xlu1 %v4138_v49, %s4836_s16  ;;  %v249_v40 = vld [vmem:[%s4941_s17 + $0xd0] sm:$0x3] }
  0x5a   : > { %v369_v48 = vrot.slane %v249_v40, 1  ;;  %v450_v54 = vrot.slane %v249_v40, 2 }
  0x5c   : > { %v370_v53 = vsel %vm325_vm0, %v367_v47, %v369_v48  ;;  %v5218_v2 = vsel %vm406_vm1, %v448_v51, %v450_v54  ;;  %v5250_v47 = vld [vmem:[%s4941_s17 + $0x108] sm:$0xff]  ;;  %v5253_v48 = vld [vmem:[%s4941_s17 + $0x110] sm:$0xff] }
  0x5d   : > { %4154 = vrot.lane.b32.xlu0 %v4133_v50, %s4832_s6  ;;  %4169 = vrot.lane.b32.xlu1 %v4168_v61, %s4834_s10  ;;  %v447_v50 = vrot.slane %v247_v36, 2  ;;  %v4243_v63 = vpack.i.bf16 %v370_v53, %v368_v52  ;;  %v458_v52 = vrot.slane %v254_v25, 2  ;;  %v5258_v53 = vld [vmem:[%s4941_s17 + $0x118] sm:$0x3] }
  0x5f   : > { %v5215_v0 = vsel %vm406_vm1, %v447_v50, %v448_v51  ;;  %v457_v51 = vrot.slane %v253_v16, 2 }
  0x60   : > { %v4268_v9 = vpack.i.bf16 %v5218_v2, %v5215_v0 }
  0x61   : > { %4164 = vrot.lane.b32.xlu0 %v4163_v3, %s4837_s26  ;;  %4179 = vrot.lane.b32.xlu1 %v4138_v49, %s4833_s9  ;;  %v4233_v49 = vpack.i.bf16 %v5201_v46, %v5198_v45 }
  0x65   : > { %4174 = vrot.lane.b32.xlu0 %v4173_v17, %s4838_s12  ;;  %4189 = vrot.lane.b32.xlu1 %v4168_v61, %s4832_s6  ;;  %v252_v61 = vld [vmem:[%s4941_s17 + $0xe8] sm:$0x3] }
  0x66   : > { %v374_v5 = vrot.slane %v252_v61, 1  ;;  %v455_v24 = vrot.slane %v252_v61, 2 }
  0x68   : > { %v375_v12 = vsel %vm325_vm0, %v372_v4, %v374_v5  ;;  %v5241_v34 = vsel %vm406_vm1, %v453_v19, %v455_v24 }
  0x69   : > { %4184 = vrot.lane.b32.xlu0 %v4163_v3, %s4835_s15  ;;  %4199 = vrot.lane.b32.xlu1 %v4198_v26, %s4837_s26  ;;  %v371_v3 = vrot.slane %v250_v57, 1 }
  0x6b   : > { %v373_v11 = vsel %vm325_vm0, %v371_v3, %v372_v4  ;;  %v382_v3 = vrot.slane %v5253_v48, 1 }
  0x6c   : > { %v4278_v14 = vpack.i.bf16 %v375_v12, %v373_v11  ;;  %v384_v11 = vrot.slane %v5258_v53, 1 }
  0x6d   : > { %4194 = vrot.lane.b32.xlu0 %v4173_v17, %s4836_s16  ;;  %4209 = vrot.lane.b32.xlu1 %v4208_v31, %s4838_s12 }
  0x71   : > { %4204 = vrot.lane.b32.xlu0 %v4203_v32, %s4834_s10  ;;  %4219 = vrot.lane.b32.xlu1 %v4198_v26, %s4835_s15  ;;  %v255_v26 = vld [vmem:[%s4941_s17 + $0x100] sm:$0x3] }
  0x72   : > { %v460_v54 = vrot.slane %v255_v26, 2 }
  0x75   : > { %4214 = vrot.lane.b32.xlu0 %v4173_v17, %s4833_s9  ;;  %4229 = vrot.lane.b32.xlu1 %v4208_v31, %s4836_s16  ;;  %v452_v17 = vrot.slane %v250_v57, 2 }
  0x77   : > { %v5238_v33 = vsel %vm406_vm1, %v452_v17, %v453_v19  ;;  %v5272_v17 = vsel %vm406_vm1, %v457_v51, %v458_v52 }
  0x78   : > { %v4303_v40 = vpack.i.bf16 %v5241_v34, %v5238_v33 }
  0x79   : > { %4224 = vrot.lane.b32.xlu0 %v4203_v32, %s4832_s6  ;;  %4239 = vrot.lane.b32.xlu1 %v4238_v43, %s4834_s10  ;;  %v379_v32 = vrot.slane %v255_v26, 1  ;;  %v5277_v26 = vsel %vm406_vm1, %v458_v52, %v460_v54 }
  0x7d   : > { %4234 = vrot.lane.b32.xlu0 %v4233_v49, %s4837_s26  ;;  %4249 = vrot.lane.b32.xlu1 %v4208_v31, %s4833_s9  ;;  %v377_v31 = vrot.slane %v254_v25, 1 }
  0x7f   : > { %v380_v44 = vsel %vm325_vm0, %v377_v31, %v379_v32 }
  0x81   : > { %4244 = vrot.lane.b32.xlu0 %v4243_v63, %s4838_s12  ;;  %4259 = vrot.lane.b32.xlu1 %v4238_v43, %s4832_s6  ;;  %v378_v43 = vsel %vm325_vm0, %v376_v30, %v377_v31 }
  0x82   : > { %v5260_v61 = vpack.i.bf16 %v380_v44, %v378_v43 }
  0x85   : > { %4254 = vrot.lane.b32.xlu0 %v4233_v49, %s4835_s15  ;;  %4269 = vrot.lane.b32.xlu1 %v4268_v9, %s4837_s26 }
  0x89   : > { %4264 = vrot.lane.b32.xlu0 %v4243_v63, %s4836_s16  ;;  %4279 = vrot.lane.b32.xlu1 %v4278_v14, %s4838_s12 }
  0x8d   : > { %4274 = vrot.lane.b32.xlu0 %v4273_v15, %s4834_s10  ;;  %4289 = vrot.lane.b32.xlu1 %v4268_v9, %s4835_s15 }
  0x8f   : > { %v4005_v29 = vpop.permute.xlu1 %4004 }
  0x90   : > { %v4006_v12 = vunpack.i.l.bf16 %v4005_v29  ;;  %v4007_v19 = vunpack.i.h.bf16 %v4005_v29  ;;  %v4338_v29 = vpack.i.bf16 %v5277_v26, %v5272_v17 }
  0x91   : > { %4284 = vrot.lane.b32.xlu0 %v4243_v63, %s4833_s9  ;;  %4299 = vrot.lane.b32.xlu1 %v4278_v14, %s4836_s16  ;;  %v381_v63 = vrot.slane %v5250_v47, 1 }
  0x93   : > { %v4015_v36 = vpop.permute.xlu0 %4014  ;;  %v5243_v39 = vpop.permute.xlu1 %4009 }
  0x94   : > { %v4017_v49 = vunpack.i.h.bf16 %v4015_v36  ;;  %v4016_v50 = vunpack.i.l.bf16 %v4015_v36  ;;  %v4011_v51 = vunpack.i.l.bf16 %v5243_v39 }
  0x95   : > { %4294 = vrot.lane.b32.xlu0 %v4273_v15, %s4832_s6  ;;  %4309 = vrot.lane.b32.xlu1 %v4308_v35, %s4834_s10 }
  0x96   : > { %v1187_v15 = vsel %vm1185_vm2, %v4959_v10, %v4017_v49  ;;  %v1186_v16 = vsel %vm1185_vm2, %v4953_v8, %v4016_v50  ;;  %v383_v49 = vsel %vm325_vm0, %v381_v63, %v382_v3  ;;  %v385_v50 = vsel %vm325_vm0, %v382_v3, %v384_v11 }
  0x97   : > { %v4020_v57 = vpop.permute.xlu0 %4019  ;;  %v4025_v58 = vpop.permute.xlu1 %4024 }
  0x98   : > { %v4022_v4 = vunpack.i.h.bf16 %v4020_v57  ;;  %v4021_v5 = vunpack.i.l.bf16 %v4020_v57  ;;  %v4026_v9 = vunpack.i.l.bf16 %v4025_v58  ;;  %v4027_v30 = vunpack.i.h.bf16 %v4025_v58 }
  0x99   : > { %4304 = vrot.lane.b32.xlu0 %v4303_v40, %s4837_s26  ;;  %4319 = vrot.lane.b32.xlu1 %v4278_v14, %s4833_s9 }
  0x9a   : > { %v1219_v24 = vsel %vm1218_vm3, %v1186_v16, %v4021_v5  ;;  %v1220_v25 = vsel %vm1218_vm3, %v1187_v15, %v4022_v4 }
  0x9b   : > { %v1252_v10 = vsel %vm1251_vm4, %v1219_v24, %v4006_v12  ;;  %v4030_v31 = vpop.permute.xlu0 %4029  ;;  %v4040_v8 = vpop.permute.xlu1 %4039  ;;  %v1253_v32 = vsel %vm1251_vm4, %v1220_v25, %v4007_v19  ;;  %v4012_v12 = vunpack.i.h.bf16 %v5243_v39  ;;  %v4343_v25 = vpack.i.bf16 %v5253_v48, %v5250_v47 }
  0x9c   : > { %v1285_v14 = vsel %vm1284_vm5, %v1252_v10, %v4026_v9  ;;  %v4031_v36 = vunpack.i.l.bf16 %v4030_v31  ;;  %v4032_v43 = vunpack.i.h.bf16 %v4030_v31  ;;  %v1286_v52 = vsel %vm1284_vm5, %v1253_v32, %v4027_v30 }
  0x9d   : > { %4314 = vrot.lane.b32.xlu0 %v5260_v61, %s4838_s12  ;;  %4329 = vrot.lane.b32.xlu1 %v4308_v35, %s4832_s6  ;;  %v4041_v57 = vunpack.i.l.bf16 %v4040_v8  ;;  %v4042_v4 = vunpack.i.h.bf16 %v4040_v8  ;;  %v5295_v9 = vpack.i.bf16 %v385_v50, %v383_v49  ;;  %v5322_v49 = vld [vmem:[%s4941_s17 + $0x120] sm:$0xff] }
  0x9e   : > { %v1318_v44 = vsel %vm1317_vm6, %v1285_v14, %v4031_v36  ;;  %v1319_v11 = vsel %vm1317_vm6, %v1286_v52, %v4032_v43  ;;  %v463_v52 = vrot.slane %v5253_v48, 2  ;;  %v386_v48 = vrot.slane %v5322_v49, 1 }
  0x9f   : > { %v4035_v54 = vpop.permute.xlu0 %4034  ;;  %v4050_v58 = vpop.permute.xlu1 %4049  ;;  %v1351_v5 = vsel %vm1350_vm7, %v1318_v44, %v4011_v51  ;;  %v1188_v15 = vsel %vm1185_vm2, %v4947_v6, %v4041_v57  ;;  %v1189_v30 = vsel %vm1185_vm2, %v4950_v7, %v4042_v4  ;;  %v1352_v6 = vsel %vm1350_vm7, %v1319_v11, %v4012_v12  ;;  %v5329_v57 = vld [vmem:[%s4941_s17 + $0x128] sm:$0xff] }
  0xa0   : > { %v4036_v35 = vunpack.i.l.bf16 %v4035_v54  ;;  %v4037_v63 = vunpack.i.h.bf16 %v4035_v54  ;;  %v4051_v10 = vunpack.i.l.bf16 %v4050_v58  ;;  %v4052_v31 = vunpack.i.h.bf16 %v4050_v58 }
  0xa1   : > { %4324 = vrot.lane.b32.xlu0 %v4303_v40, %s4835_s15  ;;  %4339 = vrot.lane.b32.xlu1 %v4338_v29, %s4837_s26  ;;  %v462_v51 = vrot.slane %v5250_v47, 2  ;;  %v465_v54 = vrot.slane %v5258_v53, 2  ;;  %v387_v53 = vrot.slane %v5329_v57, 1 }
  0xa2   : > { %v1384_v3 = vsel %vm1383_vm8, %v1351_v5, %v4036_v35 }
  0xa3   : > { %v4045_v16 = vpop.permute.xlu0 %4044  ;;  %1570 = vmatmul.mubr.f32.vlgmr.msra.gmra.mxu0 %v1384_v3  ;;  %v4060_v19 = vpop.permute.xlu1 %4059 }
  0xa4   : > { %v4047_v40 = vunpack.i.h.bf16 %v4045_v16  ;;  %v4046_v24 = vunpack.i.l.bf16 %v4045_v16  ;;  %3715 = vmatprep.mubr.msk.f32.mxu0 %vm1185_vm2, %v5040_v60  ;;  %v1385_v60 = vsel %vm1383_vm8, %v1352_v6, %v4037_v63  ;;  %v4061_v44 = vunpack.i.l.bf16 %v4060_v19 }
  0xa5   : > { %4334 = vrot.lane.b32.xlu0 %v5260_v61, %s4836_s16  ;;  %4349 = vrot.lane.b32.xlu1 %v5295_v9, %s4838_s12  ;;  %v4062_v35 = vunpack.i.h.bf16 %v4060_v19  ;;  %v5346_v16 = vsel %vm406_vm1, %v462_v51, %v463_v52  ;;  %v5349_v19 = vsel %vm406_vm1, %v463_v52, %v465_v54  ;;  %v5373_v52 = vld [vmem:[%s4941_s17 + $0x138] sm:$0xff] }
  0xa6   : > { %v1221_v39 = vsel %vm1218_vm3, %v1188_v15, %v4046_v24  ;;  %v1222_v32 = vsel %vm1218_vm3, %v1189_v30, %v4047_v40 }
  0xa7   : > { %v4055_v8 = vpop.permute.xlu0 %4054  ;;  %1575 = vmatmul.mubr.f32.gmra.mxu0 %v1385_v60  ;;  %v4070_v7 = vpop.permute.xlu1 %4069  ;;  %v1254_v43 = vsel %vm1251_vm4, %v1221_v39, %v4051_v10  ;;  %v1255_v58 = vsel %vm1251_vm4, %v1222_v32, %v4052_v31 }
  0xa8   : > { %v4057_v14 = vunpack.i.h.bf16 %v4055_v8  ;;  %v4056_v36 = vunpack.i.l.bf16 %v4055_v8  ;;  %3716 = vmatprep.mubr.msk.f32.mxu0 %vm1185_vm2, %v5103_v27  ;;  %v5332_v27 = vld [vmem:[%s4941_s17 + $0x130] sm:$0x3]  ;;  %v4071_v5 = vunpack.i.l.bf16 %v4070_v7  ;;  %v4072_v40 = vunpack.i.h.bf16 %v4070_v7 }
  0xa9   : > { %4344 = vrot.lane.b32.xlu0 %v4343_v25, %s4834_s10  ;;  %4359 = vrot.lane.b32.xlu1 %v4338_v29, %s4835_s15  ;;  %v389_v12 = vrot.slane %v5332_v27, 1  ;;  %v4373_v8 = vpack.i.bf16 %v5349_v19, %v5346_v16  ;;  %v388_v7 = vsel %vm325_vm0, %v386_v48, %v387_v53  ;;  %v470_v51 = vrot.slane %v5332_v27, 2 }
  0xaa   : > { %v1287_v50 = vsel %vm1284_vm5, %v1254_v43, %v4056_v36  ;;  %v1288_v63 = vsel %vm1284_vm5, %v1255_v58, %v4057_v14 }
  0xab   : > { %v4065_v4 = vpop.permute.xlu0 %4064  ;;  %v4080_v29 = vpop.permute.xlu1 %4079  ;;  %v1320_v47 = vsel %vm1317_vm6, %v1287_v50, %v4061_v44  ;;  %v1321_v6 = vsel %vm1317_vm6, %v1288_v63, %v4062_v35  ;;  %v390_v32 = vsel %vm325_vm0, %v387_v53, %v389_v12  ;;  %v468_v50 = vrot.slane %v5329_v57, 2  ;;  %v5381_v35 = vld [vmem:[%s4941_s17 + $0x148] sm:$0x3] }
  0xac   : > { %v4067_v3 = vunpack.i.h.bf16 %v4065_v4  ;;  %v4066_v11 = vunpack.i.l.bf16 %v4065_v4  ;;  %v4081_v31 = vunpack.i.l.bf16 %v4080_v29  ;;  %v5375_v58 = vpack.i.bf16 %v390_v32, %v388_v7 }
  0xad   : > { %4354 = vrot.lane.b32.xlu0 %v5260_v61, %s4833_s9  ;;  %4369 = vrot.lane.b32.xlu1 %v5295_v9, %s4836_s16  ;;  %v4378_v61 = vpack.i.bf16 %v5329_v57, %v5322_v49  ;;  %v4082_v4 = vunpack.i.h.bf16 %v4080_v29  ;;  %v5397_v48 = vsel %vm406_vm1, %v468_v50, %v470_v51 }
  0xae   : > { %v1353_v15 = vsel %vm1350_vm7, %v1320_v47, %v4066_v11  ;;  %v1354_v60 = vsel %vm1350_vm7, %v1321_v6, %v4067_v3  ;;  %v391_v3 = vrot.slane %v5373_v52, 1 }
  0xaf   : > { %v4075_v24 = vpop.permute.xlu0 %4074  ;;  %v1386_v30 = vsel %vm1383_vm8, %v1353_v15, %v4071_v5  ;;  %v4090_v10 = vpop.permute.xlu1 %4089 }
  0xb0   : > { %v4076_v39 = vunpack.i.l.bf16 %v4075_v24  ;;  %1580 = vmatmul.mubr.f32.gmra.mxu0 %v1386_v30  ;;  %v4077_v14 = vunpack.i.h.bf16 %v4075_v24  ;;  %v4091_v63 = vunpack.i.l.bf16 %v4090_v10  ;;  %v4092_v15 = vunpack.i.h.bf16 %v4090_v10 }
  0xb1   : > { %4364 = vrot.lane.b32.xlu0 %v4343_v25, %s4832_s6  ;;  %3717 = vmatprep.mubr.msk.f32.mxu0 %vm1185_vm2, %v5106_v28  ;;  %v1387_v25 = vsel %vm1383_vm8, %v1354_v60, %v4072_v40  ;;  %v467_v28 = vrot.slane %v5322_v49, 2 }
  0xb2   : > { %v1190_v36 = vsel %vm1185_vm2, %v4964_v13, %v4076_v39  ;;  %4379 = vrot.lane.b32.xlu1 %v4378_v61, %s4834_s10  ;;  %v5378_v13 = vld [vmem:[%s4941_s17 + $0x140] sm:$0xff]  ;;  %v1191_v49 = vsel %vm1185_vm2, %v4969_v18, %v4077_v14  ;;  %v394_v18 = vrot.slane %v5381_v35, 1 }
  0xb3   : > { %v4085_v43 = vpop.permute.xlu0 %4084  ;;  %v5367_v44 = vpop.permute.xlu1 %4099  ;;  %v1223_v5 = vsel %vm1218_vm3, %v1190_v36, %v4081_v31  ;;  %v5394_v47 = vsel %vm406_vm1, %v467_v28, %v468_v50  ;;  %v1224_v12 = vsel %vm1218_vm3, %v1191_v49, %v4082_v4 }
  0xb4   : > { %v4086_v54 = vunpack.i.l.bf16 %v4085_v43  ;;  %1585 = vmatmul.mubr.f32.gmra.mxu0 %v1387_v25  ;;  %v4087_v57 = vunpack.i.h.bf16 %v4085_v43  ;;  %v4101_v40 = vunpack.i.l.bf16 %v5367_v44  ;;  %v4408_v39 = vpack.i.bf16 %v5397_v48, %v5394_v47 }
  0xb5   : > { %4374 = vrot.lane.b32.xlu0 %v4373_v8, %s4837_s26  ;;  %3718 = vmatprep.mubr.msk.f32.mxu0 %vm1185_vm2, %v5129_v41  ;;  %v392_v41 = vrot.slane %v5378_v13, 1  ;;  %v4102_v43 = vunpack.i.h.bf16 %v5367_v44 }
  0xb6   : > { %v1256_v27 = vsel %vm1251_vm4, %v1223_v5, %v4086_v54  ;;  %4389 = vrot.lane.b32.xlu1 %v5295_v9, %s4833_s9  ;;  %v1257_v24 = vsel %vm1251_vm4, %v1224_v12, %v4087_v57 }
  0xb7   : > { %v4095_v29 = vpop.permute.xlu0 %4094  ;;  %v4110_v11 = vpop.permute.xlu1 %4109  ;;  %v1289_v9 = vsel %vm1284_vm5, %v1256_v27, %v4091_v63  ;;  %v393_v7 = vsel %vm325_vm0, %v391_v3, %v392_v41  ;;  %v395_v32 = vsel %vm325_vm0, %v392_v41, %v394_v18  ;;  %v1290_v36 = vsel %vm1284_vm5, %v1257_v24, %v4092_v15 }
  0xb8   : > { %v4096_v53 = vunpack.i.l.bf16 %v4095_v29  ;;  %v4097_v30 = vunpack.i.h.bf16 %v4095_v29  ;;  %v4111_v31 = vunpack.i.l.bf16 %v4110_v11  ;;  %v4112_v25 = vunpack.i.h.bf16 %v4110_v11 }
  0xb9   : > { %4384 = vrot.lane.b32.xlu0 %v5375_v58, %s4838_s12  ;;  %v5420_v54 = vpack.i.bf16 %v395_v32, %v393_v7  ;;  %v472_v41 = vrot.slane %v5373_v52, 2  ;;  %v473_v18 = vrot.slane %v5378_v13, 2 }
  0xba   : > { %4399 = vrot.lane.b32.xlu1 %v4378_v61, %s4832_s6  ;;  %v1322_v6 = vsel %vm1317_vm6, %v1289_v9, %v4096_v53  ;;  %v1323_v51 = vsel %vm1317_vm6, %v1290_v36, %v4097_v30  ;;  %v1192_v4 = vsel %vm1185_vm2, %v5024_v55, %v4111_v31  ;;  %v4413_v55 = vpack.i.bf16 %v5378_v13, %v5373_v52  ;;  %v265_v52 = vld [vmem:[%s4941_s17 + $0x150] sm:$0xff]  ;;  %v5449_v13 = vld [vmem:[%s4941_s17 + $0x158] sm:$0xff] }
  0xbb   : > { %v4105_v60 = vpop.permute.xlu0 %4104  ;;  %v4120_v10 = vpop.permute.xlu1 %4119  ;;  %v1355_v61 = vsel %vm1350_vm7, %v1322_v6, %v4101_v40  ;;  %v1356_v27 = vsel %vm1350_vm7, %v1323_v51, %v4102_v43  ;;  %v475_v9 = vrot.slane %v5381_v35, 2  ;;  %v267_v6 = vld [vmem:[%s4941_s17 + $0x160] sm:$0x3]  ;;  %v5454_v35 = vsel %vm406_vm1, %v472_v41, %v473_v18 }
  0xbc   : > { %v4106_v14 = vunpack.i.l.bf16 %v4105_v60  ;;  %v4107_v28 = vunpack.i.h.bf16 %v4105_v60  ;;  %v4121_v57 = vunpack.i.l.bf16 %v4120_v10  ;;  %v4448_v51 = vpack.i.bf16 %v5449_v13, %v265_v52 }
  0xbd   : > { %4394 = vrot.lane.b32.xlu0 %v4373_v8, %s4835_s15  ;;  %v1193_v8 = vsel %vm1185_vm2, %v5027_v56, %v4112_v25  ;;  %v5458_v43 = vsel %vm406_vm1, %v473_v18, %v475_v9  ;;  %v396_v25 = vrot.slane %v265_v52, 1  ;;  %v478_v41 = vrot.slane %v5449_v13, 2  ;;  %v5488_v9 = vld [vmem:[%s4941_s17 + $0x168] sm:$0xff] }
  0xbe   : > { %v1388_v50 = vsel %vm1383_vm8, %v1355_v61, %v4106_v14  ;;  %4409 = vrot.lane.b32.xlu1 %v4408_v39, %s4837_s26  ;;  %v1389_v29 = vsel %vm1383_vm8, %v1356_v27, %v4107_v28  ;;  %v397_v61 = vrot.slane %v5449_v13, 1  ;;  %v399_v28 = vrot.slane %v267_v6, 1 }
  0xbf   : > { %v4115_v5 = vpop.permute.xlu0 %4114  ;;  %1590 = vmatmul.mubr.f32.gmra.mxu0 %v1388_v50  ;;  %v4130_v44 = vpop.permute.xlu1 %4129 }
  0xc0   : > { %v4117_v63 = vunpack.i.h.bf16 %v4115_v5  ;;  %v4116_v49 = vunpack.i.l.bf16 %v4115_v5  ;;  %3719 = vmatprep.mubr.msk.f32.mxu0 %vm1185_vm2, %v5132_v42  ;;  %v4122_v42 = vunpack.i.h.bf16 %v4120_v10  ;;  %v4131_v24 = vunpack.i.l.bf16 %v4130_v44 }
  0xc1   : > { %4404 = vrot.lane.b32.xlu0 %v5375_v58, %s4836_s16  ;;  %v4132_v31 = vunpack.i.h.bf16 %v4130_v44 }
  0xc2   : > { %v1225_v3 = vsel %vm1218_vm3, %v1192_v4, %v4116_v49  ;;  %4419 = vrot.lane.b32.xlu1 %v5420_v54, %s4838_s12  ;;  %v1226_v53 = vsel %vm1218_vm3, %v1193_v8, %v4117_v63 }
  0xc3   : > { %v4125_v11 = vpop.permute.xlu0 %4124  ;;  %1595 = vmatmul.mubr.f32.gmra.mxu0 %v1389_v29  ;;  %v4140_v56 = vpop.permute.xlu1 %4139  ;;  %v1258_v40 = vsel %vm1251_vm4, %v1225_v3, %v4121_v57  ;;  %v1259_v60 = vsel %vm1251_vm4, %v1226_v53, %v4122_v42  ;;  %v4443_v57 = vpack.i.bf16 %v5458_v43, %v5454_v35  ;;  %v398_v3 = vsel %vm325_vm0, %v396_v25, %v397_v61 }
  0xc4   : > { %v4127_v12 = vunpack.i.h.bf16 %v4125_v11  ;;  %v4126_v15 = vunpack.i.l.bf16 %v4125_v11  ;;  %3720 = vmatprep.mubr.msk.f32.mxu0 %vm1185_vm2, %v5158_v59  ;;  %v4141_v59 = vunpack.i.l.bf16 %v4140_v56  ;;  %v4142_v4 = vunpack.i.h.bf16 %v4140_v56 }
  0xc5   : > { %4414 = vrot.lane.b32.xlu0 %v4413_v55, %s4834_s10  ;;  %v400_v29 = vsel %vm325_vm0, %v397_v61, %v399_v28  ;;  %v477_v56 = vrot.slane %v265_v52, 2 }
  0xc6   : > { %v1291_v30 = vsel %vm1284_vm5, %v1258_v40, %v4126_v15  ;;  %4429 = vrot.lane.b32.xlu1 %v4408_v39, %s4835_s15  ;;  %v1292_v32 = vsel %vm1284_vm5, %v1259_v60, %v4127_v12  ;;  %v5485_v15 = vpack.i.bf16 %v400_v29, %v398_v3  ;;  %v5491_v40 = vld [vmem:[%s4941_s17 + $0x170] sm:$0xff] }
  0xc7   : > { %v4135_v10 = vpop.permute.xlu0 %4134  ;;  %v4150_v7 = vpop.permute.xlu1 %4149  ;;  %v1324_v39 = vsel %vm1317_vm6, %v1291_v30, %v4131_v24 }
  0xc8   : > { %v4137_v14 = vunpack.i.h.bf16 %v4135_v10  ;;  %v4136_v36 = vunpack.i.l.bf16 %v4135_v10  ;;  %v4151_v27 = vunpack.i.l.bf16 %v4150_v7  ;;  %v4152_v24 = vunpack.i.h.bf16 %v4150_v7 }
  0xc9   : > { %4424 = vrot.lane.b32.xlu0 %v5375_v58, %s4833_s9  ;;  %v1325_v58 = vsel %vm1317_vm6, %v1292_v32, %v4132_v31  ;;  %v5506_v31 = vsel %vm406_vm1, %v477_v56, %v478_v41  ;;  %v401_v32 = vrot.slane %v5488_v9, 1 }
  0xca   : > { %v1357_v50 = vsel %vm1350_vm7, %v1324_v39, %v4136_v36  ;;  %4439 = vrot.lane.b32.xlu1 %v5420_v54, %s4836_s16  ;;  %v1358_v8 = vsel %vm1350_vm7, %v1325_v58, %v4137_v14 }
  0xcb   : > { %v4145_v5 = vpop.permute.xlu0 %4144  ;;  %v1390_v44 = vsel %vm1383_vm8, %v1357_v50, %v4141_v59  ;;  %v4160_v63 = vpop.permute.xlu1 %4159  ;;  %v1391_v18 = vsel %vm1383_vm8, %v1358_v8, %v4142_v4 }
  0xcc   : > { %v4146_v49 = vunpack.i.l.bf16 %v4145_v5  ;;  %1600 = vmatmul.mubr.f32.gmra.mxu0 %v1390_v44  ;;  %v4147_v42 = vunpack.i.h.bf16 %v4145_v5  ;;  %v4161_v52 = vunpack.i.l.bf16 %v4160_v63  ;;  %v4162_v39 = vunpack.i.h.bf16 %v4160_v63 }
  0xcd   : > { %4434 = vrot.lane.b32.xlu0 %v4413_v55, %s4832_s6  ;;  %3721 = vmatprep.mubr.msk.f32.mxu0 %vm1185_vm2, %v5161_v62  ;;  %v480_v62 = vrot.slane %v267_v6, 2 }
  0xce   : > { %v1194_v11 = vsel %vm1185_vm2, %v5087_v21, %v4146_v49  ;;  %4449 = vrot.lane.b32.xlu1 %v4448_v51, %s4834_s10  ;;  %v5494_v21 = vld [vmem:[%s4941_s17 + $0x178] sm:$0x3]  ;;  %v1195_v13 = vsel %vm1185_vm2, %v5090_v22, %v4147_v42 }
  0xcf   : > { %v4155_v55 = vpop.permute.xlu0 %4154  ;;  %v5483_v53 = vpop.permute.xlu1 %4169  ;;  %v1227_v30 = vsel %vm1218_vm3, %v1194_v11, %v4151_v27  ;;  %v5509_v7 = vsel %vm406_vm1, %v478_v41, %v480_v62  ;;  %v404_v22 = vrot.slane %v5494_v21, 1  ;;  %v1228_v36 = vsel %vm1218_vm3, %v1195_v13, %v4152_v24 }
  0xd0   : > { %v4156_v12 = vunpack.i.l.bf16 %v4155_v55  ;;  %1605 = vmatmul.mubr.f32.gmra.mxu0 %v1391_v18  ;;  %v4157_v6 = vunpack.i.h.bf16 %v4155_v55  ;;  %v4171_v25 = vunpack.i.l.bf16 %v5483_v53  ;;  %v4478_v4 = vpack.i.bf16 %v5509_v7, %v5506_v31 }
  0xd1   : > { %4444 = vrot.lane.b32.xlu0 %v4443_v57, %s4837_s26  ;;  %3722 = vmatprep.mubr.msk.f32.mxu0 %vm1185_vm2, %v5175_v20  ;;  %v402_v20 = vrot.slane %v5491_v40, 1  ;;  %v4172_v3 = vunpack.i.h.bf16 %v5483_v53 }
  0xd2   : > { %v1260_v60 = vsel %vm1251_vm4, %v1227_v30, %v4156_v12  ;;  %4459 = vrot.lane.b32.xlu1 %v5420_v54, %s4833_s9  ;;  %v1261_v61 = vsel %vm1251_vm4, %v1228_v36, %v4157_v6 }
  0xd3   : > { %v4165_v10 = vpop.permute.xlu0 %4164  ;;  %v4180_v59 = vpop.permute.xlu1 %4179  ;;  %v1293_v54 = vsel %vm1284_vm5, %v1260_v60, %v4161_v52  ;;  %v403_v58 = vsel %vm325_vm0, %v401_v32, %v402_v20  ;;  %v405_v49 = vsel %vm325_vm0, %v402_v20, %v404_v22  ;;  %v1294_v27 = vsel %vm1284_vm5, %v1261_v61, %v4162_v39 }
  0xd4   : > { %v4166_v14 = vunpack.i.l.bf16 %v4165_v10  ;;  %v4167_v28 = vunpack.i.h.bf16 %v4165_v10  ;;  %v4181_v44 = vunpack.i.l.bf16 %v4180_v59  ;;  %v4182_v29 = vunpack.i.h.bf16 %v4180_v59 }
  0xd5   : > { %4454 = vrot.lane.b32.xlu0 %v5485_v15, %s4838_s12  ;;  %v5533_v41 = vpack.i.bf16 %v405_v49, %v403_v58  ;;  %v482_v22 = vrot.slane %v5488_v9, 2  ;;  %v485_v39 = vrot.slane %v5494_v21, 2 }
  0xd6   : > { %4469 = vrot.lane.b32.xlu1 %v4448_v51, %s4832_s6  ;;  %v1326_v50 = vsel %vm1317_vm6, %v1293_v54, %v4166_v14  ;;  %v1327_v56 = vsel %vm1317_vm6, %v1294_v27, %v4167_v28  ;;  %v1196_v55 = vsel %vm1185_vm2, %v5120_v37, %v4181_v44  ;;  %v4483_v37 = vpack.i.bf16 %v5491_v40, %v5488_v9  ;;  %v5561_v54 = vld [vmem:[%s4941_s17 + $0x180] sm:$0xff]  ;;  %v5568_v44 = vld [vmem:[%s4941_s17 + $0x190] sm:$0x3] }
  0xd7   : > { %v4175_v5 = vpop.permute.xlu0 %4174  ;;  %v4190_v63 = vpop.permute.xlu1 %4189  ;;  %v1359_v51 = vsel %vm1350_vm7, %v1326_v50, %v4171_v25  ;;  %v1360_v30 = vsel %vm1350_vm7, %v1327_v56, %v4172_v3  ;;  %v483_v14 = vrot.slane %v5491_v40, 2  ;;  %v5564_v25 = vld [vmem:[%s4941_s17 + $0x188] sm:$0xff]  ;;  %v490_v58 = vrot.slane %v5561_v54, 1 }
  0xd8   : > { %v4176_v8 = vunpack.i.l.bf16 %v4175_v5  ;;  %v4177_v42 = vunpack.i.h.bf16 %v4175_v5  ;;  %v4191_v24 = vunpack.i.l.bf16 %v4190_v63  ;;  %v491_v49 = vrot.slane %v5564_v25, 1 }
  0xd9   : > { %4464 = vrot.lane.b32.xlu0 %v4443_v57, %s4835_s15  ;;  %v1197_v57 = vsel %vm1185_vm2, %v5123_v38, %v4182_v29  ;;  %v5583_v27 = vsel %vm406_vm1, %v483_v14, %v485_v39  ;;  %v493_v3 = vrot.slane %v5568_v44, 1  ;;  %v495_v39 = vrot.slane %v5561_v54, 2 }
  0xda   : > { %v1392_v11 = vsel %vm1383_vm8, %v1359_v51, %v4176_v8  ;;  %4479 = vrot.lane.b32.xlu1 %v4478_v4, %s4837_s26  ;;  %v1393_v13 = vsel %vm1383_vm8, %v1360_v30, %v4177_v42 }
  0xdb   : > { %v4185_v18 = vpop.permute.xlu0 %4184  ;;  %1610 = vmatmul.mubr.f32.gmra.mxu0 %v1392_v11  ;;  %v4200_v53 = vpop.permute.xlu1 %4199 }
  0xdc   : > { %v4187_v62 = vunpack.i.h.bf16 %v4185_v18  ;;  %v4186_v12 = vunpack.i.l.bf16 %v4185_v18  ;;  %3723 = vmatprep.mubr.msk.f32.mxu0 %vm1185_vm2, %v5178_v23  ;;  %v4192_v23 = vunpack.i.h.bf16 %v4190_v63  ;;  %v4201_v20 = vunpack.i.l.bf16 %v4200_v53 }
  0xdd   : > { %4474 = vrot.lane.b32.xlu0 %v5485_v15, %s4836_s16  ;;  %v4202_v61 = vunpack.i.h.bf16 %v4200_v53 }
  0xde   : > { %v1229_v52 = vsel %vm1218_vm3, %v1196_v55, %v4186_v12  ;;  %4489 = vrot.lane.b32.xlu1 %v5533_v41, %s4838_s12  ;;  %v1230_v60 = vsel %vm1218_vm3, %v1197_v57, %v4187_v62  ;;  %v492_v12 = vsel %vm325_vm0, %v490_v58, %v491_v49 }
  0xdf   : > { %v4195_v6 = vpop.permute.xlu0 %4194  ;;  %1615 = vmatmul.mubr.f32.gmra.mxu0 %v1393_v13  ;;  %v4210_v38 = vpop.permute.xlu1 %4209  ;;  %v1262_v32 = vsel %vm1251_vm4, %v1229_v52, %v4191_v24  ;;  %v4748_v24 = vld [vmem:[%s4941_s17 + $0x90] sm:$0xff]  ;;  %v494_v52 = vsel %vm325_vm0, %v491_v49, %v493_v3 }
  0xe0   : > { %v4197_v10 = vunpack.i.h.bf16 %v4195_v6  ;;  %v4196_v59 = vunpack.i.l.bf16 %v4195_v6  ;;  %3724 = vmatprep.mubr.msk.f32.mxu0 %vm1185_vm2, %v5198_v45  ;;  %v1263_v45 = vsel %vm1251_vm4, %v1230_v60, %v4192_v23  ;;  %v4211_v50 = vunpack.i.l.bf16 %v4210_v38 }
  0xe1   : > { %4484 = vrot.lane.b32.xlu0 %v4483_v37, %s4834_s10  ;;  %v4212_v29 = vunpack.i.h.bf16 %v4210_v38 }
  0xe2   : > { %v1295_v36 = vsel %vm1284_vm5, %v1262_v32, %v4196_v59  ;;  %4499 = vrot.lane.b32.xlu1 %v4478_v4, %s4835_s15  ;;  %v1296_v9 = vsel %vm1284_vm5, %v1263_v45, %v4197_v10  ;;  %v5575_v4 = vsel %vm406_vm1, %v482_v22, %v483_v14  ;;  %v4523_v10 = vpack.i.bf16 %v494_v52, %v492_v12  ;;  %v4749_v59 = vld [vmem:[%s4941_s17 + $0x98] sm:$0xff] }
  0xe3   : > { %v4205_v28 = vpop.permute.xlu0 %4204  ;;  %v4220_v5 = vpop.permute.xlu1 %4219  ;;  %v1328_v21 = vsel %vm1317_vm6, %v1295_v36, %v4201_v20  ;;  %v1329_v56 = vsel %vm1317_vm6, %v1296_v9, %v4202_v61  ;;  %v4513_v62 = vpack.i.bf16 %v5583_v27, %v5575_v4  ;;  %v496_v45 = vrot.slane %v5564_v25, 2 }
  0xe4   : > { %v4207_v40 = vunpack.i.h.bf16 %v4205_v28  ;;  %v4206_v63 = vunpack.i.l.bf16 %v4205_v28  ;;  %v4221_v53 = vunpack.i.l.bf16 %v4220_v5  ;;  %v5614_v28 = vld [vmem:[%s4941_s17 + $0x198] sm:$0xff] }
  0xe5   : > { %4494 = vrot.lane.b32.xlu0 %v5485_v15, %s4833_s9  ;;  %v4518_v15 = vpack.i.bf16 %v5564_v25, %v5561_v54  ;;  %v5626_v49 = vsel %vm406_vm1, %v495_v39, %v496_v45 }
  0xe6   : > { %v1361_v8 = vsel %vm1350_vm7, %v1328_v21, %v4206_v63  ;;  %4509 = vrot.lane.b32.xlu1 %v5533_v41, %s4836_s16  ;;  %v1362_v18 = vsel %vm1350_vm7, %v1329_v56, %v4207_v40 }
  0xe7   : > { %v4215_v51 = vpop.permute.xlu0 %4214  ;;  %v1394_v42 = vsel %vm1383_vm8, %v1361_v8, %v4211_v50  ;;  %v4230_v11 = vpop.permute.xlu1 %4229  ;;  %v5617_v50 = vld [vmem:[%s4941_s17 + $0x1a0] sm:$0xff]  ;;  %v503_v8 = vrot.slane %v5614_v28, 1 }
  0xe8   : > { %v4216_v55 = vunpack.i.l.bf16 %v4215_v51  ;;  %1620 = vmatmul.mubr.f32.gmra.mxu0 %v1394_v42  ;;  %v4217_v57 = vunpack.i.h.bf16 %v4215_v51  ;;  %v4231_v60 = vunpack.i.l.bf16 %v4230_v11  ;;  %v504_v3 = vrot.slane %v5617_v50, 1 }
  0xe9   : > { %4504 = vrot.lane.b32.xlu0 %v4483_v37, %s4832_s6  ;;  %3725 = vmatprep.mubr.msk.f32.mxu0 %vm1185_vm2, %v5201_v46  ;;  %v1395_v37 = vsel %vm1383_vm8, %v1362_v18, %v4212_v29  ;;  %v4222_v46 = vunpack.i.h.bf16 %v4220_v5  ;;  %v4232_v5 = vunpack.i.h.bf16 %v4230_v11 }
  0xea   : > { %v1198_v30 = vsel %vm1185_vm2, %v4748_v24, %v4216_v55  ;;  %4519 = vrot.lane.b32.xlu1 %v4518_v15, %s4834_s10  ;;  %v1199_v32 = vsel %vm1185_vm2, %v4749_v59, %v4217_v57 }
  0xeb   : > { %v4225_v13 = vpop.permute.xlu0 %4224  ;;  %v4240_v23 = vpop.permute.xlu1 %4239  ;;  %v1231_v38 = vsel %vm1218_vm3, %v1198_v30, %v4221_v53  ;;  %v4750_v53 = vld [vmem:[%s4941_s17 + $0xa8] sm:$0xff]  ;;  %v505_v30 = vsel %vm325_vm0, %v503_v8, %v504_v3 }
  0xec   : > { %v4226_v6 = vunpack.i.l.bf16 %v4225_v13  ;;  %1625 = vmatmul.mubr.f32.gmra.mxu0 %v1395_v37  ;;  %v4227_v20 = vunpack.i.h.bf16 %v4225_v13  ;;  %v4241_v40 = vunpack.i.l.bf16 %v4240_v23  ;;  %v4242_v42 = vunpack.i.h.bf16 %v4240_v23  ;;  %v4751_v13 = vld [vmem:[%s4941_s17 + $0xb0] sm:$0xff] }
  0xed   : > { %4514 = vrot.lane.b32.xlu0 %v4513_v62, %s4837_s26  ;;  %3726 = vmatprep.mubr.msk.f32.mxu0 %vm1185_vm2, %v5215_v0  ;;  %v1232_v0 = vsel %vm1218_vm3, %v1199_v32, %v4222_v46 }
  0xee   : > { %v1264_v22 = vsel %vm1251_vm4, %v1231_v38, %v4226_v6  ;;  %4529 = vrot.lane.b32.xlu1 %v5533_v41, %s4833_s9  ;;  %v1265_v41 = vsel %vm1251_vm4, %v1232_v0, %v4227_v20  ;;  %v5651_v20 = vld [vmem:[%s4941_s17 + $0x1a8] sm:$0x3] }
  0xef   : > { %v4235_v14 = vpop.permute.xlu0 %4234  ;;  %v4250_v36 = vpop.permute.xlu1 %4249  ;;  %v1297_v9 = vsel %vm1284_vm5, %v1264_v22, %v4231_v60  ;;  %v1298_v51 = vsel %vm1284_vm5, %v1265_v41, %v4232_v5  ;;  %v498_v60 = vrot.slane %v5568_v44, 2  ;;  %v506_v0 = vrot.slane %v5651_v20, 1 }
  0xf0   : > { %v4236_v61 = vunpack.i.l.bf16 %v4235_v14  ;;  %v4237_v63 = vunpack.i.h.bf16 %v4235_v14  ;;  %v4251_v21 = vunpack.i.l.bf16 %v4250_v36  ;;  %v4252_v11 = vunpack.i.h.bf16 %v4250_v36 }
  0xf1   : > { %4524 = vrot.lane.b32.xlu0 %v4523_v10, %s4838_s12 }
  0xf2   : > { %4539 = vrot.lane.b32.xlu1 %v4518_v15, %s4832_s6  ;;  %v1330_v54 = vsel %vm1317_vm6, %v1297_v9, %v4236_v61  ;;  %v1331_v18 = vsel %vm1317_vm6, %v1298_v51, %v4237_v63  ;;  %v1200_v12 = vsel %vm1185_vm2, %v4750_v53, %v4251_v21  ;;  %v1201_v37 = vsel %vm1185_vm2, %v4751_v13, %v4252_v11 }
  0xf3   : > { %v4245_v25 = vpop.permute.xlu0 %4244  ;;  %v4260_v58 = vpop.permute.xlu1 %4259  ;;  %v1363_v15 = vsel %vm1350_vm7, %v1330_v54, %v4241_v40  ;;  %v1364_v6 = vsel %vm1350_vm7, %v1331_v18, %v4242_v42  ;;  %v5661_v61 = vsel %vm406_vm1, %v496_v45, %v498_v60 }
  0xf4   : > { %v4246_v29 = vunpack.i.l.bf16 %v4245_v25  ;;  %v4247_v56 = vunpack.i.h.bf16 %v4245_v25  ;;  %v4261_v23 = vunpack.i.l.bf16 %v4260_v58  ;;  %v4262_v59 = vunpack.i.h.bf16 %v4260_v58 }
  0xf5   : > { %4534 = vrot.lane.b32.xlu0 %v4513_v62, %s4835_s15  ;;  %v507_v58 = vsel %vm325_vm0, %v504_v3, %v506_v0  ;;  %v4752_v3 = vld [vmem:[%s4941_s17 + $0xc0] sm:$0xff] }
  0xf6   : > { %v1396_v55 = vsel %vm1383_vm8, %v1363_v15, %v4246_v29  ;;  %957 = vrot.lane.b32.xlu1 %v5626_v49, %s4837_s26  ;;  %v1397_v38 = vsel %vm1383_vm8, %v1364_v6, %v4247_v56 }
  0xf7   : > { %v4255_v57 = vpop.permute.xlu0 %4254  ;;  %1630 = vmatmul.mubr.f32.gmra.mxu0 %v1396_v55  ;;  %v4270_v24 = vpop.permute.xlu1 %4269 }
  0xf8   : > { %v4257_v52 = vunpack.i.h.bf16 %v4255_v57  ;;  %v4256_v62 = vunpack.i.l.bf16 %v4255_v57  ;;  %3727 = vmatprep.mubr.msk.f32.mxu0 %vm1185_vm2, %v5218_v2  ;;  %v4271_v39 = vunpack.i.l.bf16 %v4270_v24  ;;  %v4272_v9 = vunpack.i.h.bf16 %v4270_v24 }
  0xf9   : > { %4544 = vrot.lane.b32.xlu0 %v4523_v10, %s4836_s16 }
  0xfa   : > { %v1233_v46 = vsel %vm1218_vm3, %v1200_v12, %v4256_v62  ;;  %1149 = vrot.lane.b32.xlu1 %v505_v30, %s4838_s12  ;;  %v1234_v22 = vsel %vm1218_vm3, %v1201_v37, %v4257_v52  ;;  %v4753_v37 = vld [vmem:[%s4941_s17 + $0xc8] sm:$0xff] }
  0xfb   : > { %v4265_v32 = vpop.permute.xlu0 %4264  ;;  %1635 = vmatmul.mubr.f32.gmra.mxu0 %v1397_v38  ;;  %v4280_v2 = vpop.permute.xlu1 %4279  ;;  %v1266_v36 = vsel %vm1251_vm4, %v1233_v46, %v4261_v23  ;;  %v1267_v5 = vsel %vm1251_vm4, %v1234_v22, %v4262_v59 }
  0xfc   : > { %v4267_v14 = vunpack.i.h.bf16 %v4265_v32  ;;  %v4266_v10 = vunpack.i.l.bf16 %v4265_v32  ;;  %3728 = vmatprep.mubr.msk.f32.mxu0 %vm1185_vm2, %v5238_v33  ;;  %v4281_v40 = vunpack.i.l.bf16 %v4280_v2  ;;  %v4282_v8 = vunpack.i.h.bf16 %v4280_v2 }
  0xfd   : > { %1053 = vrot.lane.b32.xlu0 %v5614_v28, %s4834_s10 }
  0xfe   : > { %v1299_v44 = vsel %vm1284_vm5, %v1266_v36, %v4266_v10  ;;  %1055 = vrot.lane.b32.xlu1 %v5617_v50, %s4834_s10  ;;  %v1300_v63 = vsel %vm1284_vm5, %v1267_v5, %v4267_v14 }
  0xff   : > { %v4275_v33 = vpop.permute.xlu0 %4274  ;;  %v4290_v41 = vpop.permute.xlu1 %4289  ;;  %v1332_v45 = vsel %vm1317_vm6, %v1299_v44, %v4271_v39  ;;  %v1333_v11 = vsel %vm1317_vm6, %v1300_v63, %v4272_v9 }
 0x100   : > { %v4277_v54 = vunpack.i.h.bf16 %v4275_v33  ;;  %v4276_v25 = vunpack.i.l.bf16 %v4275_v33  ;;  %v4291_v55 = vunpack.i.l.bf16 %v4290_v41  ;;  %v4292_v52 = vunpack.i.h.bf16 %v4290_v41 }
 0x101   : > { %959 = vrot.lane.b32.xlu0 %v5661_v61, %s4837_s26  ;;  %s3784_s26 = sshll.u32 %s4893_s22, 12 }
 0x102   : > { %v1365_v21 = vsel %vm1350_vm7, %v1332_v45, %v4276_v25  ;;  %v1366_v56 = vsel %vm1350_vm7, %v1333_v11, %v4277_v54  ;;  %v4754_v25 = vld [vmem:[%s4941_s17 + $0xd8] sm:$0xff]  ;;  %s7528_s7 = scalar_lea.hbm %s7583_s5, %s3784_s26 }
 0x103   : > { %v4285_v29 = vpop.permute.xlu0 %4284  ;;  %v1398_v51 = vsel %vm1383_vm8, %v1365_v21, %v4281_v40  ;;  %v4300_v42 = vpop.permute.xlu1 %4299  ;;  %v1399_v57 = vsel %vm1383_vm8, %v1366_v56, %v4282_v8 }
 0x104   : > { %v4286_v15 = vunpack.i.l.bf16 %v4285_v29  ;;  %1640 = vmatmul.mubr.f32.gmra.mxu0 %v1398_v51  ;;  %v4287_v18 = vunpack.i.h.bf16 %v4285_v29  ;;  %v4301_v13 = vunpack.i.l.bf16 %v4300_v42  ;;  %v4302_v32 = vunpack.i.h.bf16 %v4300_v42  ;;  %v4755_v51 = vld [vmem:[%s4941_s17 + $0xe0] sm:$0xff] }
 0x105   : > { %1151 = vrot.lane.b32.xlu0 %v507_v58, %s4838_s12  ;;  %3729 = vmatprep.mubr.msk.f32.mxu0 %vm1185_vm2, %v5241_v34 }
 0x106   : > { %v1202_v53 = vsel %vm1185_vm2, %v4752_v3, %v4286_v15  ;;  %v1203_v34 = vsel %vm1185_vm2, %v4753_v37, %v4287_v18 }
 0x107   : > { %v4295_v12 = vpop.permute.xlu0 %4294  ;;  %v4310_v24 = vpop.permute.xlu1 %4309  ;;  %v1235_v62 = vsel %vm1218_vm3, %v1202_v53, %v4291_v55  ;;  %v1236_v59 = vsel %vm1218_vm3, %v1203_v34, %v4292_v52 }
 0x108   : > { %v4296_v30 = vunpack.i.l.bf16 %v4295_v12  ;;  %1645 = vmatmul.mubr.f32.gmra.mxu0 %v1399_v57  ;;  %v4297_v23 = vunpack.i.h.bf16 %v4295_v12  ;;  %v4311_v22 = vunpack.i.l.bf16 %v4310_v24  ;;  %v4312_v9 = vunpack.i.h.bf16 %v4310_v24 }
 0x109   : > { %3730 = vmatprep.mubr.msk.f32.mxu0 %vm1185_vm2, %v5272_v17 }
 0x10a   : > { %v1268_v6 = vsel %vm1251_vm4, %v1235_v62, %v4296_v30  ;;  %v1269_v14 = vsel %vm1251_vm4, %v1236_v59, %v4297_v23 }
 0x10b   : > { %v4305_v46 = vpop.permute.xlu0 %4304  ;;  %v4320_v38 = vpop.permute.xlu1 %4319  ;;  %v1301_v2 = vsel %vm1284_vm5, %v1268_v6, %v4301_v13  ;;  %v1302_v5 = vsel %vm1284_vm5, %v1269_v14, %v4302_v32 }
 0x10c   : > { %v4306_v60 = vunpack.i.l.bf16 %v4305_v46  ;;  %v4307_v10 = vunpack.i.h.bf16 %v4305_v46  ;;  %v4321_v39 = vunpack.i.l.bf16 %v4320_v38  ;;  %v4322_v33 = vunpack.i.h.bf16 %v4320_v38 }
 0x10e   : > { %v1334_v17 = vsel %vm1317_vm6, %v1301_v2, %v4306_v60  ;;  %v1335_v54 = vsel %vm1317_vm6, %v1302_v5, %v4307_v10  ;;  %v1204_v45 = vsel %vm1185_vm2, %v4754_v25, %v4321_v39  ;;  %v1205_v42 = vsel %vm1185_vm2, %v4755_v51, %v4322_v33  ;;  %v4757_v25 = vld [vmem:[%s4941_s17 + $0xf8] sm:$0xff] }
 0x10f   : > { %v4315_v36 = vpop.permute.xlu0 %4314  ;;  %v4330_v44 = vpop.permute.xlu1 %4329  ;;  %v1367_v40 = vsel %vm1350_vm7, %v1334_v17, %v4311_v22  ;;  %v1368_v15 = vsel %vm1350_vm7, %v1335_v54, %v4312_v9 }
 0x110   : > { %v4316_v0 = vunpack.i.l.bf16 %v4315_v36  ;;  %v4317_v41 = vunpack.i.h.bf16 %v4315_v36  ;;  %v4331_v11 = vunpack.i.l.bf16 %v4330_v44  ;;  %v4332_v18 = vunpack.i.h.bf16 %v4330_v44  ;;  %v4756_v44 = vld [vmem:[%s4941_s17 + $0xf0] sm:$0xff] }
 0x112   : > { %v1400_v63 = vsel %vm1383_vm8, %v1367_v40, %v4316_v0  ;;  %v1401_v55 = vsel %vm1383_vm8, %v1368_v15, %v4317_v41 }
 0x113   : > { %v4325_v21 = vpop.permute.xlu0 %4324  ;;  %1650 = vmatmul.mubr.f32.gmra.mxu0 %v1400_v63  ;;  %v4340_v58 = vpop.permute.xlu1 %4339 }
 0x114   : > { %v4327_v8 = vunpack.i.h.bf16 %v4325_v21  ;;  %v4326_v29 = vunpack.i.l.bf16 %v4325_v21  ;;  %3731 = vmatprep.mubr.msk.f32.mxu0 %vm1185_vm2, %v5277_v26  ;;  %v4341_v30 = vunpack.i.l.bf16 %v4340_v58  ;;  %v4342_v13 = vunpack.i.h.bf16 %v4340_v58 }
 0x116   : > { %v1237_v56 = vsel %vm1218_vm3, %v1204_v45, %v4326_v29  ;;  %v1238_v12 = vsel %vm1218_vm3, %v1205_v42, %v4327_v8 }
 0x117   : > { %v4335_v3 = vpop.permute.xlu0 %4334  ;;  %1655 = vmatmul.mubr.f32.gmra.mxu0 %v1401_v55  ;;  %v4350_v53 = vpop.permute.xlu1 %4349  ;;  %v1270_v26 = vsel %vm1251_vm4, %v1237_v56, %v4331_v11  ;;  %v1271_v62 = vsel %vm1251_vm4, %v1238_v12, %v4332_v18 }
 0x118   : > { %v4337_v57 = vunpack.i.h.bf16 %v4335_v3  ;;  %v4336_v24 = vunpack.i.l.bf16 %v4335_v3  ;;  %3732 = vmatprep.mubr.msk.f32.mxu0 %vm1185_vm2, %v5346_v16  ;;  %v4351_v34 = vunpack.i.l.bf16 %v4350_v53  ;;  %v4352_v59 = vunpack.i.h.bf16 %v4350_v53 }
 0x11a   : > { %v1303_v52 = vsel %vm1284_vm5, %v1270_v26, %v4336_v24  ;;  %v1304_v6 = vsel %vm1284_vm5, %v1271_v62, %v4337_v57 }
 0x11b   : > { %v4345_v37 = vpop.permute.xlu0 %4344  ;;  %v4360_v23 = vpop.permute.xlu1 %4359  ;;  %v1336_v60 = vsel %vm1317_vm6, %v1303_v52, %v4341_v30  ;;  %v1337_v14 = vsel %vm1317_vm6, %v1304_v6, %v4342_v13 }
 0x11c   : > { %v4347_v46 = vunpack.i.h.bf16 %v4345_v37  ;;  %v4346_v38 = vunpack.i.l.bf16 %v4345_v37  ;;  %v4361_v36 = vunpack.i.l.bf16 %v4360_v23  ;;  %v4362_v41 = vunpack.i.h.bf16 %v4360_v23  ;;  %v4758_v37 = vld [vmem:[%s4941_s17 + $0x108] sm:$0xff] }
 0x11e   : > { %v1369_v16 = vsel %vm1350_vm7, %v1336_v60, %v4346_v38  ;;  %v1370_v17 = vsel %vm1350_vm7, %v1337_v14, %v4347_v46  ;;  %v4759_v60 = vld [vmem:[%s4941_s17 + $0x110] sm:$0xff] }
 0x11f   : > { %v4355_v32 = vpop.permute.xlu0 %4354  ;;  %v1402_v2 = vsel %vm1383_vm8, %v1369_v16, %v4351_v34  ;;  %v4370_v22 = vpop.permute.xlu1 %4369  ;;  %v1403_v9 = vsel %vm1383_vm8, %v1370_v17, %v4352_v59 }
 0x120   : > { %v4356_v10 = vunpack.i.l.bf16 %v4355_v32  ;;  %1660 = vmatmul.mubr.f32.gmra.mxu0 %v1402_v2  ;;  %v4357_v39 = vunpack.i.h.bf16 %v4355_v32  ;;  %v4371_v54 = vunpack.i.l.bf16 %v4370_v22  ;;  %v4372_v42 = vunpack.i.h.bf16 %v4370_v22 }
 0x121   : > { %3733 = vmatprep.mubr.msk.f32.mxu0 %vm1185_vm2, %v5349_v19 }
 0x122   : > { %v1206_v0 = vsel %vm1185_vm2, %v4756_v44, %v4356_v10  ;;  %v1207_v19 = vsel %vm1185_vm2, %v4757_v25, %v4357_v39 }
 0x123   : > { %v4365_v5 = vpop.permute.xlu0 %4364  ;;  %v1239_v63 = vsel %vm1218_vm3, %v1206_v0, %v4361_v36  ;;  %v1240_v51 = vsel %vm1218_vm3, %v1207_v19, %v4362_v41 }
 0x124   : > { %v4366_v33 = vunpack.i.l.bf16 %v4365_v5  ;;  %1665 = vmatmul.mubr.f32.gmra.mxu0 %v1403_v9  ;;  %v4380_v40 = vpop.permute.xlu1 %4379  ;;  %v4367_v45 = vunpack.i.h.bf16 %v4365_v5 }
 0x125   : > { %3734 = vmatprep.mubr.msk.f32.mxu0 %vm1185_vm2, %v5394_v47  ;;  %v4381_v15 = vunpack.i.l.bf16 %v4380_v40  ;;  %v4382_v24 = vunpack.i.h.bf16 %v4380_v40 }
 0x126   : > { %v1272_v21 = vsel %vm1251_vm4, %v1239_v63, %v4366_v33  ;;  %v1273_v56 = vsel %vm1251_vm4, %v1240_v51, %v4367_v45 }
 0x127   : > { %v4375_v58 = vpop.permute.xlu0 %4374  ;;  %v1305_v11 = vsel %vm1284_vm5, %v1272_v21, %v4371_v54  ;;  %v1306_v57 = vsel %vm1284_vm5, %v1273_v56, %v4372_v42  ;;  %v2703_v42 = vld [vmem:[%s7581_s3 + $0x70] sm:$0xff] }
 0x128   : > { %v4376_v8 = vunpack.i.l.bf16 %v4375_v58  ;;  %v4390_v29 = vpop.permute.xlu1 %4389  ;;  %v4377_v55 = vunpack.i.h.bf16 %v4375_v58 }
 0x129   : > { %v4391_v3 = vunpack.i.l.bf16 %v4390_v29  ;;  %v4392_v26 = vunpack.i.h.bf16 %v4390_v29 }
 0x12a   : > { %v1338_v47 = vsel %vm1317_vm6, %v1305_v11, %v4376_v8  ;;  %v1339_v13 = vsel %vm1317_vm6, %v1306_v57, %v4377_v55 }
 0x12b   : > { %v4385_v18 = vpop.permute.xlu0 %4384  ;;  %v1371_v30 = vsel %vm1350_vm7, %v1338_v47, %v4381_v15  ;;  %v1208_v34 = vsel %vm1185_vm2, %v4758_v37, %v4391_v3  ;;  %v1209_v16 = vsel %vm1185_vm2, %v4759_v60, %v4392_v26  ;;  %v1372_v32 = vsel %vm1350_vm7, %v1339_v13, %v4382_v24  ;;  %v2702_v47 = vld [vmem:[%s7581_s3 + $0x68] sm:$0xff]  ;;  %v4760_v3 = vld [vmem:[%s4941_s17 + $0x120] sm:$0xff]  ;;  %v2700_v13 = vld [vmem:[%s7581_s3 + $0x58] sm:$0xff] }
 0x12c   : > { %v4386_v53 = vunpack.i.l.bf16 %v4385_v18  ;;  %v4400_v12 = vpop.permute.xlu1 %4399  ;;  %v4387_v52 = vunpack.i.h.bf16 %v4385_v18  ;;  %v4761_v37 = vld [vmem:[%s4941_s17 + $0x128] sm:$0xff] }
 0x12d   : > { %v4401_v59 = vunpack.i.l.bf16 %v4400_v12  ;;  %v4402_v14 = vunpack.i.h.bf16 %v4400_v12 }
 0x12e   : > { %v1404_v62 = vsel %vm1383_vm8, %v1371_v30, %v4386_v53  ;;  %v1405_v22 = vsel %vm1383_vm8, %v1372_v32, %v4387_v52 }
 0x12f   : > { %v4395_v23 = vpop.permute.xlu0 %4394  ;;  %1670 = vmatmul.mubr.f32.gmra.mxu0 %v1404_v62 }
 0x130   : > { %v4397_v6 = vunpack.i.h.bf16 %v4395_v23  ;;  %v4396_v46 = vunpack.i.l.bf16 %v4395_v23  ;;  %3735 = vmatprep.mubr.msk.f32.mxu0 %vm1185_vm2, %v5397_v48  ;;  %v4410_v38 = vpop.permute.xlu1 %4409 }
 0x131   : > { %v4411_v0 = vunpack.i.l.bf16 %v4410_v38  ;;  %v4412_v33 = vunpack.i.h.bf16 %v4410_v38 }
 0x132   : > { %v1241_v2 = vsel %vm1218_vm3, %v1208_v34, %v4396_v46  ;;  %v1242_v17 = vsel %vm1218_vm3, %v1209_v16, %v4397_v6 }
 0x133   : > { %v4405_v10 = vpop.permute.xlu0 %4404  ;;  %1675 = vmatmul.mubr.f32.gmra.mxu0 %v1405_v22  ;;  %v1274_v48 = vsel %vm1251_vm4, %v1241_v2, %v4401_v59  ;;  %v1275_v9 = vsel %vm1251_vm4, %v1242_v17, %v4402_v14  ;;  %v2698_v22 = vld [vmem:[%s7581_s3 + $0x48] sm:$0xff] }
 0x134   : > { %v4407_v36 = vunpack.i.h.bf16 %v4405_v10  ;;  %v4406_v39 = vunpack.i.l.bf16 %v4405_v10  ;;  %v4420_v44 = vpop.permute.xlu1 %4419  ;;  %3736 = vmatprep.mubr.msk.f32.mxu0 %vm1185_vm2, %v5454_v35  ;;  %v2704_v35 = vld [vmem:[%s7581_s3 + $0x78] sm:$0xff] }
 0x135   : > { %v4421_v41 = vunpack.i.l.bf16 %v4420_v44  ;;  %2829 = vmatpush1.msra.mxu1 %v2704_v35  ;;  %v4422_v58 = vunpack.i.h.bf16 %v4420_v44  ;;  %v2697_v44 = vld [vmem:[%s7581_s3 + $0x40] sm:$0xff] }
 0x136   : > { %v1307_v5 = vsel %vm1284_vm5, %v1274_v48, %v4406_v39  ;;  %v1308_v63 = vsel %vm1284_vm5, %v1275_v9, %v4407_v36  ;;  %2830 = vmatprep.subr.mxu1 %v7600_v1 }
 0x137   : > { %v4415_v40 = vpop.permute.xlu0 %4414  ;;  %v1340_v45 = vsel %vm1317_vm6, %v1307_v5, %v4411_v0  ;;  %v1341_v51 = vsel %vm1317_vm6, %v1308_v63, %v4412_v33  ;;  %2831 = vmatpush1.msra.mxu1 %v2703_v42 }
 0x138   : > { %v4417_v54 = vunpack.i.h.bf16 %v4415_v40  ;;  %v4416_v25 = vunpack.i.l.bf16 %v4415_v40  ;;  %v4430_v19 = vpop.permute.xlu1 %4429  ;;  %2832 = vmatprep.subr.mxu1 %v7600_v1 }
 0x139   : > { %v4431_v55 = vunpack.i.l.bf16 %v4430_v19  ;;  %2833 = vmatpush1.msra.mxu1 %v2702_v47  ;;  %v4432_v30 = vunpack.i.h.bf16 %v4430_v19  ;;  %v4762_v19 = vld [vmem:[%s4941_s17 + $0x138] sm:$0xff] }
 0x13a   : > { %v1373_v21 = vsel %vm1350_vm7, %v1340_v45, %v4416_v25  ;;  %v1374_v56 = vsel %vm1350_vm7, %v1341_v51, %v4417_v54  ;;  %2834 = vmatprep.subr.mxu1 %v7600_v1  ;;  %v4763_v51 = vld [vmem:[%s4941_s17 + $0x140] sm:$0xff] }
 0x13b   : > { %v4425_v8 = vpop.permute.xlu0 %4424  ;;  %v1406_v29 = vsel %vm1383_vm8, %v1373_v21, %v4421_v41  ;;  %v1407_v57 = vsel %vm1383_vm8, %v1374_v56, %v4422_v58  ;;  %v2696_v41 = vld [vmem:[%s7581_s3 + $0x38] sm:$0xff]  ;;  %v2695_v21 = vld [vmem:[%s7581_s3 + $0x30] sm:$0xff]  ;;  %v2694_v56 = vld [vmem:[%s7581_s3 + $0x28] sm:$0xff] }
 0x13c   : > { %v4426_v11 = vunpack.i.l.bf16 %v4425_v8  ;;  %1680 = vmatmul.mubr.f32.gmra.mxu0 %v1406_v29  ;;  %v4440_v15 = vpop.permute.xlu1 %4439  ;;  %v4427_v18 = vunpack.i.h.bf16 %v4425_v8 }
 0x13d   : > { %3737 = vmatprep.mubr.msk.f32.mxu0 %vm1185_vm2, %v5458_v43  ;;  %v2701_v43 = vld [vmem:[%s7581_s3 + $0x60] sm:$0xff]  ;;  %v4441_v62 = vunpack.i.l.bf16 %v4440_v15  ;;  %v4442_v59 = vunpack.i.h.bf16 %v4440_v15 }
 0x13e   : > { %v1210_v53 = vsel %vm1185_vm2, %v4760_v3, %v4426_v11  ;;  %2835 = vmatpush1.msra.mxu1 %v2701_v43  ;;  %v1211_v34 = vsel %vm1185_vm2, %v4761_v37, %v4427_v18  ;;  %v2693_v3 = vld [vmem:[%s7581_s3 + $0x20] sm:$0xff] }
 0x13f   : > { %v4435_v12 = vpop.permute.xlu0 %4434  ;;  %v1243_v52 = vsel %vm1218_vm3, %v1210_v53, %v4431_v55  ;;  %2836 = vmatprep.subr.mxu1 %v7600_v1  ;;  %v1244_v16 = vsel %vm1218_vm3, %v1211_v34, %v4432_v30  ;;  %v2692_v30 = vld [vmem:[%s7581_s3 + $0x18] sm:$0xff] }
 0x140   : > { %v4436_v24 = vunpack.i.l.bf16 %v4435_v12  ;;  %1685 = vmatmul.mubr.f32.gmra.mxu0 %v1407_v57  ;;  %v4450_v26 = vpop.permute.xlu1 %4449  ;;  %v4437_v23 = vunpack.i.h.bf16 %v4435_v12  ;;  %2837 = vmatpush1.msra.mxu1 %v2700_v13 }
 0x141   : > { %3738 = vmatprep.mubr.msk.f32.mxu0 %vm1185_vm2, %v5506_v31  ;;  %2838 = vmatprep.subr.mxu1 %v7600_v1  ;;  %v2699_v31 = vld [vmem:[%s7581_s3 + $0x50] sm:$0xff]  ;;  %v4451_v2 = vunpack.i.l.bf16 %v4450_v26  ;;  %v4452_v9 = vunpack.i.h.bf16 %v4450_v26 }
 0x142   : > { %v1276_v6 = vsel %vm1251_vm4, %v1243_v52, %v4436_v24  ;;  %2839 = vmatpush1.msra.mxu1 %v2699_v31  ;;  %v1277_v14 = vsel %vm1251_vm4, %v1244_v16, %v4437_v23 }
 0x143   : > { %v4445_v46 = vpop.permute.xlu0 %4444  ;;  %v1309_v32 = vsel %vm1284_vm5, %v1276_v6, %v4441_v62  ;;  %2840 = vmatprep.subr.mxu1 %v7600_v1  ;;  %v1310_v5 = vsel %vm1284_vm5, %v1277_v14, %v4442_v59  ;;  %v2689_v14 = vld [vmem:[%s7581_s3] sm:$0xff] }
 0x144   : > { %v4446_v38 = vunpack.i.l.bf16 %v4445_v46  ;;  %v4460_v60 = vpop.permute.xlu1 %4459  ;;  %v4447_v10 = vunpack.i.h.bf16 %v4445_v46  ;;  %2841 = vmatpush1.msra.mxu1 %v2698_v22 }
 0x145   : > { %v4461_v39 = vunpack.i.l.bf16 %v4460_v60  ;;  %2842 = vmatprep.subr.mxu1 %v7600_v1  ;;  %v4462_v33 = vunpack.i.h.bf16 %v4460_v60  ;;  %v2690_v60 = vld [vmem:[%s7581_s3 + $0x8] sm:$0xff] }
 0x146   : > { %v1342_v17 = vsel %vm1317_vm6, %v1309_v32, %v4446_v38  ;;  %2843 = vmatpush1.msra.mxu1 %v2697_v44  ;;  %v1343_v25 = vsel %vm1317_vm6, %v1310_v5, %v4447_v10  ;;  %v2720_v44 = vld [vmem:[%s7581_s3 + $0xf8] sm:$0xff] }
 0x147   : > { %v4455_v36 = vpop.permute.xlu0 %4454  ;;  %v1375_v40 = vsel %vm1350_vm7, %v1342_v17, %v4451_v2  ;;  %2844 = vmatprep.subr.mxu1 %v7600_v1  ;;  %v1212_v45 = vsel %vm1185_vm2, %v4762_v19, %v4461_v39  ;;  %v1213_v42 = vsel %vm1185_vm2, %v4763_v51, %v4462_v33  ;;  %v1376_v15 = vsel %vm1350_vm7, %v1343_v25, %v4452_v9  ;;  %v2718_v19 = vld [vmem:[%s7581_s3 + $0xe8] sm:$0xff] }
 0x148   : > { %v4456_v48 = vunpack.i.l.bf16 %v4455_v36  ;;  %v4470_v0 = vpop.permute.xlu1 %4469  ;;  %v4457_v63 = vunpack.i.h.bf16 %v4455_v36  ;;  %2845 = vmatpush1.msra.mxu1 %v2696_v41 }
 0x149   : > { %2846 = vmatprep.subr.mxu1 %v7600_v1  ;;  %v4471_v11 = vunpack.i.l.bf16 %v4470_v0 }
 0x14a   : > { %v1408_v54 = vsel %vm1383_vm8, %v1375_v40, %v4456_v48  ;;  %2847 = vmatpush1.msra.mxu1 %v2695_v21  ;;  %v1409_v47 = vsel %vm1383_vm8, %v1376_v15, %v4457_v63 }
 0x14b   : > { %v4465_v35 = vpop.permute.xlu0 %4464  ;;  %1690 = vmatmul.mubr.f32.gmra.mxu0 %v1408_v54  ;;  %2848 = vmatprep.subr.mxu1 %v7600_v1 }
 0x14c   : > { %v4467_v58 = vunpack.i.h.bf16 %v4465_v35  ;;  %v4466_v8 = vunpack.i.l.bf16 %v4465_v35  ;;  %3739 = vmatprep.mubr.msk.f32.mxu0 %vm1185_vm2, %v5509_v7  ;;  %v4480_v29 = vpop.permute.xlu1 %4479  ;;  %2849 = vmatpush1.msra.mxu1 %v2694_v56  ;;  %v4472_v7 = vunpack.i.h.bf16 %v4470_v0  ;;  %v4764_v0 = vld [vmem:[%s4941_s17 + $0x150] sm:$0xff] }
 0x14d   : > { %2850 = vmatprep.subr.mxu1 %v7600_v1  ;;  %v4481_v26 = vunpack.i.l.bf16 %v4480_v29  ;;  %v4482_v13 = vunpack.i.h.bf16 %v4480_v29 }
 0x14e   : > { %v1245_v55 = vsel %vm1218_vm3, %v1212_v45, %v4466_v8  ;;  %v1246_v53 = vsel %vm1218_vm3, %v1213_v42, %v4467_v58  ;;  %2851 = vmatpush1.msra.mxu1 %v2693_v3  ;;  %v4765_v45 = vld [vmem:[%s4941_s17 + $0x158] sm:$0xff] }
 0x14f   : > { %v4475_v18 = vpop.permute.xlu0 %4474  ;;  %1695 = vmatmul.mubr.f32.gmra.mxu0 %v1409_v47  ;;  %v1278_v24 = vsel %vm1251_vm4, %v1245_v55, %v4471_v11  ;;  %2852 = vmatprep.subr.mxu1 %v7600_v1  ;;  %v1279_v62 = vsel %vm1251_vm4, %v1246_v53, %v4472_v7  ;;  %v2716_v55 = vld [vmem:[%s7581_s3 + $0xd8] sm:$0xff] }
 0x150   : > { %v4477_v12 = vunpack.i.h.bf16 %v4475_v18  ;;  %v4476_v57 = vunpack.i.l.bf16 %v4475_v18  ;;  %v4490_v43 = vpop.permute.xlu1 %4489  ;;  %3740 = vmatprep.mubr.msk.f32.mxu0 %vm1185_vm2, %v5575_v4  ;;  %2853 = vmatpush1.msra.mxu1 %v2692_v30  ;;  %v2691_v4 = vld [vmem:[%s7581_s3 + $0x10] sm:$0xff] }
 0x151   : > { %v4491_v34 = vunpack.i.l.bf16 %v4490_v43  ;;  %2854 = vmatprep.subr.mxu1 %v7600_v1  ;;  %v4492_v59 = vunpack.i.h.bf16 %v4490_v43  ;;  %v508_v43 = vrot.slane %v5614_v28, 2 }
 0x152   : > { %v1311_v52 = vsel %vm1284_vm5, %v1278_v24, %v4476_v57  ;;  %v1312_v23 = vsel %vm1284_vm5, %v1279_v62, %v4477_v12  ;;  %2855 = vmatpush1.msra.mxu1 %v2691_v4  ;;  %v2715_v57 = vld [vmem:[%s7581_s3 + $0xd0] sm:$0xff] }
 0x153   : > { %v4485_v37 = vpop.permute.xlu0 %4484  ;;  %v1344_v38 = vsel %vm1317_vm6, %v1311_v52, %v4481_v26  ;;  %2856 = vmatprep.subr.mxu1 %v7600_v1  ;;  %v1345_v22 = vsel %vm1317_vm6, %v1312_v23, %v4482_v13 }
 0x154   : > { %v4487_v6 = vunpack.i.h.bf16 %v4485_v37  ;;  %v4486_v46 = vunpack.i.l.bf16 %v4485_v37  ;;  %v4500_v31 = vpop.permute.xlu1 %4499  ;;  %2857 = vmatpush1.msra.mxu1 %v2690_v60  ;;  %v509_v37 = vrot.slane %v5617_v50, 2  ;;  %v2713_v50 = vld [vmem:[%s7581_s3 + $0xc0] sm:$0xff] }
 0x155   : > { %2858 = vmatprep.subr.mxu1 %v7600_v1  ;;  %v4501_v39 = vunpack.i.l.bf16 %v4500_v31  ;;  %v4502_v63 = vunpack.i.h.bf16 %v4500_v31 }
 0x156   : > { %v1377_v16 = vsel %vm1350_vm7, %v1344_v38, %v4486_v46  ;;  %v1378_v36 = vsel %vm1350_vm7, %v1345_v22, %v4487_v6  ;;  %2859 = vmatpush1.msra.mxu1 %v2689_v14  ;;  %v4766_v6 = vld [vmem:[%s4941_s17 + $0x168] sm:$0xff]  ;;  %v510_v14 = vsel %vm406_vm1, %v508_v43, %v509_v37 }
 0x157   : > { %v4495_v32 = vpop.permute.xlu0 %4494  ;;  %v1410_v2 = vsel %vm1383_vm8, %v1377_v16, %v4491_v34  ;;  %2860 = vmatprep.subr.mxu1 %v7600_v1  ;;  %v1411_v33 = vsel %vm1383_vm8, %v1378_v36, %v4492_v59  ;;  %v2714_v34 = vld [vmem:[%s7581_s3 + $0xc8] sm:$0xff]  ;;  %v5935_v36 = vld [vmem:[%s7580_s2] ss:$0 sm:$0xff] }
 0x158   : > { %v4496_v10 = vunpack.i.l.bf16 %v4495_v32  ;;  %1700 = vmatmul.mubr.f32.gmra.mxu0 %v1410_v2  ;;  %v4510_v17 = vpop.permute.xlu1 %4509  ;;  %v4497_v48 = vunpack.i.h.bf16 %v4495_v32  ;;  %2861 = vmatpush2.msra.mxu1 %v2720_v44 }
 0x159   : > { %3741 = vmatprep.mubr.msk.f32.mxu0 %vm1185_vm2, %v5583_v27  ;;  %2862 = vmatprep.subr.mxu1 %v7600_v1  ;;  %v2719_v27 = vld [vmem:[%s7581_s3 + $0xf0] sm:$0xff]  ;;  %v4511_v25 = vunpack.i.l.bf16 %v4510_v17  ;;  %v4512_v11 = vunpack.i.h.bf16 %v4510_v17 }
 0x15a   : > { %v1214_v5 = vsel %vm1185_vm2, %v4764_v0, %v4496_v10  ;;  %2863 = vmatpush2.msra.mxu1 %v2719_v27  ;;  %v1215_v35 = vsel %vm1185_vm2, %v4765_v45, %v4497_v48  ;;  %v2712_v10 = vld [vmem:[%s7581_s3 + $0xb8] sm:$0xff]  ;;  %v2711_v48 = vld [vmem:[%s7581_s3 + $0xb0] sm:$0xff] }
 0x15b   : > { %v4505_v9 = vpop.permute.xlu0 %4504  ;;  %v1247_v54 = vsel %vm1218_vm3, %v1214_v5, %v4501_v39  ;;  %2864 = vmatprep.subr.mxu1 %v7600_v1  ;;  %v1248_v42 = vsel %vm1218_vm3, %v1215_v35, %v4502_v63  ;;  %v4767_v0 = vld [vmem:[%s4941_s17 + $0x170] sm:$0xff] }
 0x15c   : > { %v4506_v40 = vunpack.i.l.bf16 %v4505_v9  ;;  %1705 = vmatmul.mubr.f32.gmra.mxu0 %v1411_v33  ;;  %v5873_v41 = vpop.permute.xlu1 %4519  ;;  %v4507_v21 = vunpack.i.h.bf16 %v4505_v9  ;;  %2865 = vmatpush2.msra.mxu1 %v2718_v19  ;;  %v511_v33 = vrot.slane %v5651_v20, 2 }
 0x15d   : > { %3742 = vmatprep.mubr.msk.f32.mxu0 %vm1185_vm2, %v5626_v49  ;;  %2866 = vmatprep.subr.mxu1 %v7600_v1  ;;  %v2717_v49 = vld [vmem:[%s7581_s3 + $0xe0] sm:$0xff]  ;;  %v4521_v56 = vunpack.i.l.bf16 %v5873_v41  ;;  %v4522_v52 = vunpack.i.h.bf16 %v5873_v41  ;;  %v2710_v41 = vld [vmem:[%s7581_s3 + $0xa8] sm:$0xff] }
 0x15e   : > { %v1280_v58 = vsel %vm1251_vm4, %v1247_v54, %v4506_v40  ;;  %2867 = vmatpush2.msra.mxu1 %v2717_v49  ;;  %v1281_v47 = vsel %vm1251_vm4, %v1248_v42, %v4507_v21 }
 0x15f   : > { %v4515_v8 = vpop.permute.xlu0 %4514  ;;  %v1313_v15 = vsel %vm1284_vm5, %v1280_v58, %v4511_v25  ;;  %2868 = vmatprep.subr.mxu1 %v7600_v1  ;;  %v1314_v30 = vsel %vm1284_vm5, %v1281_v47, %v4512_v11  ;;  %v2709_v58 = vld [vmem:[%s7581_s3 + $0xa0] sm:$0xff] }
 0x160   : > { %v4516_v29 = vunpack.i.l.bf16 %v4515_v8  ;;  %v4530_v51 = vpop.permute.xlu1 %4529  ;;  %v4517_v7 = vunpack.i.h.bf16 %v4515_v8  ;;  %2869 = vmatpush2.msra.mxu1 %v2716_v55 }
 0x161   : > { %v4531_v12 = vunpack.i.l.bf16 %v4530_v51  ;;  %2870 = vmatprep.subr.mxu1 %v7600_v1  ;;  %v4532_v60 = vunpack.i.h.bf16 %v4530_v51 }
 0x162   : > { %v1346_v18 = vsel %vm1317_vm6, %v1313_v15, %v4516_v29  ;;  %2871 = vmatpush2.msra.mxu1 %v2715_v57  ;;  %v1347_v23 = vsel %vm1317_vm6, %v1314_v30, %v4517_v7  ;;  %v512_v29 = vsel %vm406_vm1, %v509_v37, %v511_v33  ;;  %v2708_v15 = vld [vmem:[%s7581_s3 + $0x98] sm:$0xff] }
 0x163   : > { %v4525_v3 = vpop.permute.xlu0 %4524  ;;  %v1571_v53 = vpop.f32.mrf.mxu0  ;;  %v1379_v13 = vsel %vm1350_vm7, %v1346_v18, %v4521_v56  ;;  %2872 = vmatprep.subr.mxu1 %v7600_v1  ;;  %v1216_v46 = vsel %vm1185_vm2, %v4766_v6, %v4531_v12  ;;  %v1380_v22 = vsel %vm1350_vm7, %v1347_v23, %v4522_v52  ;;  %v1217_v5 = vsel %vm1185_vm2, %v4767_v0, %v4532_v60 }
 0x164   : > { %v4526_v24 = vunpack.i.l.bf16 %v4525_v3  ;;  %v5903_v26 = vpop.permute.xlu1 %4539  ;;  %v4527_v28 = vunpack.i.h.bf16 %v4525_v3  ;;  %2873 = vmatpush2.msra.mxu1 %v2714_v34  ;;  %v1572_v63 = vadd.f32 %v5935_v36, %v1571_v53  ;;  %v2707_v53 = vld [vmem:[%s7581_s3 + $0x90] sm:$0xff]  ;;  %v2706_v34 = vld [vmem:[%s7581_s3 + $0x88] sm:$0xff] }
 0x165   : > { %v1573_v62 = vpop.f32.mrf.mxu0  ;;  %2874 = vmatprep.subr.mxu1 %v7600_v1  ;;  %v4541_v32 = vunpack.i.l.bf16 %v5903_v26  ;;  %v4542_v54 = vunpack.i.h.bf16 %v5903_v26 }
 0x166   : > { %v1412_v4 = vsel %vm1383_vm8, %v1379_v13, %v4526_v24  ;;  %2875 = vmatpush2.msra.mxu1 %v2713_v50  ;;  %v1762_v56 = vmul.f32 0.01, %v1572_v63  ;;  %vm1730_vm10 = vcmp.ge.f32.partialorder %v1572_v63, 0.0 }
 0x167   : > { %v4535_v31 = vpop.permute.xlu0 %4534  ;;  %v1576_v38 = vpop.f32.mrf.mxu0  ;;  %1710 = vmatmul.mubr.f32.gmra.mxu0 %v1412_v4  ;;  %2876 = vmatprep.subr.mxu1 %v7600_v1 }
 0x168   : > { %v4536_v16 = vunpack.i.l.bf16 %v4535_v31  ;;  %3743 = vmatprep.mubr.msk.f32.mxu0 %vm1185_vm2, %v5661_v61  ;;  %v958_v59 = vpop.permute.xlu1 %957  ;;  %v1413_v61 = vsel %vm1383_vm8, %v1380_v22, %v4527_v28  ;;  %2877 = vmatpush2.msra.mxu1 %v2712_v10  ;;  %v4537_v39 = vunpack.i.h.bf16 %v4535_v31  ;;  %v1577_v27 = vadd.f32 %v5935_v36, %v1576_v38  ;;  %v2705_v38 = vld [vmem:[%s7581_s3 + $0x80] sm:$0xff] }
 0x169   : > { %v1578_v2 = vpop.f32.mrf.mxu0  ;;  %2878 = vmatprep.subr.mxu1 %v7600_v1  ;;  %v1794_v52 = vsel %vm1730_vm10, %v1572_v63, %v1762_v56 }
 0x16a   : > { %v1249_v17 = vsel %vm1218_vm3, %v1216_v46, %v4536_v16  ;;  %2879 = vmatpush2.msra.mxu1 %v2711_v48  ;;  %v1250_v20 = vsel %vm1218_vm3, %v1217_v5, %v4537_v39  ;;  %v1763_v51 = vmul.f32 0.01, %v1577_v27  ;;  %vm1731_vm9 = vcmp.ge.f32.partialorder %v1577_v27, 0.0 }
 0x16b   : > { %v4545_v44 = vpop.permute.xlu0 %4544  ;;  %1715 = vmatmul.mubr.f32.gmra.mxu0 %v1413_v61  ;;  %v1282_v40 = vsel %vm1251_vm4, %v1249_v17, %v4541_v32  ;;  %2880 = vmatprep.subr.mxu1 %v7600_v1  ;;  %v1283_v47 = vsel %vm1251_vm4, %v1250_v20, %v4542_v54  ;;  %v1843_v50 = vrot.slane %v1794_v52, 1  ;;  %v1894_v16 = vrot.slane %v1794_v52, 7 }
 0x16c   : > { %v4546_v9 = vunpack.i.l.bf16 %v4545_v44  ;;  %3744 = vmatprep.mubr.msk.f32.mxu0 %vm1185_vm2, %v510_v14  ;;  %v1150_v19 = vpop.permute.xlu1 %1149  ;;  %2881 = vmatpush2.msra.mxu1 %v2710_v41  ;;  %v4547_v45 = vunpack.i.h.bf16 %v4545_v44  ;;  %v1795_v24 = vsel %vm1731_vm9, %v1577_v27, %v1763_v51 }
 0x16d   : > { %2882 = vmatprep.subr.mxu1 %v7600_v1  ;;  %v1895_v6 = vrot.slane %v1795_v24, 7  ;;  %v1988_v46 = vrot.slane %v1795_v24, 5  ;;  %v6009_v48 = vsel %vm1890_vm13, %v1843_v50, %v1894_v16 }
 0x16e   : > { %v1315_v25 = vsel %vm1284_vm5, %v1282_v40, %v4546_v9  ;;  %2883 = vmatpush2.msra.mxu1 %v2709_v58  ;;  %v1316_v3 = vsel %vm1284_vm5, %v1283_v47, %v4547_v45 }
 0x16f   : > { %v1348_v35 = vsel %vm1317_vm6, %v1315_v25, %v958_v59  ;;  %v1054_v21 = vpop.permute.xlu0 %1053  ;;  %2884 = vmatprep.subr.mxu1 %v7600_v1  ;;  %v5994_v22 = vsel %vm1890_vm13, %v1894_v16, %v1895_v6  ;;  %v5997_v14 = vsel %vm1890_vm13, %v1895_v6, %v1988_v46  ;;  %v2086_v25 = vrot.slane %v6009_v48, 1 }
 0x170   : > { %v1381_v8 = vsel %vm1350_vm7, %v1348_v35, %v1054_v21  ;;  %v1581_v49 = vpop.f32.mrf.mxu0  ;;  %2885 = vmatpush2.msra.mxu1 %v2708_v15  ;;  %v1056_v57 = vpop.permute.xlu1 %1055  ;;  %v2089_v0 = vrot.slane %v5997_v14, 1  ;;  %v2087_v27 = vrot.slane %v5994_v22, 1 }
 0x171   : > { %v1582_v42 = vadd.f32 %v5935_v36, %v1581_v49  ;;  %v1414_v11 = vsel %vm1383_vm8, %v1381_v8, %v1150_v19  ;;  %2886 = vmatprep.subr.mxu1 %v7600_v1 }
 0x172   : > { %v1583_v55 = vpop.f32.mrf.mxu0  ;;  %1720 = vmatmul.mubr.f32.gmra.mxu0 %v1414_v11  ;;  %2887 = vmatpush2.msra.mxu1 %v2707_v53  ;;  %v6028_v45 = vsel %vm325_vm0, %v2087_v27, %v2089_v0  ;;  %v6031_v35 = vsel %vm325_vm0, %v2086_v25, %v2087_v27 }
 0x173   : > { %vm1732_vm11 = vcmp.ge.f32.partialorder %v1582_v42, 0.0  ;;  %v1764_v7 = vmul.f32 0.01, %v1582_v42  ;;  %v960_v18 = vpop.permute.xlu0 %959  ;;  %3745 = vmatprep.mubr.msk.f32.mxu0 %vm1185_vm2, %v512_v29  ;;  %2888 = vmatprep.subr.mxu1 %v7600_v1  ;;  %7651 = vst [vmem:[#allocation7_spill] sm:$0xff] %v6028_v45  ;;  %7652 = vst [vmem:[#allocation8_spill] sm:$0xff] %v6031_v35 }
 0x174   : > { %v1349_v12 = vsel %vm1317_vm6, %v1316_v3, %v960_v18  ;;  %v1586_v43 = vpop.f32.mrf.mxu0  ;;  %2889 = vmatpush2.msra.mxu1 %v2706_v34 }
 0x175   : > { %v1796_v26 = vsel %vm1732_vm11, %v1582_v42, %v1764_v7  ;;  %v1587_v30 = vadd.f32 %v5935_v36, %v1586_v43  ;;  %v1382_v28 = vsel %vm1350_vm7, %v1349_v12, %v1056_v57  ;;  %2890 = vmatprep.subr.mxu1 %v7600_v1 }
 0x176   : > { %v1842_v62 = vrot.slane %v1796_v26, 1  ;;  %v1891_v13 = vrot.slane %v1796_v26, 7  ;;  %v1588_v37 = vpop.f32.mrf.mxu0  ;;  %2891 = vmatpush2.msra.mxu1 %v2705_v38 }
 0x177   : > { %vm1733_vm12 = vcmp.ge.f32.partialorder %v1587_v30, 0.0  ;;  %v1765_v4 = vmul.f32 0.01, %v1587_v30  ;;  %v1152_v23 = vpop.permute.xlu0 %1151  ;;  %3889 = vmatprep.subr.mxu1 %v7600_v1 }
 0x178   : > { %v1415_v31 = vsel %vm1383_vm8, %v1382_v28, %v1152_v23  ;;  %v5990_v59 = vsel %vm1890_vm13, %v1842_v62, %v1891_v13 }
 0x179   : > { %v1797_v60 = vsel %vm1733_vm12, %v1587_v30, %v1765_v4  ;;  %1725 = vmatmul.mubr.f32.gmra.mxu0 %v1415_v31  ;;  %v2081_v44 = vrot.slane %v5990_v59, 1  ;;  %v4558_v49 = vpack.i.bf16 %v6031_v35, %v5990_v59 }
 0x17a   : > { %v1892_v32 = vrot.slane %v1797_v60, 7  ;;  %v1987_v2 = vrot.slane %v1797_v60, 5 }
 0x17c   : > { %v6000_v10 = vsel %vm1890_vm13, %v1891_v13, %v1892_v32  ;;  %v6003_v17 = vsel %vm1890_vm13, %v1892_v32, %v1987_v2 }
 0x17d   : > { %v2084_v61 = vrot.slane %v6003_v17, 1  ;;  %v2082_v39 = vrot.slane %v6000_v10, 1  ;;  %v4563_v8 = vpack.i.bf16 %v6028_v45, %v6000_v10 }
 0x17f   : > { %v1591_v5 = vpop.f32.mrf.mxu0  ;;  %v6013_v9 = vsel %vm325_vm0, %v2082_v39, %v2084_v61  ;;  %v6016_v33 = vsel %vm325_vm0, %v2081_v44, %v2082_v39 }
 0x180   : > { %7649 = vst [vmem:[#allocation5_spill] sm:$0xff] %v6013_v9  ;;  %7650 = vst [vmem:[#allocation6_spill] sm:$0xff] %v6016_v33  ;;  %v1592_v40 = vadd.f32 %v5935_v36, %v1591_v5  ;;  %v4553_v41 = vpack.i.bf16 %v6013_v9, %v5994_v22  ;;  %v4548_v63 = vpack.i.bf16 %v6016_v33, %v6009_v48  ;;  %v2156_v33 = vrot.slane %v5990_v59, 2 }
 0x181   : > { %v1593_v54 = vpop.f32.mrf.mxu0 }
 0x182   : > { %vm1734_vm14 = vcmp.ge.f32.partialorder %v1592_v40, 0.0  ;;  %v1766_v19 = vmul.f32 0.01, %v1592_v40  ;;  %4554 = vrot.lane.b32.xlu0 %v4553_v41, %s4836_s16  ;;  %4549 = vrot.lane.b32.xlu1 %v4548_v63, %s4836_s16 }
 0x183   : > { %v1596_v20 = vpop.f32.mrf.mxu0 }
 0x184   : > { %v1798_v21 = vsel %vm1734_vm14, %v1592_v40, %v1766_v19  ;;  %v1597_v58 = vadd.f32 %v5935_v36, %v1596_v20 }
 0x185   : > { %v1598_v29 = vpop.f32.mrf.mxu0  ;;  %v1844_v42 = vrot.slane %v1798_v21, 1  ;;  %v1897_v11 = vrot.slane %v1798_v21, 7 }
 0x186   : > { %vm1735_vm15 = vcmp.ge.f32.partialorder %v1597_v58, 0.0  ;;  %v1767_v51 = vmul.f32 0.01, %v1597_v58  ;;  %4564 = vrot.lane.b32.xlu0 %v4563_v8, %s4836_s16  ;;  %4559 = vrot.lane.b32.xlu1 %v4558_v49, %s4836_s16 }
 0x187   : > { %v6041_v55 = vsel %vm1890_vm13, %v1844_v42, %v1897_v11  ;;  %v6094_v42 = vld [vmem:[%s7581_s3 + $0x178] sm:$0xff] }
 0x188   : > { %v1799_v15 = vsel %vm1735_vm15, %v1597_v58, %v1767_v51  ;;  %v2091_v34 = vrot.slane %v6041_v55, 1  ;;  %3054 = vmatpush1.msra.mxu0 %v6094_v42 }
 0x189   : > { %v1898_v56 = vrot.slane %v1799_v15, 7  ;;  %v1989_v3 = vrot.slane %v1799_v15, 5  ;;  %3055 = vmatprep.subr.mxu0 %v7600_v1 }
 0x18b   : > { %v6044_v47 = vsel %vm1890_vm13, %v1897_v11, %v1898_v56  ;;  %v6052_v26 = vsel %vm1890_vm13, %v1898_v56, %v1989_v3  ;;  %v6101_v11 = vld [vmem:[%s7581_s3 + $0x170] sm:$0xff] }
 0x18c   : > { %v1601_v7 = vpop.f32.mrf.mxu0  ;;  %v4568_v18 = vpack.i.bf16 %v6044_v47, %v6041_v55  ;;  %v2092_v24 = vrot.slane %v6044_v47, 1  ;;  %v2094_v4 = vrot.slane %v6052_v26, 1  ;;  %3056 = vmatpush1.msra.mxu0 %v6101_v11 }
 0x18d   : > { %v1602_v53 = vadd.f32 %v5935_v36, %v1601_v7  ;;  %3057 = vmatprep.subr.mxu0 %v7600_v1 }
 0x18e   : > { %v1603_v12 = vpop.f32.mrf.mxu0  ;;  %4569 = vrot.lane.b32.xlu1 %v4568_v18, %s4836_s16  ;;  %v6061_v6 = vsel %vm325_vm0, %v2091_v34, %v2092_v24  ;;  %v6070_v60 = vsel %vm325_vm0, %v2092_v24, %v2094_v4 }
 0x18f   : > { %vm1736_vm2 = vcmp.ge.f32.partialorder %v1602_v53, 0.0  ;;  %v1768_v57 = vmul.f32 0.01, %v1602_v53  ;;  %7653 = vst [vmem:[#allocation9_spill] sm:$0xff] %v6061_v6  ;;  %7654 = vst [vmem:[#allocation10_spill] sm:$0xff] %v6070_v60 }
 0x190   : > { %v1606_v43 = vpop.f32.mrf.mxu0 }
 0x191   : > { %v1800_v30 = vsel %vm1736_vm2, %v1602_v53, %v1768_v57  ;;  %v1607_v52 = vadd.f32 %v5935_v36, %v1606_v43 }
 0x192   : > { %v1845_v62 = vrot.slane %v1800_v30, 1  ;;  %v1900_v13 = vrot.slane %v1800_v30, 7  ;;  %v1608_v37 = vpop.f32.mrf.mxu0 }
 0x193   : > { %vm1737_vm3 = vcmp.ge.f32.partialorder %v1607_v52, 0.0  ;;  %v1769_v28 = vmul.f32 0.01, %v1607_v52 }
 0x194   : > { %v6058_v23 = vsel %vm1890_vm13, %v1845_v62, %v1900_v13 }
 0x195   : > { %v1801_v46 = vsel %vm1737_vm3, %v1607_v52, %v1769_v28  ;;  %v4573_v31 = vpack.i.bf16 %v6061_v6, %v6058_v23  ;;  %v2096_v19 = vrot.slane %v6058_v23, 1 }
 0x196   : > { %v1901_v38 = vrot.slane %v1801_v46, 7  ;;  %v1990_v2 = vrot.slane %v1801_v46, 5 }
 0x197   : > { %4574 = vrot.lane.b32.xlu0 %v4573_v31, %s4836_s16 }
 0x198   : > { %v6067_v50 = vsel %vm1890_vm13, %v1900_v13, %v1901_v38  ;;  %v6078_v27 = vsel %vm1890_vm13, %v1901_v38, %v1990_v2 }
 0x199   : > { %v4578_v16 = vpack.i.bf16 %v6070_v60, %v6067_v50  ;;  %v2097_v5 = vrot.slane %v6067_v50, 1  ;;  %v2099_v21 = vrot.slane %v6078_v27, 1  ;;  %v6334_v60 = vld [vmem:[%s7581_s3 + $0x1f0] sm:$0xff] }
 0x19b   : > { %v1611_v32 = vpop.f32.mrf.mxu0  ;;  %4579 = vrot.lane.b32.xlu1 %v4578_v16, %s4836_s16  ;;  %v6087_v8 = vsel %vm325_vm0, %v2096_v19, %v2097_v5  ;;  %v6107_v56 = vsel %vm325_vm0, %v2097_v5, %v2099_v21  ;;  %v6132_v16 = vld [vmem:[%s7581_s3 + $0x168] sm:$0xff]  ;;  %v6159_v19 = vld [vmem:[%s7581_s3 + $0x158] sm:$0xff] }
 0x19c   : > { %v1612_v61 = vadd.f32 %v5935_v36, %v1611_v32  ;;  %7655 = vst [vmem:[#allocation11_spill] sm:$0xff] %v6087_v8  ;;  %7656 = vst [vmem:[#allocation12_spill] sm:$0xff] %v6107_v56  ;;  %3058 = vmatpush1.msra.mxu0 %v6132_v16 }
 0x19d   : > { %v1613_v39 = vpop.f32.mrf.mxu0  ;;  %3059 = vmatprep.subr.mxu0 %v7600_v1 }
 0x19e   : > { %vm1738_vm4 = vcmp.ge.f32.partialorder %v1612_v61, 0.0  ;;  %v1770_v44 = vmul.f32 0.01, %v1612_v61 }
 0x19f   : > { %v1616_v0 = vpop.f32.mrf.mxu0 }
 0x1a0   : > { %v1802_v40 = vsel %vm1738_vm4, %v1612_v61, %v1770_v44  ;;  %v1617_v41 = vadd.f32 %v5935_v36, %v1616_v0 }
 0x1a1   : > { %v1846_v63 = vrot.slane %v1802_v40, 1  ;;  %v1903_v54 = vrot.slane %v1802_v40, 7  ;;  %v1618_v25 = vpop.f32.mrf.mxu0  ;;  %v6151_v40 = vld [vmem:[%s7581_s3 + $0x160] sm:$0xff] }
 0x1a2   : > { %vm1739_vm6 = vcmp.ge.f32.partialorder %v1617_v41, 0.0  ;;  %v1771_v20 = vmul.f32 0.01, %v1617_v41  ;;  %3060 = vmatpush1.msra.mxu0 %v6151_v40 }
 0x1a3   : > { %v6084_v58 = vsel %vm1890_vm13, %v1846_v63, %v1903_v54  ;;  %3061 = vmatprep.subr.mxu0 %v7600_v1 }
 0x1a4   : > { %v1803_v49 = vsel %vm1739_vm6, %v1617_v41, %v1771_v20  ;;  %v4583_v29 = vpack.i.bf16 %v6087_v8, %v6084_v58  ;;  %v2101_v28 = vrot.slane %v6084_v58, 1  ;;  %v6164_v20 = vld [vmem:[%s7581_s3 + $0x150] sm:$0xff]  ;;  %3062 = vmatpush1.msra.mxu0 %v6159_v19 }
 0x1a5   : > { %v1904_v51 = vrot.slane %v1803_v49, 7  ;;  %v1991_v3 = vrot.slane %v1803_v49, 5  ;;  %3063 = vmatprep.subr.mxu0 %v7600_v1 }
 0x1a6   : > { %4584 = vrot.lane.b32.xlu0 %v4583_v29, %s4836_s16  ;;  %3064 = vmatpush1.msra.mxu0 %v6164_v20 }
 0x1a7   : > { %v6104_v15 = vsel %vm1890_vm13, %v1903_v54, %v1904_v51  ;;  %v6118_v30 = vsel %vm1890_vm13, %v1904_v51, %v1991_v3  ;;  %3065 = vmatprep.subr.mxu0 %v7600_v1 }
 0x1a8   : > { %v1621_v7 = vpop.f32.mrf.mxu0  ;;  %v4588_v18 = vpack.i.bf16 %v6107_v56, %v6104_v15  ;;  %v2102_v24 = vrot.slane %v6104_v15, 1  ;;  %v2104_v46 = vrot.slane %v6118_v30, 1 }
 0x1a9   : > { %v1622_v53 = vadd.f32 %v5935_v36, %v1621_v7 }
 0x1aa   : > { %v1623_v12 = vpop.f32.mrf.mxu0  ;;  %4589 = vrot.lane.b32.xlu1 %v4588_v18, %s4836_s16  ;;  %v6127_v38 = vsel %vm325_vm0, %v2101_v28, %v2102_v24  ;;  %v6143_v44 = vsel %vm325_vm0, %v2102_v24, %v2104_v46 }
 0x1ab   : > { %vm1740_vm7 = vcmp.ge.f32.partialorder %v1622_v53, 0.0  ;;  %v1772_v57 = vmul.f32 0.01, %v1622_v53  ;;  %7657 = vst [vmem:[#allocation13_spill] sm:$0xff] %v6127_v38  ;;  %7658 = vst [vmem:[#allocation14_spill] sm:$0xff] %v6143_v44 }
 0x1ac   : > { %v1626_v43 = vpop.f32.mrf.mxu0 }
 0x1ad   : > { %v1804_v52 = vsel %vm1740_vm7, %v1622_v53, %v1772_v57  ;;  %v1627_v62 = vadd.f32 %v5935_v36, %v1626_v43 }
 0x1ae   : > { %v1847_v13 = vrot.slane %v1804_v52, 1  ;;  %v1906_v37 = vrot.slane %v1804_v52, 7  ;;  %v1628_v34 = vpop.f32.mrf.mxu0 }
 0x1af   : > { %vm1741_vm8 = vcmp.ge.f32.partialorder %v1627_v62, 0.0  ;;  %v1773_v4 = vmul.f32 0.01, %v1627_v62  ;;  %v6189_v34 = vld [vmem:[%s7581_s3 + $0x148] sm:$0xff] }
 0x1b0   : > { %v6124_v31 = vsel %vm1890_vm13, %v1847_v13, %v1906_v37  ;;  %3066 = vmatpush1.msra.mxu0 %v6189_v34 }
 0x1b1   : > { %v1805_v32 = vsel %vm1741_vm8, %v1627_v62, %v1773_v4  ;;  %v4593_v2 = vpack.i.bf16 %v6127_v38, %v6124_v31  ;;  %v2106_v12 = vrot.slane %v6124_v31, 1  ;;  %3067 = vmatprep.subr.mxu0 %v7600_v1 }
 0x1b2   : > { %v1907_v61 = vrot.slane %v1805_v32, 7  ;;  %v1992_v41 = vrot.slane %v1805_v32, 5 }
 0x1b3   : > { %4594 = vrot.lane.b32.xlu0 %v4593_v2, %s4836_s16 }
 0x1b4   : > { %v6140_v39 = vsel %vm1890_vm13, %v1906_v37, %v1907_v61  ;;  %v6169_v29 = vsel %vm1890_vm13, %v1907_v61, %v1992_v41 }
 0x1b5   : > { %v4598_v0 = vpack.i.bf16 %v6143_v44, %v6140_v39  ;;  %v2107_v49 = vrot.slane %v6140_v39, 1  ;;  %v2109_v43 = vrot.slane %v6169_v29, 1 }
 0x1b7   : > { %v1631_v5 = vpop.f32.mrf.mxu0  ;;  %4599 = vrot.lane.b32.xlu1 %v4598_v0, %s4836_s16  ;;  %v6181_v52 = vsel %vm325_vm0, %v2106_v12, %v2107_v49  ;;  %v6195_v4 = vsel %vm325_vm0, %v2107_v49, %v2109_v43  ;;  %v6205_v0 = vld [vmem:[%s7581_s3 + $0x140] sm:$0xff]  ;;  %v6233_v43 = vld [vmem:[%s7581_s3 + $0x128] sm:$0xff] }
 0x1b8   : > { %v1632_v63 = vadd.f32 %v5935_v36, %v1631_v5  ;;  %7660 = vst [vmem:[#allocation16_spill] sm:$0xff] %v6181_v52  ;;  %7662 = vst [vmem:[#allocation18_spill] sm:$0xff] %v6195_v4  ;;  %v6210_v5 = vld [vmem:[%s7581_s3 + $0x138] sm:$0xff]  ;;  %3068 = vmatpush1.msra.mxu0 %v6205_v0 }
 0x1b9   : > { %v1633_v54 = vpop.f32.mrf.mxu0  ;;  %3069 = vmatprep.subr.mxu0 %v7600_v1 }
 0x1ba   : > { %vm1742_vm9 = vcmp.ge.f32.partialorder %v1632_v63, 0.0  ;;  %v1774_v25 = vmul.f32 0.01, %v1632_v63  ;;  %v6218_v54 = vld [vmem:[%s7581_s3 + $0x130] sm:$0xff]  ;;  %3070 = vmatpush1.msra.mxu0 %v6210_v5 }
 0x1bb   : > { %v1636_v21 = vpop.f32.mrf.mxu0  ;;  %3071 = vmatprep.subr.mxu0 %v7600_v1 }
 0x1bc   : > { %v1806_v51 = vsel %vm1742_vm9, %v1632_v63, %v1774_v25  ;;  %v1637_v7 = vadd.f32 %v5935_v36, %v1636_v21  ;;  %3072 = vmatpush1.msra.mxu0 %v6218_v54 }
 0x1bd   : > { %v1848_v18 = vrot.slane %v1806_v51, 1  ;;  %v1909_v3 = vrot.slane %v1806_v51, 7  ;;  %v1638_v53 = vpop.f32.mrf.mxu0  ;;  %3073 = vmatprep.subr.mxu0 %v7600_v1 }
 0x1be   : > { %vm1743_vm10 = vcmp.ge.f32.partialorder %v1637_v7, 0.0  ;;  %v1775_v57 = vmul.f32 0.01, %v1637_v7  ;;  %3074 = vmatpush1.msra.mxu0 %v6233_v43 }
 0x1bf   : > { %v6178_v24 = vsel %vm1890_vm13, %v1848_v18, %v1909_v3  ;;  %3075 = vmatprep.subr.mxu0 %v7600_v1 }
 0x1c0   : > { %7659 = vst [vmem:[#allocation15_spill] sm:$0xff] %v6178_v24  ;;  %v1807_v62 = vsel %vm1743_vm10, %v1637_v7, %v1775_v57  ;;  %v4603_v13 = vpack.i.bf16 %v6181_v52, %v6178_v24  ;;  %v2111_v12 = vrot.slane %v6178_v24, 1 }
 0x1c1   : > { %v1910_v37 = vrot.slane %v1807_v62, 7  ;;  %v1993_v2 = vrot.slane %v1807_v62, 5 }
 0x1c2   : > { %4604 = vrot.lane.b32.xlu0 %v4603_v13, %s4836_s16 }
 0x1c3   : > { %v6192_v28 = vsel %vm1890_vm13, %v1909_v3, %v1910_v37  ;;  %v6223_v49 = vsel %vm1890_vm13, %v1910_v37, %v1993_v2  ;;  %v6249_v2 = vld [vmem:[%s7581_s3 + $0x120] sm:$0xff] }
 0x1c4   : > { %7661 = vst [vmem:[#allocation17_spill] sm:$0xff] %v6192_v28  ;;  %v1641_v46 = vpop.f32.mrf.mxu0  ;;  %v4608_v32 = vpack.i.bf16 %v6195_v4, %v6192_v28  ;;  %v2112_v21 = vrot.slane %v6192_v28, 1  ;;  %7663 = vst [vmem:[#allocation19_spill] sm:$0xff] %v6223_v49  ;;  %v2114_v62 = vrot.slane %v6223_v49, 1  ;;  %3076 = vmatpush1.msra.mxu0 %v6249_v2  ;;  %v6287_v4 = vld [vmem:[%s7581_s3 + $0x108] sm:$0xff] }
 0x1c5   : > { %v1642_v61 = vadd.f32 %v5935_v36, %v1641_v46  ;;  %3077 = vmatprep.subr.mxu0 %v7600_v1 }
 0x1c6   : > { %v1643_v41 = vpop.f32.mrf.mxu0  ;;  %4609 = vrot.lane.b32.xlu1 %v4608_v32, %s4836_s16  ;;  %v6240_v37 = vsel %vm325_vm0, %v2111_v12, %v2112_v21 }
 0x1c7   : > { %vm1744_vm11 = vcmp.ge.f32.partialorder %v1642_v61, 0.0  ;;  %v1776_v63 = vmul.f32 0.01, %v1642_v61  ;;  %7665 = vst [vmem:[#allocation21_spill] sm:$0xff] %v6240_v37 }
 0x1c8   : > { %v1646_v25 = vpop.f32.mrf.mxu0 }
 0x1c9   : > { %v1808_v51 = vsel %vm1744_vm11, %v1642_v61, %v1776_v63  ;;  %v1647_v7 = vadd.f32 %v5935_v36, %v1646_v25  ;;  %v6258_v63 = vsel %vm325_vm0, %v2112_v21, %v2114_v62 }
 0x1ca   : > { %v1849_v18 = vrot.slane %v1808_v51, 1  ;;  %v1912_v3 = vrot.slane %v1808_v51, 7  ;;  %v1648_v53 = vpop.f32.mrf.mxu0  ;;  %7667 = vst [vmem:[#allocation23_spill] sm:$0xff] %v6258_v63  ;;  %v6265_v51 = vld [vmem:[%s7581_s3 + $0x118] sm:$0xff] }
 0x1cb   : > { %vm1745_vm12 = vcmp.ge.f32.partialorder %v1647_v7, 0.0  ;;  %v1777_v57 = vmul.f32 0.01, %v1647_v7  ;;  %3078 = vmatpush1.msra.mxu0 %v6265_v51  ;;  %v6274_v53 = vld [vmem:[%s7581_s3 + $0x110] sm:$0xff] }
 0x1cc   : > { %v6237_v13 = vsel %vm1890_vm13, %v1849_v18, %v1912_v3  ;;  %3079 = vmatprep.subr.mxu0 %v7600_v1 }
 0x1cd   : > { %7664 = vst [vmem:[#allocation20_spill] sm:$0xff] %v6237_v13  ;;  %v1809_v46 = vsel %vm1745_vm12, %v1647_v7, %v1777_v57  ;;  %v4613_v32 = vpack.i.bf16 %v6240_v37, %v6237_v13  ;;  %3080 = vmatpush1.msra.mxu0 %v6274_v53  ;;  %v2116_v37 = vrot.slane %v6237_v13, 1 }
 0x1ce   : > { %v1913_v61 = vrot.slane %v1809_v46, 7  ;;  %v1994_v18 = vrot.slane %v1809_v46, 5  ;;  %3081 = vmatprep.subr.mxu0 %v7600_v1 }
 0x1cf   : > { %4614 = vrot.lane.b32.xlu0 %v4613_v32, %s4836_s16  ;;  %3082 = vmatpush1.msra.mxu0 %v6287_v4 }
 0x1d0   : > { %v6255_v41 = vsel %vm1890_vm13, %v1912_v3, %v1913_v61  ;;  %v6280_v32 = vsel %vm1890_vm13, %v1913_v61, %v1994_v18  ;;  %3083 = vmatprep.subr.mxu0 %v7600_v1 }
 0x1d1   : > { %7666 = vst [vmem:[#allocation22_spill] sm:$0xff] %v6255_v41  ;;  %v4618_v25 = vpack.i.bf16 %v6258_v63, %v6255_v41  ;;  %v2117_v62 = vrot.slane %v6255_v41, 1  ;;  %7668 = vst [vmem:[#allocation24_spill] sm:$0xff] %v6280_v32  ;;  %v2119_v61 = vrot.slane %v6280_v32, 1 }
 0x1d3   : > { %v1651_v7 = vpop.f32.mrf.mxu0  ;;  %4619 = vrot.lane.b32.xlu1 %v4618_v25, %s4836_s16 }
 0x1d4   : > { %v1652_v3 = vadd.f32 %v5935_v36, %v1651_v7 }
 0x1d5   : > { %v1653_v21 = vpop.f32.mrf.mxu0 }
 0x1d6   : > { %vm1746_vm14 = vcmp.ge.f32.partialorder %v1652_v3, 0.0  ;;  %v1778_v12 = vmul.f32 0.01, %v1652_v3 }
 0x1d7   : > { %v1656_v57 = vpop.f32.mrf.mxu0 }
 0x1d8   : > { %v1810_v46 = vsel %vm1746_vm14, %v1652_v3, %v1778_v12  ;;  %v1657_v25 = vadd.f32 %v5935_v36, %v1656_v57  ;;  %v6295_v3 = vsel %vm325_vm0, %v2116_v37, %v2117_v62  ;;  %v6310_v37 = vsel %vm325_vm0, %v2117_v62, %v2119_v61 }
 0x1d9   : > { %v1850_v7 = vrot.slane %v1810_v46, 1  ;;  %v1915_v21 = vrot.slane %v1810_v46, 7  ;;  %v1658_v63 = vpop.f32.mrf.mxu0  ;;  %7670 = vst [vmem:[#allocation26_spill] sm:$0xff] %v6295_v3  ;;  %v6304_v46 = vld [vmem:[%s7581_s3 + $0x100] sm:$0xff]  ;;  %7672 = vst [vmem:[#allocation28_spill] sm:$0xff] %v6310_v37 }
 0x1da   : > { %vm1747_vm15 = vcmp.ge.f32.partialorder %v1657_v25, 0.0  ;;  %v1779_v52 = vmul.f32 0.01, %v1657_v25  ;;  %3084 = vmatpush1.msra.mxu0 %v6304_v46 }
 0x1db   : > { %v6292_v18 = vsel %vm1890_vm13, %v1850_v7, %v1915_v21  ;;  %3085 = vmatprep.subr.mxu0 %v7600_v1 }
 0x1dc   : > { %7669 = vst [vmem:[#allocation25_spill] sm:$0xff] %v6292_v18  ;;  %v1811_v63 = vsel %vm1747_vm15, %v1657_v25, %v1779_v52  ;;  %v4623_v12 = vpack.i.bf16 %v6295_v3, %v6292_v18  ;;  %v2121_v8 = vrot.slane %v6292_v18, 1  ;;  %v2159_v18 = vrot.slane %v6003_v17, 2 }
 0x1dd   : > { %v1916_v57 = vrot.slane %v1811_v63, 7 }
 0x1de   : > { %4624 = vrot.lane.b32.xlu0 %v4623_v12, %s4836_s16  ;;  %v1995_v12 = vrot.slane %v1811_v63, 5 }
 0x1df   : > { %v6307_v7 = vsel %vm1890_vm13, %v1915_v21, %v1916_v57  ;;  %v6321_v21 = vld [vmem:[%s7581_s3 + $0x1f8] sm:$0xff] }
 0x1e0   : > { %7671 = vst [vmem:[#allocation27_spill] sm:$0xff] %v6307_v7  ;;  %v1661_v52 = vpop.f32.mrf.mxu0  ;;  %v4628_v25 = vpack.i.bf16 %v6310_v37, %v6307_v7  ;;  %3086 = vmatpush2.msra.mxu0 %v6321_v21  ;;  %v2122_v37 = vrot.slane %v6307_v7, 1  ;;  %v6327_v63 = vsel %vm1890_vm13, %v1916_v57, %v1995_v12 }
 0x1e1   : > { %v1662_v3 = vadd.f32 %v5935_v36, %v1661_v52  ;;  %3087 = vmatprep.subr.mxu0 %v7600_v1  ;;  %7673 = vst [vmem:[#allocation29_spill] sm:$0xff] %v6327_v63  ;;  %v2124_v57 = vrot.slane %v6327_v63, 1 }
 0x1e2   : > { %v1663_v44 = vpop.f32.mrf.mxu0  ;;  %4629 = vrot.lane.b32.xlu1 %v4628_v25, %s4836_s16  ;;  %3088 = vmatpush2.msra.mxu0 %v6334_v60  ;;  %v6342_v12 = vsel %vm325_vm0, %v2121_v8, %v2122_v37 }
 0x1e3   : > { %vm1748_vm2 = vcmp.ge.f32.partialorder %v1662_v3, 0.0  ;;  %v1780_v62 = vmul.f32 0.01, %v1662_v3  ;;  %7675 = vst [vmem:[#allocation31_spill] sm:$0xff] %v6342_v12  ;;  %3089 = vmatprep.subr.mxu0 %v7600_v1 }
 0x1e4   : > { %v1666_v61 = vpop.f32.mrf.mxu0 }
 0x1e5   : > { %v1812_v44 = vsel %vm1748_vm2, %v1662_v3, %v1780_v62  ;;  %v1667_v52 = vadd.f32 %v5935_v36, %v1666_v61  ;;  %v6350_v61 = vld [vmem:[%s7581_s3 + $0x1e8] sm:$0xff] }
 0x1e6   : > { %v1851_v25 = vrot.slane %v1812_v44, 1  ;;  %v1918_v38 = vrot.slane %v1812_v44, 7  ;;  %v1668_v56 = vpop.f32.mrf.mxu0  ;;  %3090 = vmatpush2.msra.mxu0 %v6350_v61 }
 0x1e7   : > { %vm1749_vm3 = vcmp.ge.f32.partialorder %v1667_v52, 0.0  ;;  %v1781_v6 = vmul.f32 0.01, %v1667_v52  ;;  %3091 = vmatprep.subr.mxu0 %v7600_v1 }
 0x1e8   : > { %v6339_v3 = vsel %vm1890_vm13, %v1851_v25, %v1918_v38  ;;  %v6366_v25 = vld [vmem:[%s7581_s3 + $0x1e0] sm:$0xff] }
 0x1e9   : > { %7674 = vst [vmem:[#allocation30_spill] sm:$0xff] %v6339_v3  ;;  %v1813_v56 = vsel %vm1749_vm3, %v1667_v52, %v1781_v6  ;;  %v4633_v62 = vpack.i.bf16 %v6342_v12, %v6339_v3  ;;  %v6359_v6 = vsel %vm325_vm0, %v2122_v37, %v2124_v57  ;;  %3092 = vmatpush2.msra.mxu0 %v6366_v25  ;;  %v6375_v57 = vld [vmem:[%s7581_s3 + $0x1d8] sm:$0xff]  ;;  %v2126_v49 = vrot.slane %v6339_v3, 1 }
 0x1ea   : > { %v1919_v44 = vrot.slane %v1813_v56, 7  ;;  %7677 = vst [vmem:[#allocation33_spill] sm:$0xff] %v6359_v6  ;;  %3093 = vmatprep.subr.mxu0 %v7600_v1 }
 0x1eb   : > { %4634 = vrot.lane.b32.xlu0 %v4633_v62, %s4836_s16  ;;  %3094 = vmatpush2.msra.mxu0 %v6375_v57 }
 0x1ec   : > { %v6356_v8 = vsel %vm1890_vm13, %v1918_v38, %v1919_v44  ;;  %v1996_v38 = vrot.slane %v1813_v56, 5  ;;  %v7678_v56 = vmov 0.0  }
 0x1ed   : > { %7676 = vst [vmem:[#allocation32_spill] sm:$0xff] %v6356_v8  ;;  %v4638_v52 = vpack.i.bf16 %v6359_v6, %v6356_v8  ;;  %v2127_v1 = vrot.slane %v6356_v8, 1  ;;  %3095 = vmatprep.subr.mxu0 %v7678_v56  ;;  %v6391_v8 = vld [vmem:[%s7581_s3 + $0x1d0] sm:$0xff] }
 0x1ee   : > { %3096 = vmatpush2.msra.mxu0 %v6391_v8 }
 0x1ef   : > { %v1671_v12 = vpop.f32.mrf.mxu0  ;;  %4639 = vrot.lane.b32.xlu1 %v4638_v52, %s4836_s16  ;;  %v2157_v52 = vrot.slane %v6000_v10, 2  ;;  %3097 = vmatprep.subr.mxu0 %v7678_v56 }
 0x1f0   : > { %v1672_v62 = vadd.f32 %v5935_v36, %v1671_v12  ;;  %v6383_v12 = vsel %vm1890_vm13, %v1919_v44, %v1996_v38 }
 0x1f1   : > { %v1673_v37 = vpop.f32.mrf.mxu0  ;;  %7679 = vst [vmem:[#allocation34_spill] sm:$0xff] %v6383_v12 }
 0x1f2   : > { %vm1750_vm4 = vcmp.ge.f32.partialorder %v1672_v62, 0.0  ;;  %v1782_v6 = vmul.f32 0.01, %v1672_v62 }
 0x1f3   : > { %v1676_v9 = vpop.f32.mrf.mxu0 }
 0x1f4   : > { %v1814_v37 = vsel %vm1750_vm4, %v1672_v62, %v1782_v6  ;;  %v1677_v45 = vadd.f32 %v5935_v36, %v1676_v9  ;;  %v4555_v35 = vpop.permute.xlu0 %4554  ;;  %v4550_v63 = vpop.permute.xlu1 %4549  ;;  %v2129_v9 = vrot.slane %v6383_v12, 1  ;;  %v6402_v62 = vsel %vm325_vm0, %v2126_v49, %v2127_v1 }
 0x1f5   : > { %v1852_v7 = vrot.slane %v1814_v37, 1  ;;  %v1921_v32 = vrot.slane %v1814_v37, 7  ;;  %v4556_v13 = vunpack.i.l.bf16 %v4555_v35  ;;  %v1678_v41 = vpop.f32.mrf.mxu0  ;;  %v4552_v6 = vunpack.i.h.bf16 %v4550_v63  ;;  %7680 = vst [vmem:[#allocation35_spill] sm:$0xff] %v6402_v62 }
 0x1f6   : > { %vm1751_vm6 = vcmp.ge.f32.partialorder %v1677_v45, 0.0  ;;  %v1783_v44 = vmul.f32 0.01, %v1677_v45  ;;  %v4551_v38 = vunpack.i.l.bf16 %v4550_v63  ;;  %v6399_v41 = vsel %vm406_vm1, %v2156_v33, %v2157_v52 }
 0x1f7   : > { %v6396_v17 = vsel %vm1890_vm13, %v1852_v7, %v1921_v32  ;;  %v6409_v63 = vsel %vm1284_vm5, %v5990_v59, %v4552_v6  ;;  %v4557_v33 = vunpack.i.h.bf16 %v4555_v35  ;;  %v6415_v49 = vsel %vm406_vm1, %v2157_v52, %v2159_v18  ;;  %v6425_v35 = vld [vmem:[%s7581_s3 + $0x1c8] sm:$0xff] }
 0x1f8   : > { %v1815_v37 = vsel %vm1751_vm6, %v1677_v45, %v1783_v44  ;;  %v2623_v3 = vsel %vm1284_vm5, %v6399_v41, %v4551_v38  ;;  %v4560_v12 = vpop.permute.xlu1 %4559  ;;  %v4643_v7 = vpack.i.bf16 %v6402_v62, %v6396_v17  ;;  %3117 = vmatprep.mubr.f32.mxu0 %v6409_v63  ;;  %v2162_v45 = vrot.slane %v5994_v22, 2  ;;  %v4565_v18 = vpop.permute.xlu0 %4564  ;;  %3098 = vmatpush2.msra.mxu0 %v6425_v35 }
 0x1f9   : > { %v1922_v24 = vrot.slane %v1815_v37, 7  ;;  %2892 = vmatprep.mubr.f32.mxu1 %v2623_v3  ;;  %v4561_v44 = vunpack.i.l.bf16 %v4560_v12  ;;  %v2624_v59 = vsel %vm1284_vm5, %v6415_v49, %v4556_v13  ;;  %v6431_v52 = vsel %vm325_vm0, %v2127_v1, %v2129_v9  ;;  %3099 = vmatprep.subr.mxu0 %v7678_v56 }
 0x1fa   : > { %2893 = vmatmul.mubr.f32.vlgmr.msra.gmra.mxu1 %v6409_v63  ;;  %4644 = vrot.lane.b32.xlu0 %v4643_v7, %s4836_s16  ;;  %7681 = vst [vmem:[#allocation36_spill] sm:$0xff] %v6431_v52  ;;  %v2161_v6 = vrot.slane %v6009_v48, 2  ;;  %v1997_v38 = vrot.slane %v1815_v37, 5  ;;  %v2164_v62 = vrot.slane %v5997_v14, 2  ;;  %v6442_v1 = vsel %vm1284_vm5, %v6000_v10, %v4557_v33  ;;  %v6456_v10 = vld [vmem:[%s7581_s3 + $0x1c0] sm:$0xff] }
 0x1fb   : > { %v6428_v3 = vsel %vm1890_vm13, %v1921_v32, %v1922_v24  ;;  %2897 = vmatprep.mubr.f32.mxu1 %v2624_v59  ;;  %3921 = vmatpush1.msra.mxu1 %v6094_v42  ;;  %v4562_v32 = vunpack.i.h.bf16 %v4560_v12  ;;  %7682 = vst [vmem:[#allocation37_spill] sm:$0xff] %v6442_v1  ;;  %v4566_v37 = vunpack.i.l.bf16 %v4565_v18  ;;  %v4567_v59 = vunpack.i.h.bf16 %v4565_v18 }
 0x1fc   : > { %v1681_v7 = vpop.f32.mrf.mxu0  ;;  %v4648_v13 = vpack.i.bf16 %v6431_v52, %v6428_v3  ;;  %v6445_v9 = vsel %vm406_vm1, %v2161_v6, %v2162_v45  ;;  %3890 = vmatprep.subr.mxu1 %v7678_v56  ;;  %v6460_v33 = vsel %vm1890_vm13, %v1922_v24, %v1997_v38  ;;  %3100 = vmatpush2.msra.mxu0 %v6456_v10  ;;  %v2131_v24 = vrot.slane %v6396_v17, 1 }
 0x1fd   : > { %v1682_v28 = vadd.f32 %v5935_v36, %v1681_v7  ;;  %v2625_v42 = vsel %vm1284_vm5, %v6445_v9, %v4561_v44  ;;  %3922 = vmatpush1.msra.mxu1 %v6101_v11  ;;  %v2132_v44 = vrot.slane %v6428_v3, 1  ;;  %v2595_v11 = vsel %vm1284_vm5, %v6009_v48, %v4562_v32  ;;  %3101 = vmatprep.subr.mxu0 %v7678_v56 }
 0x1fe   : > { %2898 = vmatmul.mubr.f32.gmra.mxu1 %v6442_v1  ;;  %v1683_v14 = vpop.f32.mrf.mxu0  ;;  %4649 = vrot.lane.b32.xlu1 %v4648_v13, %s4836_s16  ;;  %v6463_v13 = vsel %vm406_vm1, %v2162_v45, %v2164_v62  ;;  %v6477_v62 = vld [vmem:[%s7581_s3 + $0x1b8] sm:$0xff] }
 0x1ff   : > { %vm1752_vm7 = vcmp.ge.f32.partialorder %v1682_v28, 0.0  ;;  %v1784_v12 = vmul.f32 0.01, %v1682_v28  ;;  %2902 = vmatprep.mubr.f32.mxu1 %v2625_v42  ;;  %3891 = vmatprep.subr.mxu1 %v7678_v56 }
 0x200   : > { %v1686_v6 = vpop.f32.mrf.mxu0  ;;  %v4570_v7 = vpop.permute.xlu1 %4569  ;;  %3923 = vmatpush1.msra.mxu1 %v6132_v16  ;;  %v2134_v16 = vrot.slane %v6460_v33, 1  ;;  %3102 = vmatpush2.msra.mxu0 %v6477_v62 }
 0x201   : > { %v1816_v14 = vsel %vm1752_vm7, %v1682_v28, %v1784_v12  ;;  %v1687_v42 = vadd.f32 %v5935_v36, %v1686_v6  ;;  %v4571_v38 = vunpack.i.l.bf16 %v4570_v7  ;;  %v2626_v36 = vsel %vm1284_vm5, %v6463_v13, %v4566_v37  ;;  %3892 = vmatprep.subr.mxu1 %v7678_v56  ;;  %3103 = vmatprep.subr.mxu0 %v7678_v56 }
 0x202   : > { %v1853_v45 = vrot.slane %v1816_v14, 1  ;;  %v1924_v18 = vrot.slane %v1816_v14, 7  ;;  %2903 = vmatmul.mubr.f32.gmra.mxu1 %v2595_v11  ;;  %v1688_v28 = vpop.f32.mrf.mxu0  ;;  %v6488_v12 = vsel %vm325_vm0, %v2131_v24, %v2132_v44  ;;  %v2596_v6 = vsel %vm1284_vm5, %v5994_v22, %v4567_v59 }
 0x203   : > { %vm1753_vm8 = vcmp.ge.f32.partialorder %v1687_v42, 0.0  ;;  %v1785_v48 = vmul.f32 0.01, %v1687_v42  ;;  %2907 = vmatprep.mubr.f32.mxu1 %v2626_v36  ;;  %3924 = vmatpush1.msra.mxu1 %v6151_v40  ;;  %7683 = vst [vmem:[#allocation38_spill] sm:$0xff] %v6488_v12  ;;  %v6501_v40 = vld [vmem:[%s7581_s3 + $0x1b0] sm:$0xff]  ;;  %v4572_v24 = vunpack.i.h.bf16 %v4570_v7  ;;  %v2167_v22 = vrot.slane %v6044_v47, 2 }
 0x204   : > { %v6485_v32 = vsel %vm1890_vm13, %v1853_v45, %v1924_v18  ;;  %3893 = vmatprep.subr.mxu1 %v7678_v56  ;;  %v6517_v7 = vsel %vm325_vm0, %v2132_v44, %v2134_v16  ;;  %3104 = vmatpush2.msra.mxu0 %v6501_v40  ;;  %v2166_v36 = vrot.slane %v6041_v55, 2  ;;  %v2169_v16 = vrot.slane %v6052_v26, 2 }
 0x205   : > { %v1817_v37 = vsel %vm1753_vm8, %v1687_v42, %v1785_v48  ;;  %v4653_v14 = vpack.i.bf16 %v6488_v12, %v6485_v32  ;;  %3925 = vmatpush1.msra.mxu1 %v6159_v19  ;;  %v2627_v42 = vsel %vm1284_vm5, %v6399_v41, %v4571_v38  ;;  %v6511_v19 = vld [vmem:[%s7581_s3 + $0x1a8] sm:$0xff]  ;;  %7684 = vst [vmem:[#allocation39_spill] sm:$0xff] %v6517_v7 }
 0x206   : > { %v1925_v11 = vrot.slane %v1817_v37, 7  ;;  %2908 = vmatmul.mubr.f32.gmra.mxu1 %v2596_v6  ;;  %3894 = vmatprep.subr.mxu1 %v7678_v56  ;;  %v1998_v45 = vrot.slane %v1817_v37, 5  ;;  %v2628_v44 = vsel %vm1284_vm5, %v6415_v49, %v4572_v24  ;;  %v6532_v48 = vsel %vm406_vm1, %v2166_v36, %v2167_v22  ;;  %v6538_v37 = vld [vmem:[%s7581_s3 + $0x1a0] sm:$0xff] }
 0x207   : > { %2912 = vmatprep.mubr.f32.mxu1 %v2627_v42  ;;  %4654 = vrot.lane.b32.xlu0 %v4653_v14, %s4836_s16 }
 0x208   : > { %v6514_v59 = vsel %vm1890_vm13, %v1924_v18, %v1925_v11  ;;  %3926 = vmatpush1.msra.mxu1 %v6164_v20  ;;  %3105 = vmatprep.subr.mxu0 %v7678_v56  ;;  %v6550_v24 = vsel %vm1890_vm13, %v1925_v11, %v1998_v45  ;;  %v6558_v11 = vsel %vm406_vm1, %v2167_v22, %v2169_v16  ;;  %v2136_v45 = vrot.slane %v6485_v32, 1 }
 0x209   : > { %v4575_v38 = vpop.permute.xlu0 %4574  ;;  %v4658_v28 = vpack.i.bf16 %v6517_v7, %v6514_v59  ;;  %3895 = vmatprep.subr.mxu1 %v7678_v56  ;;  %3106 = vmatpush2.msra.mxu0 %v6511_v19 }
 0x20a   : > { %v4576_v18 = vunpack.i.l.bf16 %v4575_v38  ;;  %2913 = vmatmul.mubr.f32.gmra.mxu1 %v6409_v63  ;;  %v6543_v63 = vld [vmem:[%s7580_s2] ss:$0 sm:$0xff]  ;;  %v4577_v26 = vunpack.i.h.bf16 %v4575_v38  ;;  %3107 = vmatprep.subr.mxu0 %v7678_v56  ;;  %v2139_v38 = vrot.slane %v6550_v24, 1 }
 0x20b   : > { %2917 = vmatprep.mubr.f32.mxu1 %v2628_v44  ;;  %v1691_v20 = vpop.f32.mrf.mxu0  ;;  %4659 = vrot.lane.b32.xlu1 %v4658_v28, %s4836_s16 }
 0x20c   : > { %v1692_v6 = vadd.f32 %v6543_v63, %v1691_v20  ;;  %v2629_v14 = vsel %vm1284_vm5, %v6532_v48, %v4576_v18  ;;  %3927 = vmatpush1.msra.mxu1 %v6189_v34  ;;  %3108 = vmatpush2.msra.mxu0 %v6538_v37  ;;  %v2137_v18 = vrot.slane %v6514_v59, 1  ;;  %v6569_v22 = vsel %vm1284_vm5, %v6041_v55, %v4577_v26  ;;  %v6594_v26 = vld [vmem:[%s7581_s3 + $0x190] sm:$0xff] }
 0x20d   : > { %v1693_v42 = vpop.f32.mrf.mxu0  ;;  %v4580_v28 = vpop.permute.xlu1 %4579  ;;  %3896 = vmatprep.subr.mxu1 %v7678_v56  ;;  %3109 = vmatprep.subr.mxu0 %v7678_v56 }
 0x20e   : > { %vm1754_vm9 = vcmp.ge.f32.partialorder %v1692_v6, 0.0  ;;  %v1786_v36 = vmul.f32 0.01, %v1692_v6  ;;  %v4581_v44 = vunpack.i.l.bf16 %v4580_v28  ;;  %2918 = vmatmul.mubr.f32.gmra.mxu1 %v6442_v1  ;;  %v4582_v52 = vunpack.i.h.bf16 %v4580_v28 }
 0x20f   : > { %2922 = vmatprep.mubr.f32.mxu1 %v2629_v14  ;;  %v1696_v34 = vpop.f32.mrf.mxu0  ;;  %3928 = vmatpush1.msra.mxu1 %v6205_v0  ;;  %v6576_v0 = vld [vmem:[%s7581_s3 + $0x198] sm:$0xff]  ;;  %v6584_v55 = vsel %vm325_vm0, %v2136_v45, %v2137_v18  ;;  %v2171_v45 = vrot.slane %v6058_v23, 2 }
 0x210   : > { %v1818_v20 = vsel %vm1754_vm9, %v1692_v6, %v1786_v36  ;;  %v1697_v42 = vadd.f32 %v6543_v63, %v1696_v34  ;;  %v2630_v7 = vsel %vm1284_vm5, %v6558_v11, %v4581_v44  ;;  %3897 = vmatprep.subr.mxu1 %v7678_v56  ;;  %7685 = vst [vmem:[#allocation40_spill] sm:$0xff] %v6584_v55  ;;  %v2172_v36 = vrot.slane %v6067_v50, 2  ;;  %v6611_v44 = vld [vmem:[%s7581_s3 + $0x188] sm:$0xff] }
 0x211   : > { %v1854_v12 = vrot.slane %v1818_v20, 1  ;;  %v1927_v14 = vrot.slane %v1818_v20, 7  ;;  %v1698_v1 = vpop.f32.mrf.mxu0  ;;  %3929 = vmatpush1.msra.mxu1 %v6210_v5  ;;  %3110 = vmatpush2.msra.mxu0 %v6576_v0 }
 0x212   : > { %vm1755_vm10 = vcmp.ge.f32.partialorder %v1697_v42, 0.0  ;;  %v1787_v16 = vmul.f32 0.01, %v1697_v42  ;;  %2923 = vmatmul.mubr.f32.gmra.mxu1 %v6569_v22  ;;  %3898 = vmatprep.subr.mxu1 %v7678_v56 }
 0x213   : > { %v6581_v1 = vsel %vm1890_vm13, %v1854_v12, %v1927_v14  ;;  %2927 = vmatprep.mubr.f32.mxu1 %v2630_v7  ;;  %3930 = vmatpush1.msra.mxu1 %v6218_v54  ;;  %v6597_v12 = vsel %vm325_vm0, %v2137_v18, %v2139_v38  ;;  %v6601_v54 = vsel %vm1284_vm5, %v6044_v47, %v4582_v52  ;;  %v2174_v38 = vrot.slane %v6078_v27, 2 }
 0x214   : > { %v1819_v5 = vsel %vm1755_vm10, %v1697_v42, %v1787_v16  ;;  %v4663_v6 = vpack.i.bf16 %v6584_v55, %v6581_v1  ;;  %3899 = vmatprep.subr.mxu1 %v7678_v56  ;;  %7686 = vst [vmem:[#allocation41_spill] sm:$0xff] %v6597_v12  ;;  %3111 = vmatprep.subr.mxu0 %v7678_v56 }
 0x215   : > { %v1928_v7 = vrot.slane %v1819_v5, 7  ;;  %3931 = vmatpush1.msra.mxu1 %v6233_v43  ;;  %v1999_v28 = vrot.slane %v1819_v5, 5  ;;  %3112 = vmatpush2.msra.mxu0 %v6594_v26  ;;  %v4673_v47 = vpack.i.bf16 %v6463_v13, %v6597_v12  ;;  %v6635_v27 = vsel %vm406_vm1, %v2171_v45, %v2172_v36 }
 0x216   : > { %2928 = vmatmul.mubr.f32.gmra.mxu1 %v6601_v54  ;;  %4664 = vrot.lane.b32.xlu0 %v4663_v6, %s4836_s16 }
 0x217   : > { %v6614_v18 = vsel %vm1890_vm13, %v1927_v14, %v1928_v7  ;;  %3900 = vmatprep.subr.mxu1 %v7678_v56  ;;  %3113 = vmatprep.subr.mxu0 %v7678_v56  ;;  %v6630_v13 = vsel %vm1890_vm13, %v1928_v7, %v1999_v28 }
 0x218   : > { %v1701_v43 = vpop.f32.mrf.mxu0  ;;  %v4585_v52 = vpop.permute.xlu0 %4584  ;;  %v4668_v34 = vpack.i.bf16 %v6614_v18, %v6445_v9  ;;  %3932 = vmatpush1.msra.mxu1 %v6249_v2  ;;  %3114 = vmatpush2.msra.mxu0 %v6611_v44  ;;  %v6640_v2 = vld [vmem:[%s7581_s3 + $0x180] sm:$0xff] }
 0x219   : > { %v1702_v20 = vadd.f32 %v6543_v63, %v1701_v43  ;;  %v4587_v42 = vunpack.i.h.bf16 %v4585_v52  ;;  %v4586_v14 = vunpack.i.l.bf16 %v4585_v52  ;;  %3901 = vmatprep.subr.mxu1 %v7678_v56  ;;  %3115 = vmatprep.subr.mxu0 %v7678_v56  ;;  %v2142_v43 = vrot.slane %v6614_v18, 1 }
 0x21a   : > { %v1703_v9 = vpop.f32.mrf.mxu0  ;;  %4674 = vrot.lane.b32.xlu0 %v4673_v47, %s4836_s16  ;;  %4669 = vrot.lane.b32.xlu1 %v4668_v34, %s4836_s16  ;;  %v6651_v47 = vsel %vm406_vm1, %v2172_v36, %v2174_v38  ;;  %v2141_v36 = vrot.slane %v6581_v1, 1 }
 0x21b   : > { %vm1756_vm11 = vcmp.ge.f32.partialorder %v1702_v20, 0.0  ;;  %v1788_v16 = vmul.f32 0.01, %v1702_v20  ;;  %v2631_v5 = vsel %vm1284_vm5, %v6635_v27, %v4586_v14  ;;  %v6646_v6 = vsel %vm1284_vm5, %v6058_v23, %v4587_v42  ;;  %3933 = vmatpush1.msra.mxu1 %v6265_v51  ;;  %3116 = vmatpush2.msra.mxu0 %v6640_v2 }
 0x21c   : > { %v1706_v7 = vpop.f32.mrf.mxu0  ;;  %v4590_v28 = vpop.permute.xlu1 %4589  ;;  %2932 = vmatprep.mubr.f32.mxu1 %v2631_v5  ;;  %3902 = vmatprep.subr.mxu1 %v7678_v56  ;;  %v2144_v51 = vrot.slane %v6630_v13, 1 }
 0x21d   : > { %v1820_v52 = vsel %vm1756_vm11, %v1702_v20, %v1788_v16  ;;  %v1707_v34 = vadd.f32 %v6543_v63, %v1706_v7  ;;  %v4592_v45 = vunpack.i.h.bf16 %v4590_v28  ;;  %v4591_v23 = vunpack.i.l.bf16 %v4590_v28  ;;  %2933 = vmatmul.mubr.f32.gmra.mxu1 %v6646_v6 }
 0x21e   : > { %v1855_v42 = vrot.slane %v1820_v52, 1  ;;  %v1930_v14 = vrot.slane %v1820_v52, 7  ;;  %v1708_v9 = vpop.f32.mrf.mxu0  ;;  %3934 = vmatpush1.msra.mxu1 %v6274_v53  ;;  %v6672_v7 = vsel %vm325_vm0, %v2141_v36, %v2142_v43  ;;  %v6680_v52 = vsel %vm325_vm0, %v2142_v43, %v2144_v51 }
 0x21f   : > { %vm1757_vm12 = vcmp.ge.f32.partialorder %v1707_v34, 0.0  ;;  %v1789_v38 = vmul.f32 0.01, %v1707_v34  ;;  %v2632_v20 = vsel %vm1284_vm5, %v6651_v47, %v4591_v23  ;;  %v6665_v16 = vsel %vm1284_vm5, %v6067_v50, %v4592_v45  ;;  %3903 = vmatprep.subr.mxu1 %v7678_v56  ;;  %7687 = vst [vmem:[#allocation42_spill] sm:$0xff] %v6672_v7  ;;  %7688 = vst [vmem:[#allocation43_spill] sm:$0xff] %v6680_v52 }
 0x220   : > { %v6669_v5 = vsel %vm1890_vm13, %v1855_v42, %v1930_v14  ;;  %2937 = vmatprep.mubr.f32.mxu1 %v2632_v20  ;;  %3935 = vmatpush1.msra.mxu1 %v6287_v4  ;;  %v2177_v45 = vrot.slane %v6104_v15, 2  ;;  %v4688_v43 = vpack.i.bf16 %v6415_v49, %v6680_v52  ;;  %v2179_v36 = vrot.slane %v6118_v30, 2 }
 0x221   : > { %v1821_v53 = vsel %vm1757_vm12, %v1707_v34, %v1789_v38  ;;  %2938 = vmatmul.mubr.f32.gmra.mxu1 %v6665_v16  ;;  %v4678_v28 = vpack.i.bf16 %v6672_v7, %v6669_v5  ;;  %3904 = vmatprep.subr.mxu1 %v7678_v56  ;;  %v7708_v7 = vld [vmem:[#allocation32_spill] sm:$0xff] }
 0x222   : > { %v1931_v50 = vrot.slane %v1821_v53, 7  ;;  %3936 = vmatpush1.msra.mxu1 %v6304_v46  ;;  %v2000_v34 = vrot.slane %v1821_v53, 5  ;;  %v2176_v46 = vrot.slane %v6084_v58, 2  ;;  %v2202_v12 = vrot.slane %v7708_v7, 2 }
 0x223   : > { %4679 = vrot.lane.b32.xlu1 %v4678_v28, %s4836_s16  ;;  %3905 = vmatprep.subr.mxu1 %v7678_v56 }
 0x224   : > { %v6687_v4 = vsel %vm1890_vm13, %v1930_v14, %v1931_v50  ;;  %3937 = vmatpush2.msra.mxu1 %v6321_v21  ;;  %v6700_v21 = vsel %vm406_vm1, %v2176_v46, %v2177_v45  ;;  %v6718_v46 = vsel %vm406_vm1, %v2177_v45, %v2179_v36 }
 0x225   : > { %v4595_v23 = vpop.permute.xlu0 %4594  ;;  %v4683_v42 = vpack.i.bf16 %v6687_v4, %v6399_v41  ;;  %3906 = vmatprep.subr.mxu1 %v7678_v56  ;;  %7689 = vst [vmem:[#allocation44_spill] sm:$0xff] %v6718_v46 }
 0x226   : > { %v4597_v51 = vunpack.i.h.bf16 %v4595_v23  ;;  %v4596_v9 = vunpack.i.l.bf16 %v4595_v23  ;;  %3938 = vmatpush2.msra.mxu1 %v6334_v60  ;;  %v6712_v60 = vsel %vm1890_vm13, %v1931_v50, %v2000_v34  ;;  %v2147_v50 = vrot.slane %v6687_v4, 1 }
 0x227   : > { %v1711_v14 = vpop.f32.mrf.mxu0  ;;  %4684 = vrot.lane.b32.xlu0 %v4683_v42, %s4836_s16  ;;  %4689 = vrot.lane.b32.xlu1 %v4688_v43, %s4836_s16 }
 0x228   : > { %v1712_v38 = vadd.f32 %v6543_v63, %v1711_v14  ;;  %v2633_v20 = vsel %vm1284_vm5, %v6700_v21, %v4596_v9  ;;  %v6708_v53 = vsel %vm1284_vm5, %v6084_v58, %v4597_v51  ;;  %3907 = vmatprep.subr.mxu1 %v7678_v56  ;;  %v2149_v14 = vrot.slane %v6712_v60, 1 }
 0x229   : > { %v1713_v28 = vpop.f32.mrf.mxu0  ;;  %v4600_v23 = vpop.permute.xlu1 %4599  ;;  %2942 = vmatprep.mubr.f32.mxu1 %v2633_v20  ;;  %3939 = vmatpush2.msra.mxu1 %v6350_v61 }
 0x22a   : > { %vm1758_vm14 = vcmp.ge.f32.partialorder %v1712_v38, 0.0  ;;  %v1790_v30 = vmul.f32 0.01, %v1712_v38  ;;  %v4602_v42 = vunpack.i.h.bf16 %v4600_v23  ;;  %v4601_v43 = vunpack.i.l.bf16 %v4600_v23  ;;  %2943 = vmatmul.mubr.f32.gmra.mxu1 %v6708_v53  ;;  %3908 = vmatprep.subr.mxu1 %v7678_v56 }
 0x22b   : > { %v1716_v58 = vpop.f32.mrf.mxu0  ;;  %3940 = vmatpush2.msra.mxu1 %v6366_v25  ;;  %v2146_v25 = vrot.slane %v6669_v5, 1 }
 0x22c   : > { %v1822_v34 = vsel %vm1758_vm14, %v1712_v38, %v1790_v30  ;;  %v1717_v51 = vadd.f32 %v6543_v63, %v1716_v58  ;;  %v2634_v61 = vsel %vm1284_vm5, %v6718_v46, %v4601_v43  ;;  %v6727_v9 = vsel %vm1284_vm5, %v6104_v15, %v4602_v42  ;;  %3909 = vmatprep.subr.mxu1 %v7678_v56 }
 0x22d   : > { %v1856_v45 = vrot.slane %v1822_v34, 1  ;;  %v1933_v36 = vrot.slane %v1822_v34, 7  ;;  %v1718_v20 = vpop.f32.mrf.mxu0  ;;  %2947 = vmatprep.mubr.f32.mxu1 %v2634_v61  ;;  %3941 = vmatpush2.msra.mxu1 %v6375_v57  ;;  %v6739_v28 = vsel %vm325_vm0, %v2146_v25, %v2147_v50  ;;  %v6746_v43 = vsel %vm325_vm0, %v2147_v50, %v2149_v14 }
 0x22e   : > { %vm1759_vm15 = vcmp.ge.f32.partialorder %v1717_v51, 0.0  ;;  %v1791_v38 = vmul.f32 0.01, %v1717_v51  ;;  %2948 = vmatmul.mubr.f32.gmra.mxu1 %v6727_v9  ;;  %3910 = vmatprep.subr.mxu1 %v7678_v56  ;;  %7690 = vst [vmem:[#allocation45_spill] sm:$0xff] %v6739_v28  ;;  %7691 = vst [vmem:[#allocation46_spill] sm:$0xff] %v6746_v43  ;;  %v2182_v34 = vrot.slane %v6140_v39, 2 }
 0x22f   : > { %v6736_v15 = vsel %vm1890_vm13, %v1856_v45, %v1933_v36  ;;  %3942 = vmatpush2.msra.mxu1 %v6391_v8  ;;  %v2181_v20 = vrot.slane %v6124_v31, 2 }
 0x230   : > { %v1823_v23 = vsel %vm1759_vm15, %v1717_v51, %v1791_v38  ;;  %v4693_v30 = vpack.i.bf16 %v6739_v28, %v6736_v15  ;;  %3911 = vmatprep.subr.mxu1 %v7678_v56 }
 0x231   : > { %v1934_v57 = vrot.slane %v1823_v23, 7  ;;  %v2001_v42 = vrot.slane %v1823_v23, 5  ;;  %3943 = vmatpush2.msra.mxu1 %v6425_v35  ;;  %v4703_v35 = vpack.i.bf16 %v6558_v11, %v6746_v43  ;;  %v2184_v23 = vrot.slane %v6169_v29, 2 }
 0x232   : > { %v1721_v58 = vpop.f32.mrf.mxu0  ;;  %4694 = vrot.lane.b32.xlu0 %v4693_v30, %s4836_s16  ;;  %3912 = vmatprep.subr.mxu1 %v7678_v56  ;;  %v2151_v29 = vrot.slane %v6736_v15, 1 }
 0x233   : > { %v6753_v8 = vsel %vm1890_vm13, %v1933_v36, %v1934_v57  ;;  %v1722_v51 = vadd.f32 %v6543_v63, %v1721_v58  ;;  %3944 = vmatpush2.msra.mxu1 %v6456_v10  ;;  %v6758_v61 = vsel %vm1890_vm13, %v1934_v57, %v2001_v42  ;;  %v6770_v10 = vsel %vm406_vm1, %v2181_v20, %v2182_v34 }
 0x234   : > { %v1723_v50 = vpop.f32.mrf.mxu0  ;;  %v4605_v14 = vpop.permute.xlu0 %4604  ;;  %v4698_v45 = vpack.i.bf16 %v6753_v8, %v6532_v48  ;;  %3913 = vmatprep.subr.mxu1 %v7678_v56  ;;  %7692 = vst [vmem:[#allocation47_spill] sm:$0xff] %v6770_v10  ;;  %v2152_v30 = vrot.slane %v6753_v8, 1 }
 0x235   : > { %vm1760_vm2 = vcmp.ge.f32.partialorder %v1722_v51, 0.0  ;;  %v1792_v36 = vmul.f32 0.01, %v1722_v51  ;;  %v4607_v25 = vunpack.i.h.bf16 %v4605_v14  ;;  %v4606_v38 = vunpack.i.l.bf16 %v4605_v14  ;;  %3945 = vmatpush2.msra.mxu1 %v6477_v62 }
 0x236   : > { %4704 = vrot.lane.b32.xlu0 %v4703_v35, %s4836_s16  ;;  %4699 = vrot.lane.b32.xlu1 %v4698_v45, %s4836_s16  ;;  %v2154_v62 = vrot.slane %v6758_v61, 1 }
 0x237   : > { %v1824_v57 = vsel %vm1760_vm2, %v1722_v51, %v1792_v36  ;;  %v2635_v42 = vsel %vm1284_vm5, %v6770_v10, %v4606_v38  ;;  %v6778_v58 = vsel %vm1284_vm5, %v6124_v31, %v4607_v25  ;;  %3914 = vmatprep.subr.mxu1 %v7678_v56  ;;  %v6791_v25 = vsel %vm406_vm1, %v2182_v34, %v2184_v23 }
 0x238   : > { %v1857_v50 = vrot.slane %v1824_v57, 1  ;;  %v1936_v14 = vrot.slane %v1824_v57, 7  ;;  %v4610_v35 = vpop.permute.xlu1 %4609  ;;  %2952 = vmatprep.mubr.f32.mxu1 %v2635_v42  ;;  %3946 = vmatpush2.msra.mxu1 %v6501_v40  ;;  %7693 = vst [vmem:[#allocation48_spill] sm:$0xff] %v6791_v25  ;;  %v6794_v38 = vsel %vm325_vm0, %v2151_v29, %v2152_v30  ;;  %v6807_v34 = vsel %vm325_vm0, %v2152_v30, %v2154_v62  ;;  %v7694_v30 = vld [vmem:[#allocation17_spill] sm:$0xff] }
 0x239   : > { %v4612_v51 = vunpack.i.h.bf16 %v4610_v35  ;;  %v4611_v45 = vunpack.i.l.bf16 %v4610_v35  ;;  %v1726_v20 = vpop.f32.mrf.mxu0  ;;  %2953 = vmatmul.mubr.f32.gmra.mxu1 %v6778_v58  ;;  %3915 = vmatprep.subr.mxu1 %v7678_v56  ;;  %v4718_v35 = vpack.i.bf16 %v6651_v47, %v6807_v34  ;;  %v2227_v29 = vrot.slane %v6753_v8, 2 }
 0x23a   : > { %v6787_v31 = vsel %vm1890_vm13, %v1857_v50, %v1936_v14  ;;  %v1727_v36 = vadd.f32 %v6543_v63, %v1726_v20  ;;  %3947 = vmatpush2.msra.mxu1 %v6511_v19  ;;  %v2187_v62 = vrot.slane %v7694_v30, 2  ;;  %v7695_v20 = vld [vmem:[#allocation15_spill] sm:$0xff] }
 0x23b   : > { %v1728_v40 = vpop.f32.mrf.mxu0  ;;  %v2636_v57 = vsel %vm1284_vm5, %v6791_v25, %v4611_v45  ;;  %v4708_v42 = vpack.i.bf16 %v6794_v38, %v6787_v31  ;;  %v6803_v50 = vsel %vm1284_vm5, %v6140_v39, %v4612_v51  ;;  %3916 = vmatprep.subr.mxu1 %v7678_v56 }
 0x23c   : > { %vm1761_vm3 = vcmp.ge.f32.partialorder %v1727_v36, 0.0  ;;  %v1793_v63 = vmul.f32 0.01, %v1727_v36  ;;  %2957 = vmatprep.mubr.f32.mxu1 %v2636_v57  ;;  %3948 = vmatpush2.msra.mxu1 %v6538_v37  ;;  %v7696_v40 = vld [vmem:[#allocation19_spill] sm:$0xff] }
 0x23d   : > { %4709 = vrot.lane.b32.xlu1 %v4708_v42, %s4836_s16  ;;  %2958 = vmatmul.mubr.f32.gmra.mxu1 %v6803_v50  ;;  %v2189_v57 = vrot.slane %v7696_v40, 2 }
 0x23e   : > { %v1825_v19 = vsel %vm1761_vm3, %v1727_v36, %v1793_v63  ;;  %3917 = vmatprep.subr.mxu1 %v7678_v56  ;;  %v2186_v36 = vrot.slane %v7695_v20, 2 }
 0x23f   : > { %v1937_v23 = vrot.slane %v1825_v19, 7  ;;  %v2002_v39 = vrot.slane %v1825_v19, 5  ;;  %3949 = vmatpush2.msra.mxu1 %v6576_v0  ;;  %v2226_v0 = vrot.slane %v6736_v15, 2  ;;  %v2263_v19 = vrot.slane %v6787_v31, 1 }
 0x240   : > { %3918 = vmatprep.subr.mxu1 %v7678_v56  ;;  %v6837_v40 = vsel %vm406_vm1, %v2186_v36, %v2187_v62 }
 0x241   : > { %v6820_v37 = vsel %vm1890_vm13, %v1936_v14, %v1937_v23  ;;  %v2050_v51 = vsel %vm1890_vm13, %v1937_v23, %v2002_v39  ;;  %v4615_v45 = vpop.permute.xlu0 %4614  ;;  %4719 = vrot.lane.b32.xlu1 %v4718_v35, %s4836_s16  ;;  %3950 = vmatpush2.msra.mxu1 %v6594_v26  ;;  %v2229_v26 = vrot.slane %v6758_v61, 2  ;;  %7697 = vst [vmem:[#allocation17_spill] sm:$0xff] %v6837_v40 }
 0x242   : > { %v2266_v42 = vrot.slane %v2050_v51, 1  ;;  %v4617_v63 = vunpack.i.h.bf16 %v4615_v45  ;;  %3919 = vmatprep.subr.mxu1 %v7678_v56  ;;  %v2301_v14 = vrot.slane %v6820_v37, 2  ;;  %v4616_v23 = vunpack.i.l.bf16 %v4615_v45  ;;  %v6850_v45 = vld [vmem:[%s7581_s3 + $0x238] sm:$0xff] }
 0x243   : > { %v4713_v39 = vpack.i.bf16 %v6820_v37, %v6635_v27  ;;  %v2264_v35 = vrot.slane %v6820_v37, 1  ;;  %3951 = vmatpush2.msra.mxu1 %v6611_v44  ;;  %v6844_v28 = vsel %vm406_vm1, %v2226_v0, %v2227_v29  ;;  %v2300_v0 = vrot.slane %v6787_v31, 2 }
 0x244   : > { %v6841_v43 = vsel %vm1284_vm5, %v7695_v20, %v4617_v63  ;;  %3920 = vmatprep.subr.mxu1 %v7678_v56  ;;  %v2637_v61 = vsel %vm1284_vm5, %v6837_v40, %v4616_v23  ;;  %v6876_v23 = vsel %vm406_vm1, %v2227_v29, %v2229_v26 }
 0x245   : > { %4714 = vrot.lane.b32.xlu0 %v4713_v39, %s4836_s16  ;;  %v4620_v44 = vpop.permute.xlu1 %4619  ;;  %v6856_v36 = vsel %vm325_vm0, %v2264_v35, %v2266_v42  ;;  %v6859_v20 = vsel %vm325_vm0, %v2263_v19, %v2264_v35  ;;  %2962 = vmatprep.mubr.f32.mxu1 %v2637_v61  ;;  %v6869_v42 = vsel %vm406_vm1, %v2187_v62, %v2189_v57  ;;  %v2303_v35 = vrot.slane %v2050_v51, 2  ;;  %v7702_v61 = vld [vmem:[#allocation20_spill] sm:$0xff] }
 0x246   : > { %v4622_v56 = vunpack.i.h.bf16 %v4620_v44  ;;  %v4621_v63 = vunpack.i.l.bf16 %v4620_v44  ;;  %v4728_v52 = vpack.i.bf16 %v6856_v36, %v6844_v28  ;;  %v4723_v39 = vpack.i.bf16 %v6700_v21, %v6859_v20  ;;  %3952 = vmatpush2.msra.mxu1 %v6640_v2  ;;  %7698 = vst [vmem:[#allocation15_spill] sm:$0xff] %v6869_v42 }
 0x247   : > { %2963 = vmatmul.mubr.f32.gmra.mxu1 %v6841_v43  ;;  %v6872_v19 = vsel %vm406_vm1, %v2300_v0, %v2301_v14  ;;  %3825 = vmatprep.subr.mxu1 %v6850_v45  ;;  %v4733_v29 = vpack.i.bf16 %v6876_v23, %v6718_v46  ;;  %v2191_v0 = vrot.slane %v7702_v61, 2 }
 0x248   : > { %7699 = vst [vmem:[#allocation19_spill] sm:$0xff] %v6872_v19  ;;  %4729 = vrot.lane.b32.xlu1 %v4728_v52, %s4836_s16  ;;  %v2638_v44 = vsel %vm1284_vm5, %v6869_v42, %v4621_v63  ;;  %v6883_v2 = vsel %vm1284_vm5, %v7694_v30, %v4622_v56  ;;  %v4738_v62 = vpack.i.bf16 %v6872_v19, %v6770_v10  ;;  %v7701_v30 = vld [vmem:[#allocation22_spill] sm:$0xff] }
 0x249   : > { %4724 = vrot.lane.b32.xlu0 %v4723_v39, %s4836_s16  ;;  %2967 = vmatprep.mubr.f32.mxu1 %v2638_v44  ;;  %v6892_v52 = vsel %vm406_vm1, %v2301_v14, %v2303_v35  ;;  %v2192_v51 = vrot.slane %v7701_v30, 2  ;;  %v7704_v39 = vld [vmem:[#allocation24_spill] sm:$0xff] }
 0x24a   : > { %7700 = vst [vmem:[#allocation49_spill] sm:$0xff] %v6892_v52  ;;  %v4743_v57 = vpack.i.bf16 %v6892_v52, %v6791_v25  ;;  %v2194_v35 = vrot.slane %v7704_v39, 2  ;;  %v7706_v39 = vld [vmem:[#allocation25_spill] sm:$0xff]  ;;  %v2211_v25 = vrot.slane %v6485_v32, 2 }
 0x24b   : > { %2968 = vmatmul.mubr.f32.gmra.mxu1 %v6883_v2  ;;  %v6904_v63 = vsel %vm406_vm1, %v2191_v0, %v2192_v51 }
 0x24c   : > { %4739 = vrot.lane.b32.xlu1 %v4738_v62, %s4836_s16  ;;  %7703 = vst [vmem:[#allocation22_spill] sm:$0xff] %v6904_v63  ;;  %v6921_v19 = vsel %vm406_vm1, %v2192_v51, %v2194_v35  ;;  %v7710_v51 = vld [vmem:[#allocation30_spill] sm:$0xff] }
 0x24d   : > { %4734 = vrot.lane.b32.xlu0 %v4733_v29, %s4836_s16  ;;  %v7705_v29 = vld [vmem:[#allocation27_spill] sm:$0xff]  ;;  %7707 = vst [vmem:[#allocation20_spill] sm:$0xff] %v6921_v19  ;;  %v2201_v35 = vrot.slane %v7710_v51, 2 }
 0x24e   : > { %v2197_v52 = vrot.slane %v7705_v29, 2 }
 0x250   : > { %2515 = vrot.lane.b32.xlu1 %v6837_v40, %s4836_s16  ;;  %v4625_v26 = vpop.permute.xlu0 %4624  ;;  %v2212_v40 = vrot.slane %v6514_v59, 2 }
 0x251   : > { %4744 = vrot.lane.b32.xlu0 %v4743_v57, %s4836_s16  ;;  %v4627_v56 = vunpack.i.h.bf16 %v4625_v26  ;;  %v4626_v14 = vunpack.i.l.bf16 %v4625_v26 }
 0x253   : > { %v2639_v44 = vsel %vm1284_vm5, %v6904_v63, %v4626_v14  ;;  %v6911_v62 = vsel %vm1284_vm5, %v7702_v61, %v4627_v56  ;;  %v2196_v14 = vrot.slane %v7706_v39, 2 }
 0x254   : > { %2519 = vrot.lane.b32.xlu1 %v6904_v63, %s4836_s16  ;;  %v4630_v57 = vpop.permute.xlu1 %4629  ;;  %2972 = vmatprep.mubr.f32.mxu1 %v2639_v44 }
 0x255   : > { %2517 = vrot.lane.b32.xlu0 %v6869_v42, %s4836_s16  ;;  %v4632_v26 = vunpack.i.h.bf16 %v4630_v57  ;;  %v4631_v0 = vunpack.i.l.bf16 %v4630_v57  ;;  %2973 = vmatmul.mubr.f32.gmra.mxu1 %v6911_v62  ;;  %v6924_v61 = vsel %vm406_vm1, %v2196_v14, %v2197_v52  ;;  %v7709_v57 = vld [vmem:[#allocation29_spill] sm:$0xff]  ;;  %v7711_v14 = vld [vmem:[#allocation34_spill] sm:$0xff] }
 0x256   : > { %v2199_v55 = vrot.slane %v7709_v57, 2 }
 0x257   : > { %v2640_v56 = vsel %vm1284_vm5, %v6921_v19, %v4631_v0  ;;  %v6930_v44 = vsel %vm1284_vm5, %v7701_v30, %v4632_v26  ;;  %v6941_v0 = vsel %vm406_vm1, %v2201_v35, %v2202_v12  ;;  %v2207_v30 = vrot.slane %v6428_v3, 2 }
 0x258   : > { %2523 = vrot.lane.b32.xlu1 %v6924_v61, %s4836_s16  ;;  %2977 = vmatprep.mubr.f32.mxu1 %v2640_v56  ;;  %v6947_v26 = vsel %vm406_vm1, %v2197_v52, %v2199_v55  ;;  %v2204_v56 = vrot.slane %v7711_v14, 2 }
 0x259   : > { %2521 = vrot.lane.b32.xlu0 %v6921_v19, %s4836_s16  ;;  %2978 = vmatmul.mubr.f32.gmra.mxu1 %v6930_v44  ;;  %v2206_v19 = vrot.slane %v6396_v17, 2 }
 0x25a   : > { %v6960_v55 = vsel %vm406_vm1, %v2202_v12, %v2204_v56  ;;  %v6974_v12 = vsel %vm406_vm1, %v2211_v25, %v2212_v40  ;;  %v2214_v56 = vrot.slane %v6550_v24, 2  ;;  %v2216_v25 = vrot.slane %v6581_v1, 2 }
 0x25b   : > { %v6954_v35 = vsel %vm406_vm1, %v2206_v19, %v2207_v30  ;;  %7713 = vst [vmem:[#allocation27_spill] sm:$0xff] %v6960_v55  ;;  %v2219_v24 = vrot.slane %v6630_v13, 2 }
 0x25c   : > { %2527 = vrot.lane.b32.xlu1 %v6941_v0, %s4836_s16  ;;  %7712 = vst [vmem:[#allocation24_spill] sm:$0xff] %v6954_v35 }
 0x25d   : > { %2525 = vrot.lane.b32.xlu0 %v6947_v26, %s4836_s16  ;;  %v4635_v57 = vpop.permute.xlu0 %4634 }
 0x25e   : > { %v4637_v63 = vunpack.i.h.bf16 %v4635_v57  ;;  %v4636_v42 = vunpack.i.l.bf16 %v4635_v57  ;;  %v2209_v57 = vrot.slane %v6460_v33, 2 }
 0x260   : > { %2531 = vrot.lane.b32.xlu1 %v6954_v35, %s4836_s16  ;;  %v2641_v52 = vsel %vm1284_vm5, %v6924_v61, %v4636_v42  ;;  %v6966_v14 = vsel %vm1284_vm5, %v7706_v39, %v4637_v63  ;;  %v2217_v42 = vrot.slane %v6614_v18, 2  ;;  %v6980_v33 = vsel %vm406_vm1, %v2207_v30, %v2209_v57 }
 0x261   : > { %2529 = vrot.lane.b32.xlu0 %v6960_v55, %s4836_s16  ;;  %v4640_v19 = vpop.permute.xlu1 %4639  ;;  %2982 = vmatprep.mubr.f32.mxu1 %v2641_v52  ;;  %7714 = vst [vmem:[#allocation25_spill] sm:$0xff] %v6980_v33  ;;  %v2222_v52 = vrot.slane %v6687_v4, 2 }
 0x262   : > { %v4642_v10 = vunpack.i.h.bf16 %v4640_v19  ;;  %v4641_v46 = vunpack.i.l.bf16 %v4640_v19  ;;  %2983 = vmatmul.mubr.f32.gmra.mxu1 %v6966_v14  ;;  %v6994_v30 = vsel %vm406_vm1, %v2216_v25, %v2217_v42  ;;  %v7012_v57 = vsel %vm406_vm1, %v2217_v42, %v2219_v24 }
 0x264   : > { %2535 = vrot.lane.b32.xlu1 %v6974_v12, %s4836_s16  ;;  %v2642_v63 = vsel %vm1284_vm5, %v6947_v26, %v4641_v46  ;;  %v6986_v39 = vsel %vm1284_vm5, %v7705_v29, %v4642_v10  ;;  %v7000_v46 = vsel %vm406_vm1, %v2212_v40, %v2214_v56  ;;  %v2221_v10 = vrot.slane %v6669_v5, 2 }
 0x265   : > { %2533 = vrot.lane.b32.xlu0 %v6980_v33, %s4836_s16  ;;  %2987 = vmatprep.mubr.f32.mxu1 %v2642_v63  ;;  %v2224_v40 = vrot.slane %v6712_v60, 2 }
 0x266   : > { %2988 = vmatmul.mubr.f32.gmra.mxu1 %v6986_v39  ;;  %v7007_v29 = vsel %vm406_vm1, %v2221_v10, %v2222_v52 }
 0x267   : > { %v7024_v10 = vsel %vm406_vm1, %v2222_v52, %v2224_v40 }
 0x268   : > { %2539 = vrot.lane.b32.xlu1 %v6994_v30, %s4836_s16 }
 0x269   : > { %2537 = vrot.lane.b32.xlu0 %v7000_v46, %s4836_s16 }
 0x26c   : > { %2543 = vrot.lane.b32.xlu1 %v7007_v29, %s4836_s16  ;;  %v4645_v19 = vpop.permute.xlu0 %4644 }
 0x26d   : > { %2541 = vrot.lane.b32.xlu0 %v7012_v57, %s4836_s16  ;;  %v4647_v13 = vunpack.i.h.bf16 %v4645_v19  ;;  %v4646_v63 = vunpack.i.l.bf16 %v4645_v19 }
 0x26f   : > { %v2643_v56 = vsel %vm1284_vm5, %v6941_v0, %v4646_v63  ;;  %v7021_v25 = vsel %vm1284_vm5, %v7710_v51, %v4647_v13 }
 0x270   : > { %v4650_v42 = vpop.permute.xlu1 %4649  ;;  %2992 = vmatprep.mubr.f32.mxu1 %v2643_v56 }
 0x271   : > { %2545 = vrot.lane.b32.xlu0 %v7024_v10, %s4836_s16  ;;  %v4652_v60 = vunpack.i.h.bf16 %v4650_v42  ;;  %v4651_v24 = vunpack.i.l.bf16 %v4650_v42  ;;  %2993 = vmatmul.mubr.f32.gmra.mxu1 %v7021_v25  ;;  %s215_s16 = sand.u32 1, %s4821_s19  }
 0x272   : > { %s3711_s10 = sshll.u32 %s215_s16, 8  ;;  %s7538_s8 = scalar_lea.sflag [#allocation3], %s215_s16 }
 0x273   : > { %v2644_v19 = vsel %vm1284_vm5, %v6960_v55, %v4651_v24  ;;  %v7033_v63 = vsel %vm1284_vm5, %v7708_v7, %v4652_v60  ;;  %s7398_s15 = scalar_lea.vmem [#allocation2], %s3711_s10 }
 0x274   : > { %2997 = vmatprep.mubr.f32.mxu1 %v2644_v19  ;;  %s3645_s12 = sshll.u32 %s7398_s15, 4  ;;  %s7530_s12 = int_to_ptr.vmem [resolvable:$true] %s3645_s12 }
 0x275   : > { %2998 = vmatmul.mubr.f32.gmra.mxu1 %v7033_v63  ;;  %s4769_s11 = scalar_lea.vmem %s7530_s12, 4096  ;;  %p4776_p0 = scmp.lt.s32.totalorder %s7530_s12, %s4774_s14 }
 0x276   : > { %p4770_p11 = scmp.ne.s32.totalorder %s7530_s12, %s4769_s11  ;;  %p4777_p1 = scmp.lt.s32.totalorder %s4775_s23, %s4769_s11 }
 0x278   : > { %p4771_p12 = pnand %p4770_p11, %p4910_p5  ;;  %p4778_p2 = por %p4777_p1, %p4776_p0 }
 0x279   : > { %v4655_v51 = vpop.permute.xlu0 %4654 }
 0x27a   : > { %v4657_v52 = vunpack.i.h.bf16 %v4655_v51  ;;  %v4656_v40 = vunpack.i.l.bf16 %v4655_v51  ;;  %p4772_p13 = pneg %p4771_p12 }
 0x27c   : > { %v2645_v13 = vsel %vm1284_vm5, %v6954_v35, %v4656_v40  ;;  %v7040_v56 = vsel %vm1284_vm5, %v6396_v17, %v4657_v52  ;;  %p4779_p3 = pnand %p4778_p2, %p4772_p13 }
 0x27d   : > { %v4660_v42 = vpop.permute.xlu1 %4659  ;;  %3002 = vmatprep.mubr.f32.mxu1 %v2645_v13 }
 0x27e   : > { %v4662_v24 = vunpack.i.h.bf16 %v4660_v42  ;;  %v4661_v55 = vunpack.i.l.bf16 %v4660_v42  ;;  %3003 = vmatmul.mubr.f32.gmra.mxu1 %v7040_v56 }
 0x280   : > { %v2646_v7 = vsel %vm1284_vm5, %v6980_v33, %v4661_v55  ;;  %v7047_v60 = vsel %vm1284_vm5, %v6428_v3, %v4662_v24 }
 0x281   : > { %3007 = vmatprep.mubr.f32.mxu1 %v2646_v7 }
 0x282   : > { %3008 = vmatmul.mubr.f32.gmra.mxu1 %v7047_v60 }
 0x288   : > { %v4665_v19 = vpop.permute.xlu0 %4664 }
 0x289   : > { %v4667_v51 = vunpack.i.h.bf16 %v4665_v19  ;;  %v4666_v17 = vunpack.i.l.bf16 %v4665_v19  ;;  %v7715_v19 = vld [vmem:[#allocation8_spill] sm:$0xff] }
 0x28b   : > { %v2647_v52 = vsel %vm1284_vm5, %v6974_v12, %v4666_v17  ;;  %v7054_v40 = vsel %vm1284_vm5, %v6485_v32, %v4667_v51  ;;  %v7716_v32 = vld [vmem:[#allocation37_spill] sm:$0xff]  ;;  %v7717_v51 = vld [vmem:[#allocation7_spill] sm:$0xff] }
 0x28c   : > { %v4675_v13 = vpop.permute.xlu0 %4674  ;;  %v4670_v42 = vpop.permute.xlu1 %4669  ;;  %3012 = vmatprep.mubr.f32.mxu1 %v2647_v52 }
 0x28d   : > { %v4676_v55 = vunpack.i.l.bf16 %v4675_v13  ;;  %v4672_v33 = vunpack.i.h.bf16 %v4670_v42  ;;  %v4671_v3 = vunpack.i.l.bf16 %v4670_v42  ;;  %3013 = vmatmul.mubr.f32.gmra.mxu1 %v7054_v40  ;;  %v4677_v24 = vunpack.i.h.bf16 %v4675_v13 }
 0x28f   : > { %v2648_v7 = vsel %vm1284_vm5, %v7000_v46, %v4672_v33  ;;  %v2655_v35 = vsel %vm1284_vm5, %v7715_v19, %v4671_v3  ;;  %v7063_v17 = vsel %vm1284_vm5, %v6514_v59, %v4676_v55  ;;  %v2656_v52 = vsel %vm1284_vm5, %v7717_v51, %v4677_v24  ;;  %v7718_v51 = vld [vmem:[#allocation6_spill] sm:$0xff] }
 0x290   : > { %3017 = vmatprep.mubr.f32.mxu1 %v2648_v7  ;;  %3118 = vmatmul.mubr.f32.vlgmr.msra.gmra.mxu0 %v2655_v35 }
 0x291   : > { %3018 = vmatmul.mubr.f32.gmra.mxu1 %v7063_v17  ;;  %3122 = vmatprep.mubr.f32.mxu0 %v7716_v32 }
 0x294   : > { %3123 = vmatmul.mubr.f32.gmra.mxu0 %v2656_v52 }
 0x295   : > { %v4680_v13 = vpop.permute.xlu1 %4679  ;;  %3127 = vmatprep.mubr.f32.mxu0 %v6569_v22 }
 0x296   : > { %v4682_v33 = vunpack.i.h.bf16 %v4680_v13  ;;  %v4681_v42 = vunpack.i.l.bf16 %v4680_v13 }
 0x298   : > { %v2649_v3 = vsel %vm1284_vm5, %v6994_v30, %v4681_v42  ;;  %v7074_v59 = vsel %vm1284_vm5, %v6581_v1, %v4682_v33  ;;  %v7719_v1 = vld [vmem:[#allocation5_spill] sm:$0xff] }
 0x299   : > { %v4685_v35 = vpop.permute.xlu0 %4684  ;;  %v4690_v55 = vpop.permute.xlu1 %4689  ;;  %3022 = vmatprep.mubr.f32.mxu1 %v2649_v3 }
 0x29a   : > { %v4687_v7 = vunpack.i.h.bf16 %v4685_v35  ;;  %v4686_v19 = vunpack.i.l.bf16 %v4685_v35  ;;  %v4691_v32 = vunpack.i.l.bf16 %v4690_v55  ;;  %3023 = vmatmul.mubr.f32.gmra.mxu1 %v7074_v59  ;;  %v4692_v24 = vunpack.i.h.bf16 %v4690_v55 }
 0x29c   : > { %v2650_v22 = vsel %vm1284_vm5, %v7012_v57, %v4687_v7  ;;  %v2657_v52 = vsel %vm1284_vm5, %v7718_v51, %v4686_v19  ;;  %v7083_v13 = vsel %vm1284_vm5, %v6614_v18, %v4691_v32  ;;  %v2658_v33 = vsel %vm1284_vm5, %v7719_v1, %v4692_v24  ;;  %v7720_v51 = vld [vmem:[#allocation9_spill] sm:$0xff] }
 0x29d   : > { %3027 = vmatprep.mubr.f32.mxu1 %v2650_v22  ;;  %3128 = vmatmul.mubr.f32.gmra.mxu0 %v2657_v52 }
 0x29e   : > { %3028 = vmatmul.mubr.f32.gmra.mxu1 %v7083_v13  ;;  %3132 = vmatprep.mubr.f32.mxu0 %v6601_v54 }
 0x2a1   : > { %3133 = vmatmul.mubr.f32.gmra.mxu0 %v2658_v33  ;;  %v7721_v33 = vld [vmem:[#allocation10_spill] sm:$0xff] }
 0x2a2   : > { %3137 = vmatprep.mubr.f32.mxu0 %v6646_v6 }
 0x2a4   : > { %v4695_v42 = vpop.permute.xlu0 %4694 }
 0x2a5   : > { %v4697_v3 = vunpack.i.h.bf16 %v4695_v42  ;;  %v4696_v35 = vunpack.i.l.bf16 %v4695_v42 }
 0x2a7   : > { %v2651_v55 = vsel %vm1284_vm5, %v7007_v29, %v4696_v35  ;;  %v7094_v18 = vsel %vm1284_vm5, %v6669_v5, %v4697_v3 }
 0x2a8   : > { %v4705_v7 = vpop.permute.xlu0 %4704  ;;  %v4700_v19 = vpop.permute.xlu1 %4699  ;;  %3032 = vmatprep.mubr.f32.mxu1 %v2651_v55 }
 0x2a9   : > { %v4706_v54 = vunpack.i.l.bf16 %v4705_v7  ;;  %v4702_v32 = vunpack.i.h.bf16 %v4700_v19  ;;  %v4701_v22 = vunpack.i.l.bf16 %v4700_v19  ;;  %3033 = vmatmul.mubr.f32.gmra.mxu1 %v7094_v18  ;;  %v4707_v24 = vunpack.i.h.bf16 %v4705_v7 }
 0x2ab   : > { %v2652_v6 = vsel %vm1284_vm5, %v7024_v10, %v4702_v32  ;;  %v2659_v52 = vsel %vm1284_vm5, %v7720_v51, %v4701_v22  ;;  %v7103_v1 = vsel %vm1284_vm5, %v6687_v4, %v4706_v54  ;;  %v2660_v42 = vsel %vm1284_vm5, %v7721_v33, %v4707_v24  ;;  %v7722_v51 = vld [vmem:[#allocation11_spill] sm:$0xff] }
 0x2ac   : > { %3037 = vmatprep.mubr.f32.mxu1 %v2652_v6  ;;  %3138 = vmatmul.mubr.f32.gmra.mxu0 %v2659_v52 }
 0x2ad   : > { %3038 = vmatmul.mubr.f32.gmra.mxu1 %v7103_v1  ;;  %3142 = vmatprep.mubr.f32.mxu0 %v6665_v16 }
 0x2af   : > { %v4710_v5 = vpop.permute.xlu1 %4709 }
 0x2b0   : > { %v4712_v3 = vunpack.i.h.bf16 %v4710_v5  ;;  %v4711_v35 = vunpack.i.l.bf16 %v4710_v5  ;;  %3143 = vmatmul.mubr.f32.gmra.mxu0 %v2660_v42 }
 0x2b1   : > { %3147 = vmatprep.mubr.f32.mxu0 %v6708_v53 }
 0x2b2   : > { %v2653_v55 = vsel %vm1284_vm5, %v6844_v28, %v4711_v35  ;;  %v7114_v4 = vsel %vm1284_vm5, %v6736_v15, %v4712_v3 }
 0x2b3   : > { %3042 = vmatprep.mubr.f32.mxu1 %v2653_v55  ;;  %v4720_v7 = vpop.permute.xlu1 %4719 }
 0x2b4   : > { %3043 = vmatmul.mubr.f32.gmra.mxu1 %v7114_v4  ;;  %v4721_v16 = vunpack.i.l.bf16 %v4720_v7  ;;  %v4722_v22 = vunpack.i.h.bf16 %v4720_v7 }
 0x2b6   : > { %v7125_v33 = vsel %vm1284_vm5, %v6753_v8, %v4721_v16  ;;  %v2759_v16 = vld [vmem:[%s7581_s3 + $0x230] sm:$0xff] }
 0x2b7   : > { %v4715_v19 = vpop.permute.xlu0 %4714 }
 0x2b8   : > { %v4717_v54 = vunpack.i.h.bf16 %v4715_v19  ;;  %v4716_v32 = vunpack.i.l.bf16 %v4715_v19  ;;  %v7723_v19 = vld [vmem:[#allocation12_spill] sm:$0xff] }
 0x2ba   : > { %v7117_v24 = vpop.f32.mrf.mxu1  ;;  %v4730_v6 = vpop.permute.xlu1 %4729  ;;  %v2654_v53 = vsel %vm1284_vm5, %v6876_v23, %v4717_v54  ;;  %v2661_v52 = vsel %vm1284_vm5, %v7722_v51, %v4716_v32  ;;  %v2662_v54 = vsel %vm1284_vm5, %v7723_v19, %v4722_v22 }
 0x2bb   : > { %v4731_v15 = vunpack.i.l.bf16 %v4730_v6  ;;  %v4725_v5 = vpop.permute.xlu0 %4724  ;;  %3047 = vmatprep.mubr.f32.mxu1 %v2654_v53  ;;  %3148 = vmatmul.mubr.f32.gmra.mxu0 %v2661_v52  ;;  %v4732_v42 = vunpack.i.h.bf16 %v4730_v6 }
 0x2bc   : > { %v4726_v3 = vunpack.i.l.bf16 %v4725_v5  ;;  %v2896_v35 = vpop.f32.mrf.mxu1  ;;  %3048 = vmatmul.mubr.f32.gmra.mxu1 %v7125_v33  ;;  %3152 = vmatprep.mubr.f32.mxu0 %v6727_v9  ;;  %v4727_v55 = vunpack.i.h.bf16 %v4725_v5 }
 0x2bd   : > { %v2683_v8 = vsel %vm1284_vm5, %v6794_v38, %v4731_v15  ;;  %v2688_v22 = vsel %vm1284_vm5, %v6820_v37, %v4732_v42  ;;  %v7724_v38 = vld [vmem:[#allocation13_spill] sm:$0xff] }
 0x2be   : > { %v7129_v7 = vpop.f32.mrf.mxu1  ;;  %v2687_v32 = vsel %vm1284_vm5, %v6787_v31, %v4726_v3  ;;  %v4740_v51 = vpop.permute.xlu1 %4739  ;;  %v2663_v15 = vsel %vm1284_vm5, %v7724_v38, %v4727_v55  ;;  %v7725_v55 = vld [vmem:[#allocation14_spill] sm:$0xff] }
 0x2bf   : > { %v4735_v53 = vpop.permute.xlu0 %4734  ;;  %3153 = vmatmul.mubr.f32.gmra.mxu0 %v2662_v54  ;;  %3257 = vmatprep.mubr.f32.mxu1 %v2687_v32  ;;  %v4742_v37 = vunpack.i.h.bf16 %v4740_v51 }
 0x2c0   : > { %v4737_v9 = vunpack.i.h.bf16 %v4735_v53  ;;  %v2901_v6 = vpop.f32.mrf.mxu1  ;;  %3157 = vmatprep.mubr.f32.mxu0 %v6778_v58  ;;  %3258 = vmatmul.mubr.f32.vlgmr.msra.gmra.mxu1 %v2683_v8  ;;  %v4736_v31 = vunpack.i.l.bf16 %v4735_v53  ;;  %v2758_v58 = vld [vmem:[%s7581_s3 + $0x228] sm:$0xff]  ;;  %v2755_v8 = vld [vmem:[%s7581_s3 + $0x210] sm:$0xff] }
 0x2c1   : > { %3262 = vmatprep.mubr.f32.mxu1 %v2688_v22  ;;  %3826 = vmatpush3.msra.mxu1 %v6850_v45  ;;  %v2757_v45 = vld [vmem:[%s7581_s3 + $0x220] sm:$0xff]  ;;  %v2685_v53 = vsel %vm1284_vm5, %v6859_v20, %v4742_v37  ;;  %v7726_v6 = vld [vmem:[#allocation16_spill] sm:$0xff] }
 0x2c2   : > { %v7144_v52 = vpop.f32.mrf.mxu1  ;;  %3827 = vmatprep.subr.mxu1 %v2759_v16  ;;  %v2684_v5 = vsel %vm1284_vm5, %v6807_v34, %v4737_v9  ;;  %v4741_v34 = vunpack.i.l.bf16 %v4740_v51  ;;  %v2664_v19 = vsel %vm1284_vm5, %v7725_v55, %v4736_v31  ;;  %v2753_v31 = vld [vmem:[%s7581_s3 + $0x200] sm:$0xff]  ;;  %v7731_v55 = vld [vmem:[#allocation44_spill] sm:$0xff] }
 0x2c3   : > { %3158 = vmatmul.mubr.f32.gmra.mxu0 %v2663_v15  ;;  %3828 = vmatpush3.msra.mxu1 %v2759_v16  ;;  %v4745_v3 = vpop.permute.xlu0 %4744  ;;  %v7727_v15 = vld [vmem:[#allocation18_spill] sm:$0xff] }
 0x2c4   : > { %v2906_v42 = vpop.f32.mrf.mxu1  ;;  %3162 = vmatprep.mubr.f32.mxu0 %v6803_v50  ;;  %3263 = vmatmul.mubr.f32.gmra.mxu1 %v2684_v5  ;;  %v2756_v50 = vld [vmem:[%s7581_s3 + $0x218] sm:$0xff]  ;;  %v4747_v54 = vunpack.i.h.bf16 %v4745_v3  ;;  %v4746_v16 = vunpack.i.l.bf16 %v4745_v3  ;;  %v2665_v22 = vsel %vm1284_vm5, %v7726_v6, %v4741_v34 }
 0x2c5   : > { %3829 = vmatprep.subr.mxu1 %v2758_v58  ;;  %3267 = vmatprep.mubr.f32.mxu1 %v7114_v4 }
 0x2c6   : > { %3830 = vmatpush3.msra.mxu1 %v2758_v58  ;;  %v7158_v35 = vpop.f32.mrf.mxu1  ;;  %v2686_v51 = vsel %vm1284_vm5, %v6856_v36, %v4747_v54  ;;  %v2666_v5 = vsel %vm1284_vm5, %v7727_v15, %v4746_v16  ;;  %v2516_v58 = vpop.permute.xlu1 %2515  ;;  %v7740_v15 = vld [vmem:[#allocation20_spill] sm:$0xff] }
 0x2c7   : > { %3831 = vmatprep.subr.mxu1 %v2757_v45  ;;  %3163 = vmatmul.mubr.f32.gmra.mxu0 %v2664_v19  ;;  %v2518_v42 = vpop.permute.xlu0 %2517 }
 0x2c8   : > { %3832 = vmatpush3.msra.mxu1 %v2757_v45  ;;  %v2911_v32 = vpop.f32.mrf.mxu1  ;;  %3167 = vmatprep.mubr.f32.mxu0 %v6841_v43  ;;  %v2754_v43 = vld [vmem:[%s7581_s3 + $0x208] sm:$0xff] }
 0x2c9   : > { %3268 = vmatmul.mubr.f32.gmra.mxu1 %v2685_v53  ;;  %3833 = vmatprep.subr.mxu1 %v2756_v50  ;;  %v7734_v32 = vld [vmem:[#allocation48_spill] sm:$0xff]  ;;  %v7735_v53 = vld [vmem:[#allocation17_spill] sm:$0xff] }
 0x2ca   : > { %3272 = vmatprep.mubr.f32.mxu1 %v7125_v33  ;;  %3834 = vmatpush3.msra.mxu1 %v2756_v50  ;;  %v7172_v9 = vpop.f32.mrf.mxu1  ;;  %v2520_v3 = vpop.permute.xlu1 %2519  ;;  %v7732_v50 = vld [vmem:[#allocation47_spill] sm:$0xff] }
 0x2cb   : > { %3835 = vmatprep.subr.mxu1 %v2755_v8  ;;  %3168 = vmatmul.mubr.f32.gmra.mxu0 %v2665_v22 }
 0x2cc   : > { %3836 = vmatpush3.msra.mxu1 %v2755_v8  ;;  %v2916_v20 = vpop.f32.mrf.mxu1  ;;  %3172 = vmatprep.mubr.f32.mxu0 %v6883_v2  ;;  %v7736_v8 = vld [vmem:[#allocation31_spill] sm:$0xff] }
 0x2cd   : > { %3273 = vmatmul.mubr.f32.gmra.mxu1 %v2686_v51  ;;  %3837 = vmatprep.subr.mxu1 %v2754_v43  ;;  %v7739_v20 = vld [vmem:[#allocation33_spill] sm:$0xff] }
 0x2ce   : > { %3838 = vmatpush3.msra.mxu1 %v2754_v43  ;;  %3841 = vmatprep.mubr.msk.f32.mxu1 %vm1284_vm5, %v6399_v41  ;;  %v7187_v38 = vpop.f32.mrf.mxu1  ;;  %v7728_v41 = vld [vmem:[#allocation21_spill] sm:$0xff]  ;;  %v2524_v54 = vpop.permute.xlu1 %2523  ;;  %v7737_v43 = vld [vmem:[#allocation15_spill] sm:$0xff] }
 0x2cf   : > { %3839 = vmatprep.subr.mxu1 %v2753_v31  ;;  %3173 = vmatmul.mubr.f32.gmra.mxu0 %v2666_v5  ;;  %v2667_v37 = vsel %vm1284_vm5, %v7728_v41, %v2516_v58  ;;  %v2671_v16 = vsel %vm1284_vm5, %v7736_v8, %v2524_v54  ;;  %v7741_v5 = vld [vmem:[#allocation35_spill] sm:$0xff] }
 0x2d0   : > { %3840 = vmatpush3.msra.mxu1 %v2753_v31  ;;  %v2921_v36 = vpop.f32.mrf.mxu1  ;;  %3177 = vmatprep.mubr.f32.mxu0 %v6911_v62  ;;  %v7729_v62 = vld [vmem:[#allocation23_spill] sm:$0xff] }
 0x2d1   : > { %3842 = vmatmul.mubr.msk.f32.vlgmr.msra.gmra.mxu1 %vm1284_vm5, %v6415_v49 }
 0x2d2   : > { %3844 = vmatprep.mubr.msk.f32.mxu1 %vm1284_vm5, %v6532_v48  ;;  %v7196_v2 = vpop.f32.mrf.mxu1  ;;  %v2668_v48 = vsel %vm1284_vm5, %v7729_v62, %v2518_v42  ;;  %v2528_v31 = vpop.permute.xlu1 %2527  ;;  %v7743_v62 = vld [vmem:[#allocation27_spill] sm:$0xff] }
 0x2d3   : > { %3178 = vmatmul.mubr.f32.gmra.mxu0 %v2667_v37  ;;  %v2673_v58 = vsel %vm1284_vm5, %v7741_v5, %v2528_v31  ;;  %v7742_v37 = vld [vmem:[#allocation36_spill] sm:$0xff] }
 0x2d4   : > { %v2926_v45 = vpop.f32.mrf.mxu1  ;;  %3182 = vmatprep.mubr.f32.mxu0 %v6930_v44 }
 0x2d5   : > { %3845 = vmatmul.mubr.msk.f32.gmra.mxu1 %vm1284_vm5, %v6558_v11  ;;  %v7730_v11 = vld [vmem:[#allocation26_spill] sm:$0xff] }
 0x2d6   : > { %3847 = vmatprep.mubr.msk.f32.mxu1 %vm1284_vm5, %v6635_v27  ;;  %v7205_v49 = vpop.f32.mrf.mxu1  ;;  %v2669_v44 = vsel %vm1284_vm5, %v7730_v11, %v2520_v3  ;;  %v2522_v27 = vpop.permute.xlu0 %2521  ;;  %v7746_v3 = vld [vmem:[#allocation25_spill] sm:$0xff] }
 0x2d7   : > { %3183 = vmatmul.mubr.f32.gmra.mxu0 %v2668_v48  ;;  %v2532_v42 = vpop.permute.xlu1 %2531 }
 0x2d8   : > { %v2931_v34 = vpop.f32.mrf.mxu1  ;;  %3187 = vmatprep.mubr.f32.mxu0 %v6966_v14  ;;  %v7733_v14 = vld [vmem:[#allocation28_spill] sm:$0xff] }
 0x2d9   : > { %3848 = vmatmul.mubr.msk.f32.gmra.mxu1 %vm1284_vm5, %v6651_v47  ;;  %v2670_v47 = vsel %vm1284_vm5, %v7733_v14, %v2522_v27 }
 0x2da   : > { %3850 = vmatprep.mubr.msk.f32.mxu1 %vm1284_vm5, %v6700_v21  ;;  %v2526_v6 = vpop.permute.xlu0 %2525 }
 0x2db   : > { %3188 = vmatmul.mubr.f32.gmra.mxu0 %v2669_v44  ;;  %v2672_v51 = vsel %vm1284_vm5, %v7739_v20, %v2526_v6  ;;  %v2536_v11 = vpop.permute.xlu1 %2535 }
 0x2dc   : > { %3192 = vmatprep.mubr.f32.mxu0 %v6986_v39 }
 0x2dd   : > { %3851 = vmatmul.mubr.msk.f32.gmra.mxu1 %vm1284_vm5, %v7731_v55  ;;  %v7219_v19 = vpop.f32.mrf.mxu1 }
 0x2de   : > { %3853 = vmatprep.mubr.msk.f32.mxu1 %vm1284_vm5, %v7732_v50  ;;  %v2530_v36 = vpop.permute.xlu0 %2529 }
 0x2df   : > { %3193 = vmatmul.mubr.f32.gmra.mxu0 %v2670_v47  ;;  %v2936_v21 = vpop.f32.mrf.mxu1 }
 0x2e0   : > { %3197 = vmatprep.mubr.f32.mxu0 %v7021_v25  ;;  %v7738_v25 = vld [vmem:[#allocation22_spill] sm:$0xff] }
 0x2e1   : > { %3854 = vmatmul.mubr.msk.f32.gmra.mxu1 %vm1284_vm5, %v7734_v32  ;;  %v7228_v39 = vpop.f32.mrf.mxu1  ;;  %v7753_v32 = vld [vmem:[#allocation49_spill] sm:$0xff] }
 0x2e2   : > { %3856 = vmatprep.mubr.msk.f32.mxu1 %vm1284_vm5, %v7735_v53 }
 0x2e3   : > { %3198 = vmatmul.mubr.f32.gmra.mxu0 %v2671_v16  ;;  %v2941_v22 = vpop.f32.mrf.mxu1 }
 0x2e4   : > { %3202 = vmatprep.mubr.f32.mxu0 %v7033_v63  ;;  %v7755_v22 = vld [vmem:[#allocation46_spill] sm:$0xff] }
 0x2e5   : > { %3857 = vmatmul.mubr.msk.f32.gmra.mxu1 %vm1284_vm5, %v7737_v43 }
 0x2e6   : > { %3859 = vmatprep.mubr.msk.f32.mxu1 %vm1284_vm5, %v7738_v25 }
 0x2e7   : > { %3203 = vmatmul.mubr.f32.gmra.mxu0 %v2672_v51 }
 0x2e8   : > { %3207 = vmatprep.mubr.f32.mxu0 %v7040_v56 }
 0x2e9   : > { %3860 = vmatmul.mubr.msk.f32.gmra.mxu1 %vm1284_vm5, %v7740_v15 }
 0x2ea   : > { %3862 = vmatprep.mubr.msk.f32.mxu1 %vm1284_vm5, %v6924_v61  ;;  %v7246_v63 = vpop.f32.mrf.mxu1  ;;  %v2674_v61 = vsel %vm1284_vm5, %v7742_v37, %v2530_v36 }
 0x2eb   : > { %3208 = vmatmul.mubr.f32.gmra.mxu0 %v2673_v58 }
 0x2ec   : > { %3212 = vmatprep.mubr.f32.mxu0 %v7047_v60  ;;  %v2946_v41 = vpop.f32.mrf.mxu1  ;;  %v7744_v60 = vld [vmem:[#allocation24_spill] sm:$0xff] }
 0x2ed   : > { %3863 = vmatmul.mubr.msk.f32.gmra.mxu1 %vm1284_vm5, %v6947_v26  ;;  %v7745_v26 = vld [vmem:[#allocation38_spill] sm:$0xff] }
 0x2ee   : > { %3865 = vmatprep.mubr.msk.f32.mxu1 %vm1284_vm5, %v6941_v0  ;;  %v7255_v56 = vpop.f32.mrf.mxu1  ;;  %v2675_v48 = vsel %vm1284_vm5, %v7745_v26, %v2532_v42  ;;  %v2534_v0 = vpop.permute.xlu0 %2533 }
 0x2ef   : > { %3213 = vmatmul.mubr.f32.gmra.mxu0 %v2674_v61 }
 0x2f0   : > { %3217 = vmatprep.mubr.f32.mxu0 %v7054_v40  ;;  %v2951_v45 = vpop.f32.mrf.mxu1  ;;  %v7747_v40 = vld [vmem:[#allocation39_spill] sm:$0xff] }
 0x2f1   : > { %3866 = vmatmul.mubr.msk.f32.gmra.mxu1 %vm1284_vm5, %v7743_v62  ;;  %v2676_v34 = vsel %vm1284_vm5, %v7747_v40, %v2534_v0  ;;  %v7340_v62 = vld [vmem:[%s7582_s4] ss:$0 sm:$0xff] }
 0x2f2   : > { %3868 = vmatprep.mubr.msk.f32.mxu1 %vm1284_vm5, %v7744_v60  ;;  %v2538_v55 = vpop.permute.xlu0 %2537  ;;  %v2895_v26 = vadd.f32 %v7340_v62, %v7117_v24 }
 0x2f3   : > { %3218 = vmatmul.mubr.f32.gmra.mxu0 %v2675_v48 }
 0x2f4   : > { %3222 = vmatprep.mubr.f32.mxu0 %v7063_v17  ;;  %v7748_v17 = vld [vmem:[#allocation40_spill] sm:$0xff] }
 0x2f5   : > { %3869 = vmatmul.mubr.msk.f32.gmra.mxu1 %vm1284_vm5, %v7746_v3  ;;  %v2677_v27 = vsel %vm1284_vm5, %v7748_v17, %v2536_v11 }
 0x2f6   : > { %3871 = vmatprep.mubr.msk.f32.mxu1 %vm1284_vm5, %v6974_v12 }
 0x2f7   : > { %3223 = vmatmul.mubr.f32.gmra.mxu0 %v2676_v34 }
 0x2f8   : > { %3227 = vmatprep.mubr.f32.mxu0 %v7074_v59 }
 0x2f9   : > { %3872 = vmatmul.mubr.msk.f32.gmra.mxu1 %vm1284_vm5, %v7000_v46  ;;  %v7276_v44 = vpop.f32.mrf.mxu1  ;;  %v7749_v46 = vld [vmem:[#allocation41_spill] sm:$0xff] }
 0x2fa   : > { %3874 = vmatprep.mubr.msk.f32.mxu1 %vm1284_vm5, %v6994_v30  ;;  %v2678_v50 = vsel %vm1284_vm5, %v7749_v46, %v2538_v55  ;;  %v2540_v30 = vpop.permute.xlu1 %2539 }
 0x2fb   : > { %3228 = vmatmul.mubr.f32.gmra.mxu0 %v2677_v27  ;;  %v2956_v12 = vpop.f32.mrf.mxu1 }
 0x2fc   : > { %3232 = vmatprep.mubr.f32.mxu0 %v7083_v13  ;;  %v7750_v13 = vld [vmem:[#allocation42_spill] sm:$0xff] }
 0x2fd   : > { %3875 = vmatmul.mubr.msk.f32.gmra.mxu1 %vm1284_vm5, %v7012_v57  ;;  %v7285_v59 = vpop.f32.mrf.mxu1  ;;  %v2679_v47 = vsel %vm1284_vm5, %v7750_v13, %v2540_v30  ;;  %v2542_v57 = vpop.permute.xlu0 %2541 }
 0x2fe   : > { %3877 = vmatprep.mubr.msk.f32.mxu1 %vm1284_vm5, %v7007_v29  ;;  %v7751_v29 = vld [vmem:[#allocation43_spill] sm:$0xff] }
 0x2ff   : > { %3233 = vmatmul.mubr.f32.gmra.mxu0 %v2678_v50  ;;  %v2961_v14 = vpop.f32.mrf.mxu1  ;;  %v2680_v54 = vsel %vm1284_vm5, %v7751_v29, %v2542_v57 }
 0x300   : > { %3237 = vmatprep.mubr.f32.mxu0 %v7094_v18  ;;  %v7752_v18 = vld [vmem:[#allocation19_spill] sm:$0xff] }
 0x301   : > { %3878 = vmatmul.mubr.msk.f32.gmra.mxu1 %vm1284_vm5, %v7024_v10  ;;  %v2544_v10 = vpop.permute.xlu1 %2543  ;;  %v2546_v16 = vpop.permute.xlu0 %2545 }
 0x302   : > { %3880 = vmatprep.mubr.msk.f32.mxu1 %vm1284_vm5, %v6844_v28  ;;  %v2682_v43 = vsel %vm1284_vm5, %v7755_v22, %v2546_v16 }
 0x303   : > { %3238 = vmatmul.mubr.f32.gmra.mxu0 %v2679_v47 }
 0x304   : > { %3242 = vmatprep.mubr.f32.mxu0 %v7103_v1  ;;  %v7754_v1 = vld [vmem:[#allocation45_spill] sm:$0xff] }
 0x305   : > { %3881 = vmatmul.mubr.msk.f32.gmra.mxu1 %vm1284_vm5, %v6876_v23  ;;  %v2681_v8 = vsel %vm1284_vm5, %v7754_v1, %v2544_v10 }
 0x306   : > { %3883 = vmatprep.mubr.msk.f32.mxu1 %vm1284_vm5, %v7752_v18 }
 0x307   : > { %v7305_v21 = vpop.f32.mrf.mxu1  ;;  %3243 = vmatmul.mubr.f32.gmra.mxu0 %v2680_v54 }
 0x308   : > { %3247 = vmatprep.mubr.f32.mxu0 %v7114_v4 }
 0x309   : > { %3884 = vmatmul.mubr.msk.f32.gmra.mxu1 %vm1284_vm5, %v7753_v32  ;;  %v2966_v53 = vpop.f32.mrf.mxu1 }
 0x30a   : > { %3886 = vmatprep.mubr.msk.f32.mxu1 %vm1284_vm5, %v6844_v28 }
 0x30b   : > { %v7314_v6 = vpop.f32.mrf.mxu1  ;;  %3248 = vmatmul.mubr.f32.gmra.mxu0 %v2681_v8 }
 0x30c   : > { %3252 = vmatprep.mubr.f32.mxu0 %v7125_v33 }
 0x30d   : > { %3887 = vmatmul.mubr.msk.f32.gmra.mxu1 %vm1284_vm5, %v6876_v23  ;;  %v2971_v4 = vpop.f32.mrf.mxu1 }
 0x30f   : > { %3253 = vmatmul.mubr.f32.gmra.mxu0 %v2682_v43 }
 0x315   : > { %v7321_v25 = vpop.f32.mrf.mxu1 }
 0x317   : > { %v2976_v20 = vpop.f32.mrf.mxu1 }
 0x319   : > { %v7323_v51 = vpop.f32.mrf.mxu1 }
 0x31b   : > { %v2981_v28 = vpop.f32.mrf.mxu1 }
 0x322   : > { %v7325_v31 = vpop.f32.mrf.mxu1 }
 0x324   : > { %v2986_v15 = vpop.f32.mrf.mxu1 }
 0x326   : > { %v7327_v5 = vpop.f32.mrf.mxu1 }
 0x328   : > { %v2991_v33 = vpop.f32.mrf.mxu1 }
 0x331   : > { %v7329_v58 = vpop.f32.mrf.mxu1 }
 0x333   : > { %v2996_v23 = vpop.f32.mrf.mxu1 }
 0x335   : > { %v7331_v36 = vpop.f32.mrf.mxu1 }
 0x337   : > { %v3001_v41 = vpop.f32.mrf.mxu1 }
 0x33e   : > { %v7333_v37 = vpop.f32.mrf.mxu1 }
 0x340   : > { %v3006_v61 = vpop.f32.mrf.mxu1 }
 0x342   : > { %v7335_v42 = vpop.f32.mrf.mxu1 }
 0x344   : > { %v3011_v45 = vpop.f32.mrf.mxu1 }
 0x34d   : > { %v7342_v60 = vpop.f32.mrf.mxu1 }
 0x34f   : > { %v3016_v48 = vpop.f32.mrf.mxu1 }
 0x350   : > { %v3119_v0 = vpop.f32.mrf.mxu0 }
 0x351   : > { %v7346_v3 = vadd.f32 %v3119_v0, %v2895_v26  ;;  %v7348_v40 = vpop.f32.mrf.mxu1 }
 0x352   : > { %v3121_v34 = vpop.f32.mrf.mxu0 }
 0x353   : > { %v3021_v11 = vpop.f32.mrf.mxu1 }
 0x354   : > { %v3124_v17 = vpop.f32.mrf.mxu0 }
 0x356   : > { %v3126_v27 = vpop.f32.mrf.mxu0 }
 0x35a   : > { %v7350_v55 = vpop.f32.mrf.mxu1 }
 0x35c   : > { %v3026_v12 = vpop.f32.mrf.mxu1 }
 0x35d   : > { %v3129_v46 = vpop.f32.mrf.mxu0 }
 0x35e   : > { %v3029_v50 = vpop.f32.mrf.mxu1 }
 0x35f   : > { %v7353_v30 = vadd.f32 %v7340_v62, %v3029_v50  ;;  %v3131_v14 = vpop.f32.mrf.mxu0 }
 0x360   : > { %v3031_v24 = vpop.f32.mrf.mxu1 }
 0x361   : > { %v3134_v13 = vpop.f32.mrf.mxu0 }
 0x363   : > { %v3136_v47 = vpop.f32.mrf.mxu0 }
 0x369   : > { %v3034_v57 = vpop.f32.mrf.mxu1 }
 0x36a   : > { %v3035_v28 = vadd.f32 %v7340_v62, %v3034_v57 }
 0x36b   : > { %v3036_v29 = vpop.f32.mrf.mxu1 }
 0x36c   : > { %v7355_v54 = vpop.f32.mrf.mxu0 }
 0x36d   : > { %v3039_v18 = vpop.f32.mrf.mxu1 }
 0x36e   : > { %v3141_v10 = vpop.f32.mrf.mxu0  ;;  %v3040_v45 = vadd.f32 %v7340_v62, %v3039_v18 }
 0x36f   : > { %v3041_v32 = vpop.f32.mrf.mxu1  ;;  %v2900_v10 = vadd.f32 %v7340_v62, %v7129_v7 }
 0x370   : > { %v3144_v53 = vpop.f32.mrf.mxu0 }
 0x372   : > { %v3146_v1 = vpop.f32.mrf.mxu0 }
 0x374   : > { %v3044_v8 = vpop.f32.mrf.mxu1 }
 0x375   : > { %v3045_v12 = vadd.f32 %v7340_v62, %v3044_v8 }
 0x376   : > { %v3046_v16 = vpop.f32.mrf.mxu1 }
 0x377   : > { %v3125_v16 = vadd.f32 %v3124_v17, %v2900_v10  ;;  %v2920_v17 = vadd.f32 %v7340_v62, %v7187_v38  ;;  %v2930_v10 = vadd.f32 %v7340_v62, %v7205_v49 }
 0x37b   : > { %v7357_v4 = vpop.f32.mrf.mxu0 }
 0x37c   : > { %v7359_v22 = vpop.f32.mrf.mxu1 }
 0x37d   : > { %v3151_v43 = vpop.f32.mrf.mxu0 }
 0x37e   : > { %v3051_v20 = vpop.f32.mrf.mxu1 }
 0x37f   : > { %v7362_v15 = vpop.f32.mrf.mxu0  ;;  %v2910_v20 = vadd.f32 %v7340_v62, %v7158_v35 }
 0x380   : > { %v3259_v33 = vpop.f32.mrf.mxu1 }
 0x381   : > { %v7364_v23 = vadd.f32 %v3259_v33, %v3035_v28  ;;  %v3156_v41 = vpop.f32.mrf.mxu0  ;;  %v2905_v33 = vadd.f32 %v7340_v62, %v7144_v52  ;;  %v3135_v7 = vadd.f32 %v3134_v13, %v2910_v20  ;;  %v2915_v52 = vadd.f32 %v7340_v62, %v7172_v9 }
 0x382   : > { %v3261_v61 = vpop.f32.mrf.mxu1  ;;  %v2925_v20 = vadd.f32 %v7340_v62, %v7196_v2 }
 0x383   : > { %v7367_v26 = vpop.f32.mrf.mxu0  ;;  %v3140_v9 = vadd.f32 %v7355_v54, %v2915_v52 }
 0x384   : > { %v3264_v48 = vpop.f32.mrf.mxu1 }
 0x385   : > { %v7369_v0 = vadd.f32 %v3264_v48, %v3040_v45  ;;  %v3161_v34 = vpop.f32.mrf.mxu0 }
 0x386   : > { %v3266_v11 = vpop.f32.mrf.mxu1  ;;  %v3130_v34 = vadd.f32 %v3129_v46, %v2905_v33 }
 0x387   : > { %v7371_v27 = vpop.f32.mrf.mxu0 }
 0x389   : > { %v3269_v50 = vpop.f32.mrf.mxu1  ;;  %v3166_v14 = vpop.f32.mrf.mxu0 }
 0x38a   : > { %v7374_v24 = vadd.f32 %v3269_v50, %v3045_v12 }
 0x38b   : > { %v3271_v47 = vpop.f32.mrf.mxu1  ;;  %v7376_v57 = vpop.f32.mrf.mxu0 }
 0x38c   : > { %v3145_v47 = vadd.f32 %v3144_v53, %v2920_v17 }
 0x38d   : > { %v7378_v29 = vpop.f32.mrf.mxu1  ;;  %v3171_v18 = vpop.f32.mrf.mxu0 }
 0x38f   : > { %v3276_v32 = vpop.f32.mrf.mxu1  ;;  %v7383_v1 = vpop.f32.mrf.mxu0 }
 0x391   : > { %v3843_v8 = vpop.f32.mrf.mxu1  ;;  %v3176_v43 = vpop.f32.mrf.mxu0 }
 0x392   : > { %v3350_v28 = vadd.f32 %v3843_v8, %v3125_v16 }
 0x393   : > { %v3344_v41 = vpop.f32.mrf.mxu1  ;;  %v7391_v61 = vpop.f32.mrf.mxu0 }
 0x394   : > { %vm3504_vm0 = vcmp.ge.f32.partialorder %v3350_v28, 0.0  ;;  %v3536_v45 = vmul.f32 0.01, %v3350_v28  ;;  %v3345_v48 = vadd.f32 %v3344_v41, %v7346_v3 }
 0x395   : > { %v3846_v11 = vpop.f32.mrf.mxu1  ;;  %v3181_v12 = vpop.f32.mrf.mxu0 }
 0x396   : > { %v3568_v50 = vsel %vm3504_vm0, %v3350_v28, %v3536_v45  ;;  %vm3503_vm1 = vcmp.ge.f32.partialorder %v3345_v48, 0.0  ;;  %v3535_v35 = vmul.f32 0.01, %v3345_v48  ;;  %v3360_v14 = vadd.f32 %v3846_v11, %v3135_v7 }
 0x397   : > { %3600 = vst.msk [vmem:[%s7398_s15 + $0x8] sm:$0xff] %vm1284_vm5, %v3568_v50  ;;  %v3354_v3 = vpop.f32.mrf.mxu1  ;;  %v7402_v13 = vpop.f32.mrf.mxu0  ;;  %v3155_v28 = vadd.f32 %v7362_v15, %v2930_v10  ;;  %v2940_v45 = vadd.f32 %v7340_v62, %v7228_v39  ;;  %v2935_v12 = vadd.f32 %v7340_v62, %v7219_v19  ;;  %v2945_v10 = vadd.f32 %v7340_v62, %v7246_v63 }
 0x398   : > { %v3567_v38 = vsel %vm3503_vm1, %v3345_v48, %v3535_v35  ;;  %vm3506_vm13 = vcmp.ge.f32.partialorder %v3360_v14, 0.0  ;;  %v3538_v46 = vmul.f32 0.01, %v3360_v14  ;;  %v3355_v18 = vadd.f32 %v3354_v3, %v3130_v34 }
 0x399   : > { %3599 = vst.msk [vmem:[%s7398_s15] sm:$0xff] %vm1284_vm5, %v3567_v38  ;;  %v3849_v53 = vpop.f32.mrf.mxu1  ;;  %v3186_v32 = vpop.f32.mrf.mxu0  ;;  %v3150_v48 = vadd.f32 %v7357_v4, %v2925_v20  ;;  %v3165_v50 = vadd.f32 %v7371_v27, %v2940_v45  ;;  %v3160_v3 = vadd.f32 %v7367_v26, %v2935_v12  ;;  %v2965_v12 = vadd.f32 %v7340_v62, %v7305_v21 }
 0x39a   : > { %v3570_v16 = vsel %vm3506_vm13, %v3360_v14, %v3538_v46  ;;  %vm3505_vm4 = vcmp.ge.f32.partialorder %v3355_v18, 0.0  ;;  %v3537_v8 = vmul.f32 0.01, %v3355_v18  ;;  %v3370_v43 = vadd.f32 %v3849_v53, %v3145_v47 }
 0x39b   : > { %3602 = vst.msk [vmem:[%s7398_s15 + $0x18] sm:$0xff] %vm1284_vm5, %v3570_v16  ;;  %v3364_v33 = vpop.f32.mrf.mxu1  ;;  %v7414_v49 = vpop.f32.mrf.mxu0  ;;  %v2950_v47 = vadd.f32 %v7340_v62, %v7255_v56 }
 0x39c   : > { %v3569_v54 = vsel %vm3505_vm4, %v3355_v18, %v3537_v8  ;;  %vm3508_vm6 = vcmp.ge.f32.partialorder %v3370_v43, 0.0  ;;  %v3540_v41 = vmul.f32 0.01, %v3370_v43  ;;  %v3365_v7 = vadd.f32 %v3364_v33, %v3140_v9 }
 0x39d   : > { %3601 = vst.msk [vmem:[%s7398_s15 + $0x10] sm:$0xff] %vm1284_vm5, %v3569_v54  ;;  %v3852_v2 = vpop.f32.mrf.mxu1  ;;  %v3191_v17 = vpop.f32.mrf.mxu0  ;;  %v3175_v9 = vadd.f32 %v7383_v1, %v2950_v47  ;;  %v2960_v8 = vadd.f32 %v7340_v62, %v7285_v59  ;;  %v2955_v54 = vadd.f32 %v7340_v62, %v7276_v44  ;;  %v3190_v47 = vadd.f32 %v7414_v49, %v2965_v12 }
 0x39e   : > { %v3572_v15 = vsel %vm3508_vm6, %v3370_v43, %v3540_v41  ;;  %vm3507_vm7 = vcmp.ge.f32.partialorder %v3365_v7, 0.0  ;;  %v3539_v34 = vmul.f32 0.01, %v3365_v7  ;;  %v3380_v11 = vadd.f32 %v3852_v2, %v3155_v28 }
 0x39f   : > { %3604 = vst.msk [vmem:[%s7398_s15 + $0x28] sm:$0xff] %vm1284_vm5, %v3572_v15  ;;  %v3374_v35 = vpop.f32.mrf.mxu1  ;;  %v3194_v39 = vpop.f32.mrf.mxu0  ;;  %v3170_v43 = vadd.f32 %v7376_v57, %v2945_v10  ;;  %v3185_v41 = vadd.f32 %v7402_v13, %v2960_v8  ;;  %v2970_v2 = vadd.f32 %v7340_v62, %v7314_v6  ;;  %v3180_v17 = vadd.f32 %v7391_v61, %v2955_v54 }
 0x3a0   : > { %v3571_v4 = vsel %vm3507_vm7, %v3365_v7, %v3539_v34  ;;  %vm3510_vm8 = vcmp.ge.f32.partialorder %v3380_v11, 0.0  ;;  %v3542_v14 = vmul.f32 0.01, %v3380_v11  ;;  %v3375_v52 = vadd.f32 %v3374_v35, %v3150_v48 }
 0x3a1   : > { %3603 = vst.msk [vmem:[%s7398_s15 + $0x20] sm:$0xff] %vm1284_vm5, %v3571_v4  ;;  %v3855_v38 = vpop.f32.mrf.mxu1  ;;  %v3196_v19 = vpop.f32.mrf.mxu0 }
 0x3a2   : > { %v3574_v27 = vsel %vm3510_vm8, %v3380_v11, %v3542_v14  ;;  %vm3509_vm9 = vcmp.ge.f32.partialorder %v3375_v52, 0.0  ;;  %v3541_v46 = vmul.f32 0.01, %v3375_v52  ;;  %v3390_v18 = vadd.f32 %v3855_v38, %v3165_v50 }
 0x3a3   : > { %3606 = vst.msk [vmem:[%s7398_s15 + $0x38] sm:$0xff] %vm1284_vm5, %v3574_v27  ;;  %v3384_v53 = vpop.f32.mrf.mxu1  ;;  %v3199_v56 = vpop.f32.mrf.mxu0  ;;  %v3195_v50 = vadd.f32 %v3194_v39, %v2970_v2  ;;  %v2975_v27 = vadd.f32 %v7340_v62, %v7321_v25 }
 0x3a4   : > { %v3573_v26 = vsel %vm3509_vm9, %v3375_v52, %v3541_v46  ;;  %vm3512_vm10 = vcmp.ge.f32.partialorder %v3390_v18, 0.0  ;;  %v3544_v32 = vmul.f32 0.01, %v3390_v18  ;;  %v3385_v16 = vadd.f32 %v3384_v53, %v3160_v3 }
 0x3a5   : > { %3605 = vst.msk [vmem:[%s7398_s15 + $0x30] sm:$0xff] %vm1284_vm5, %v3573_v26  ;;  %v3858_v20 = vpop.f32.mrf.mxu1  ;;  %v3201_v63 = vpop.f32.mrf.mxu0  ;;  %v2980_v52 = vadd.f32 %v7340_v62, %v7323_v51  ;;  %v2990_v53 = vadd.f32 %v7340_v62, %v7327_v5  ;;  %v3200_v26 = vadd.f32 %v3199_v56, %v2975_v27 }
 0x3a6   : > { %v3576_v1 = vsel %vm3512_vm10, %v3390_v18, %v3544_v32  ;;  %vm3511_vm11 = vcmp.ge.f32.partialorder %v3385_v16, 0.0  ;;  %v3543_v28 = vmul.f32 0.01, %v3385_v16  ;;  %v3400_v33 = vadd.f32 %v3858_v20, %v3175_v9 }
 0x3a7   : > { %3608 = vst.msk [vmem:[%s7398_s15 + $0x48] sm:$0xff] %vm1284_vm5, %v3576_v1  ;;  %v3394_v7 = vpop.f32.mrf.mxu1  ;;  %v3204_v59 = vpop.f32.mrf.mxu0  ;;  %v2985_v20 = vadd.f32 %v7340_v62, %v7325_v31 }
 0x3a8   : > { %v3575_v57 = vsel %vm3511_vm11, %v3385_v16, %v3543_v28  ;;  %vm3514_vm12 = vcmp.ge.f32.partialorder %v3400_v33, 0.0  ;;  %v3546_v45 = vmul.f32 0.01, %v3400_v33  ;;  %v3395_v48 = vadd.f32 %v3394_v7, %v3170_v43 }
 0x3a9   : > { %3607 = vst.msk [vmem:[%s7398_s15 + $0x40] sm:$0xff] %vm1284_vm5, %v3575_v57  ;;  %v3861_v15 = vpop.f32.mrf.mxu1  ;;  %v3206_v44 = vpop.f32.mrf.mxu0  ;;  %v3205_v46 = vadd.f32 %v3204_v59, %v2980_v52 }
 0x3aa   : > { %v3578_v13 = vsel %vm3514_vm12, %v3400_v33, %v3546_v45  ;;  %vm3513_vm14 = vcmp.ge.f32.partialorder %v3395_v48, 0.0  ;;  %v3545_v34 = vmul.f32 0.01, %v3395_v48  ;;  %v3410_v11 = vadd.f32 %v3861_v15, %v3185_v41 }
 0x3ab   : > { %3610 = vst.msk [vmem:[%s7398_s15 + $0x58] sm:$0xff] %vm1284_vm5, %v3578_v13  ;;  %v3404_v35 = vpop.f32.mrf.mxu1  ;;  %v3209_v4 = vpop.f32.mrf.mxu0  ;;  %v2995_v45 = vadd.f32 %v7340_v62, %v7329_v58 }
 0x3ac   : > { %v3577_v6 = vsel %vm3513_vm14, %v3395_v48, %v3545_v34  ;;  %vm3516_vm15 = vcmp.ge.f32.partialorder %v3410_v11, 0.0  ;;  %v3548_v61 = vmul.f32 0.01, %v3410_v11  ;;  %v3405_v14 = vadd.f32 %v3404_v35, %v3180_v17 }
 0x3ad   : > { %3609 = vst.msk [vmem:[%s7398_s15 + $0x50] sm:$0xff] %vm1284_vm5, %v3577_v6  ;;  %v3864_v3 = vpop.f32.mrf.mxu1  ;;  %v3211_v38 = vpop.f32.mrf.mxu0  ;;  %v3210_v54 = vadd.f32 %v3209_v4, %v2985_v20  ;;  %v3000_v48 = vadd.f32 %v7340_v62, %v7331_v36  ;;  %v3005_v34 = vadd.f32 %v7340_v62, %v7333_v37 }
 0x3ae   : > { %v3580_v21 = vsel %vm3516_vm15, %v3410_v11, %v3548_v61  ;;  %vm3515_vm2 = vcmp.ge.f32.partialorder %v3405_v14, 0.0  ;;  %v3547_v39 = vmul.f32 0.01, %v3405_v14  ;;  %v3420_v19 = vadd.f32 %v3864_v3, %v3195_v50 }
 0x3af   : > { %3612 = vst.msk [vmem:[%s7398_s15 + $0x68] sm:$0xff] %vm1284_vm5, %v3580_v21  ;;  %v3414_v18 = vpop.f32.mrf.mxu1  ;;  %v3214_v51 = vpop.f32.mrf.mxu0  ;;  %v3010_v21 = vadd.f32 %v7340_v62, %v7335_v42 }
 0x3b0   : > { %v3579_v10 = vsel %vm3515_vm2, %v3405_v14, %v3547_v39  ;;  %vm3518_vm3 = vcmp.ge.f32.partialorder %v3420_v19, 0.0  ;;  %v3550_v49 = vmul.f32 0.01, %v3420_v19  ;;  %v3415_v9 = vadd.f32 %v3414_v18, %v3190_v47 }
 0x3b1   : > { %3611 = vst.msk [vmem:[%s7398_s15 + $0x60] sm:$0xff] %vm1284_vm5, %v3579_v10  ;;  %v3867_v32 = vpop.f32.mrf.mxu1  ;;  %v3216_v16 = vpop.f32.mrf.mxu0  ;;  %v3215_v63 = vadd.f32 %v3214_v51, %v2990_v53  ;;  %v3015_v53 = vadd.f32 %v7340_v62, %v7342_v60 }
 0x3b2   : > { %v3582_v25 = vsel %vm3518_vm3, %v3420_v19, %v3550_v49  ;;  %vm3517_vm0 = vcmp.ge.f32.partialorder %v3415_v9, 0.0  ;;  %v3549_v8 = vmul.f32 0.01, %v3415_v9  ;;  %v3430_v43 = vadd.f32 %v3867_v32, %v3205_v46 }
 0x3b3   : > { %3614 = vst.msk [vmem:[%s7398_s15 + $0x78] sm:$0xff] %vm1284_vm5, %v3582_v25  ;;  %v3424_v1 = vpop.f32.mrf.mxu1  ;;  %v3219_v28 = vpop.f32.mrf.mxu0 }
 0x3b4   : > { %v3581_v5 = vsel %vm3517_vm0, %v3415_v9, %v3549_v8  ;;  %vm3520_vm1 = vcmp.ge.f32.partialorder %v3430_v43, 0.0  ;;  %v3552_v56 = vmul.f32 0.01, %v3430_v43  ;;  %v3425_v33 = vadd.f32 %v3424_v1, %v3200_v26 }
 0x3b5   : > { %3613 = vst.msk [vmem:[%s7398_s15 + $0x70] sm:$0xff] %vm1284_vm5, %v3581_v5  ;;  %v3870_v41 = vpop.f32.mrf.mxu1  ;;  %v3221_v7 = vpop.f32.mrf.mxu0  ;;  %v3220_v50 = vadd.f32 %v3219_v28, %v2995_v45  ;;  %v3020_v1 = vadd.f32 %v7340_v62, %v7348_v40  ;;  %v3025_v40 = vadd.f32 %v7340_v62, %v7350_v55 }
 0x3b6   : > { %v3584_v59 = vsel %vm3520_vm1, %v3430_v43, %v3552_v56  ;;  %vm3519_vm13 = vcmp.ge.f32.partialorder %v3425_v33, 0.0  ;;  %v3551_v57 = vmul.f32 0.01, %v3425_v33  ;;  %v3440_v31 = vadd.f32 %v3870_v41, %v3215_v63 }
 0x3b7   : > { %3616 = vst.msk [vmem:[%s7398_s15 + $0x88] sm:$0xff] %vm1284_vm5, %v3584_v59  ;;  %v3434_v2 = vpop.f32.mrf.mxu1  ;;  %v3224_v17 = vpop.f32.mrf.mxu0  ;;  %v3050_v41 = vadd.f32 %v7340_v62, %v7359_v22 }
 0x3b8   : > { %v3583_v15 = vsel %vm3519_vm13, %v3425_v33, %v3551_v57  ;;  %vm3522_vm4 = vcmp.ge.f32.partialorder %v3440_v31, 0.0  ;;  %v3554_v44 = vmul.f32 0.01, %v3440_v31  ;;  %v3435_v13 = vadd.f32 %v3434_v2, %v3210_v54 }
 0x3b9   : > { %3615 = vst.msk [vmem:[%s7398_s15 + $0x80] sm:$0xff] %vm1284_vm5, %v3583_v15  ;;  %v3225_v11 = vadd.f32 %v3224_v17, %v3000_v48  ;;  %v3873_v58 = vpop.f32.mrf.mxu1  ;;  %v3226_v12 = vpop.f32.mrf.mxu0  ;;  %v3275_v48 = vadd.f32 %v7378_v29, %v3050_v41 }
 0x3ba   : > { %v3586_v36 = vsel %vm3522_vm4, %v3440_v31, %v3554_v44  ;;  %vm3521_vm6 = vcmp.ge.f32.partialorder %v3435_v13, 0.0  ;;  %v3553_v35 = vmul.f32 0.01, %v3435_v13 }
 0x3bb   : > { %3618 = vst.msk [vmem:[%s7398_s15 + $0x98] sm:$0xff] %vm1284_vm5, %v3586_v36  ;;  %v3450_v4 = vadd.f32 %v3873_v58, %v3225_v11  ;;  %v3444_v6 = vpop.f32.mrf.mxu1  ;;  %v3229_v61 = vpop.f32.mrf.mxu0 }
 0x3bc   : > { %v3585_v14 = vsel %vm3521_vm6, %v3435_v13, %v3553_v35  ;;  %v3445_v52 = vadd.f32 %v3444_v6, %v3220_v50  ;;  %v3230_v47 = vadd.f32 %v3229_v61, %v3005_v34 }
 0x3bd   : > { %3617 = vst.msk [vmem:[%s7398_s15 + $0x90] sm:$0xff] %vm1284_vm5, %v3585_v14  ;;  %vm3524_vm7 = vcmp.ge.f32.partialorder %v3450_v4, 0.0  ;;  %v3556_v37 = vmul.f32 0.01, %v3450_v4  ;;  %v3876_v3 = vpop.f32.mrf.mxu1  ;;  %v3231_v38 = vpop.f32.mrf.mxu0 }
 0x3be   : > { %vm3523_vm8 = vcmp.ge.f32.partialorder %v3445_v52, 0.0  ;;  %v3555_v39 = vmul.f32 0.01, %v3445_v52 }
 0x3bf   : > { %v3588_v19 = vsel %vm3524_vm7, %v3450_v4, %v3556_v37  ;;  %v3454_v27 = vpop.f32.mrf.mxu1  ;;  %v3234_v46 = vpop.f32.mrf.mxu0 }
 0x3c0   : > { %3620 = vst.msk [vmem:[%s7398_s15 + $0xa8] sm:$0xff] %vm1284_vm5, %v3588_v19  ;;  %v3587_v18 = vsel %vm3523_vm8, %v3445_v52, %v3555_v39  ;;  %v3455_v51 = vadd.f32 %v3454_v27, %v3230_v47  ;;  %v3235_v10 = vadd.f32 %v3234_v46, %v3010_v21 }
 0x3c1   : > { %3619 = vst.msk [vmem:[%s7398_s15 + $0xa0] sm:$0xff] %vm1284_vm5, %v3587_v18  ;;  %v3879_v49 = vpop.f32.mrf.mxu1  ;;  %v3236_v9 = vpop.f32.mrf.mxu0 }
 0x3c2   : > { %vm3525_vm9 = vcmp.ge.f32.partialorder %v3455_v51, 0.0  ;;  %v3557_v42 = vmul.f32 0.01, %v3455_v51  ;;  %v3460_v26 = vadd.f32 %v3876_v3, %v3235_v10 }
 0x3c3   : > { %v3464_v32 = vpop.f32.mrf.mxu1  ;;  %v3239_v16 = vpop.f32.mrf.mxu0 }
 0x3c4   : > { %v3589_v25 = vsel %vm3525_vm9, %v3455_v51, %v3557_v42  ;;  %vm3526_vm10 = vcmp.ge.f32.partialorder %v3460_v26, 0.0  ;;  %v3558_v8 = vmul.f32 0.01, %v3460_v26  ;;  %v3240_v43 = vadd.f32 %v3239_v16, %v3015_v53 }
 0x3c5   : > { %3621 = vst.msk [vmem:[%s7398_s15 + $0xb0] sm:$0xff] %vm1284_vm5, %v3589_v25  ;;  %v3882_v20 = vpop.f32.mrf.mxu1  ;;  %v3241_v63 = vpop.f32.mrf.mxu0 }
 0x3c6   : > { %v3590_v28 = vsel %vm3526_vm10, %v3460_v26, %v3558_v8  ;;  %v3465_v60 = vadd.f32 %v3464_v32, %v3240_v43 }
 0x3c7   : > { %3622 = vst.msk [vmem:[%s7398_s15 + $0xb8] sm:$0xff] %vm1284_vm5, %v3590_v28  ;;  %v3474_v5 = vpop.f32.mrf.mxu1  ;;  %v3244_v56 = vpop.f32.mrf.mxu0 }
 0x3c8   : > { %vm3527_vm11 = vcmp.ge.f32.partialorder %v3465_v60, 0.0  ;;  %v3559_v33 = vmul.f32 0.01, %v3465_v60  ;;  %v3245_v54 = vadd.f32 %v3244_v56, %v3020_v1 }
 0x3c9   : > { %v3885_v7 = vpop.f32.mrf.mxu1  ;;  %v3246_v59 = vpop.f32.mrf.mxu0 }
 0x3ca   : > { %v3591_v57 = vsel %vm3527_vm11, %v3465_v60, %v3559_v33  ;;  %v3470_v31 = vadd.f32 %v3879_v49, %v3245_v54  ;;  %v3490_v45 = vadd.f32 %v3885_v7, %v7369_v0 }
 0x3cb   : > { %3623 = vst.msk [vmem:[%s7398_s15 + $0xc0] sm:$0xff] %vm1284_vm5, %v3591_v57  ;;  %v3484_v2 = vpop.f32.mrf.mxu1  ;;  %v3249_v17 = vpop.f32.mrf.mxu0 }
 0x3cc   : > { %vm3528_vm12 = vcmp.ge.f32.partialorder %v3470_v31, 0.0  ;;  %v3560_v15 = vmul.f32 0.01, %v3470_v31  ;;  %vm3532_vm14 = vcmp.ge.f32.partialorder %v3490_v45, 0.0  ;;  %v3564_v22 = vmul.f32 0.01, %v3490_v45 }
 0x3cd   : > { %v3485_v44 = vadd.f32 %v3484_v2, %v7364_v23  ;;  %v3250_v13 = vadd.f32 %v3249_v17, %v3025_v40  ;;  %v3888_v34 = vpop.f32.mrf.mxu1  ;;  %v3251_v0 = vpop.f32.mrf.mxu0 }
 0x3ce   : > { %v3592_v11 = vsel %vm3528_vm12, %v3470_v31, %v3560_v15  ;;  %v3596_v58 = vsel %vm3532_vm14, %v3490_v45, %v3564_v22  ;;  %v3500_v62 = vadd.f32 %v3888_v34, %v3275_v48 }
 0x3cf   : > { %3624 = vst.msk [vmem:[%s7398_s15 + $0xc8] sm:$0xff] %vm1284_vm5, %v3592_v11  ;;  %3628 = vst.msk [vmem:[%s7398_s15 + $0xe8] sm:$0xff] %vm1284_vm5, %v3596_v58  ;;  %vm3531_vm15 = vcmp.ge.f32.partialorder %v3485_v44, 0.0  ;;  %v3563_v55 = vmul.f32 0.01, %v3485_v44  ;;  %v3475_v29 = vadd.f32 %v3474_v5, %v3250_v13  ;;  %v3494_v12 = vpop.f32.mrf.mxu1  ;;  %v3254_v50 = vpop.f32.mrf.mxu0 }
 0x3d0   : > { %vm3534_vm2 = vcmp.ge.f32.partialorder %v3500_v62, 0.0  ;;  %v3566_v23 = vmul.f32 0.01, %v3500_v62  ;;  %v3495_v36 = vadd.f32 %v3494_v12, %v7374_v24  ;;  %v3255_v35 = vadd.f32 %v3254_v50, %v7353_v30 }
 0x3d1   : > { %v3595_v4 = vsel %vm3531_vm15, %v3485_v44, %v3563_v55  ;;  %vm3529_vm3 = vcmp.ge.f32.partialorder %v3475_v29, 0.0  ;;  %v3561_v6 = vmul.f32 0.01, %v3475_v29  ;;  %v3256_v61 = vpop.f32.mrf.mxu0 }
 0x3d2   : > { %3627 = vst.msk [vmem:[%s7398_s15 + $0xe0] sm:$0xff] %vm1284_vm5, %v3595_v4  ;;  %v3598_v14 = vsel %vm3534_vm2, %v3500_v62, %v3566_v23  ;;  %vm3533_vm0 = vcmp.ge.f32.partialorder %v3495_v36, 0.0  ;;  %v3565_v52 = vmul.f32 0.01, %v3495_v36  ;;  %v3480_v47 = vadd.f32 %v3882_v20, %v3255_v35 }
 0x3d3   : > { %v3593_v37 = vsel %vm3529_vm3, %v3475_v29, %v3561_v6  ;;  %3630 = vst.msk [vmem:[%s7398_s15 + $0xf8] sm:$0xff] %vm1284_vm5, %v3598_v14 }
 0x3d4   : > { %3625 = vst.msk [vmem:[%s7398_s15 + $0xd0] sm:$0xff] %vm1284_vm5, %v3593_v37  ;;  %v3597_v30 = vsel %vm3533_vm0, %v3495_v36, %v3565_v52  ;;  %vm3530_vm1 = vcmp.ge.f32.partialorder %v3480_v47, 0.0  ;;  %v3562_v24 = vmul.f32 0.01, %v3480_v47 }
 0x3d5   : > { %3629 = vst.msk [vmem:[%s7398_s15 + $0xf0] sm:$0xff] %vm1284_vm5, %v3597_v30 }
 0x3d6   : > { %v3594_v3 = vsel %vm3530_vm1, %v3480_v47, %v3562_v24 }
 0x3d7   : > { %3626 = vst.msk [vmem:[%s7398_s15 + $0xd8] sm:$0xff] %vm1284_vm5, %v3594_v3 }
 0x3d8   : > { %4782 = shalt.err (!%p4779_p3)
}
 0x3d9   : > { %s4783_s25 = scalar_lea.hbm %s7528_s7, 4096  ;;  %s4787_s9 = scalar_lea.hbm %s7583_s5, 8192 }
 0x3da   : > { %p4784_p4 = scmp.ne.s32.totalorder %s7528_s7, %s4783_s25  ;;  %p4788_p9 = scmp.lt.s32.totalorder %s7528_s7, %s7583_s5 }
 0x3db   : > { %p4789_p10 = scmp.lt.s32.totalorder %s4787_s9, %s4783_s25 }
 0x3dc   : > { %p4785_p7 = pnand %p4784_p4, %p4910_p5 }
 0x3dd   : > { %p4790_p11 = por %p4789_p10, %p4788_p9 }
 0x3de   : > { %p4786_p8 = pneg %p4785_p7 }
 0x3e0   : > { %p4791_p12 = pnand %p4790_p11, %p4786_p8 }
 0x3e2   : > { %4794 = shalt.err (!%p4791_p12)
}
 0x3e3   : > { %s4840_s15 = smov 128   ;;  %s4841_s26 = smov 8  }
 0x3e4   : > { %3954 = dma.vmem_to_hbm [thread:$0]  (%p4910_p5), %s7530_s12, 4096, %s7528_s7, %s7538_s8, %s4840_s15, %s4840_s15, %s4841_s26  }
 0x3e5 PF: > { %p3960_p13 = scmp.ge.s32.totalorder %s4829_s21, 2  ;;  %s3660_s30 = sand.u32 1, %s4817_s18  }
 0x3e6   : > { %s3661_s22 = scalar_lea.sflag [#allocation3], %s3660_s30 }
 0x3e7   : > { %p3957_p0 = pnand %p3960_p13, %p4914_p6 }
 0x3e9   : > { %p3958_p1 = pneg %p3957_p0 }
 0x3eb   : > { %4812 = dma.done.wait (%p3958_p1), %s3661_s22, 4096  }
 0x3ec   : > { %4814 = vsyncadd (%p3958_p1), %s3661_s22, 4294963200  ;;  %p15_p2 = scmp.ge.s32.totalorder %s4897_s24, 4   ;;  %s7756_s18 = smov %s4821_s19 }
 0x3ed   : > { %s7757_s19 = smov %s4825_s20  ;;  %s7758_s20 = smov %s4908_s27 }
 0x3ee   : > { %s7759_s21 = smov %s4897_s24  ;;  %17 = sbr.rel (!%p15_p2) target bundleno = 3 (0x3), region = 75 }
 0x3f3   :  { %3666 = vsyncpa [#allocation3], 1 }
 0x3f4   :  { %3668 = vsyncpa [#allocation3 + $0x1], 1 }

</bundles_post_ra>
